<compile_context>
chip_gen: v5e
topology: v5e:2x2
jax: 0.10.0
libtpu: 0.0.40
codegen_flags: <defaults>
</compile_context>

<pallas_src>
import numpy as np
import jax
import jax.numpy as jnp
from jax.experimental import pallas as pl
from jax.experimental.pallas import tpu as pltpu


# ----------------------------------------------------------------------------
# Fused kernel: upsample(x1) -> pad -> concat(x2, .) -> dsconv+relu -> dsconv+relu
# ----------------------------------------------------------------------------
def light_up_kernel(x1_ref, x2_ref, ahbd_ref, awt_ref,
                    wd1_ref, bd1_ref, wp1_ref, bp1_ref,
                    wd2_ref, bd2_ref, wp2_ref, bp2_ref,
                    o_ref):
    # x1_ref  : (1, C1*H1, W1)     VMEM  low-res feature, channels folded into rows
    # x2_ref  : (1, C2, H, W)      VMEM  skip connection
    # ahbd_ref: (C1*H, C1*H1)      VMEM  block-diag row-interp matrix (F.pad baked in)
    # awt_ref : (W1, W)            VMEM  col-interp matrix, transposed, F.pad baked in
    # wd*_ref : (9, C)             SMEM  depthwise 3x3 taps, row-major (dy, dx)
    # bd*_ref : (C,)               SMEM  depthwise bias
    # wp*_ref : (Cin, Cout)        SMEM  pointwise weights
    # bp*_ref : (Cout,)            SMEM  pointwise bias
    # o_ref   : (1, Cout, H, W)    VMEM
    _, C2, H, W = x2_ref.shape
    Cin = wd1_ref.shape[1]
    C1 = Cin - C2
    Cmid = wp1_ref.shape[1]
    Cout = wp2_ref.shape[1]

    # ---- bilinear x2 upsample of ALL C1 channels (+ centred F.pad) -------------
    # width pass : (C1*H1, W1) @ (W1, W)       channels folded into M, shared awt
    # height pass: (C1*H, C1*H1) @ (C1*H1, W)  single block-diagonal matmul
    xw = jnp.dot(x1_ref[0], awt_ref[...], preferred_element_type=jnp.float32)
    up = jnp.dot(ahbd_ref[...], xw, preferred_element_type=jnp.float32)   # (C1*H, W)

    # ---- boundary masks for the 3x3 taps (computed once, reused everywhere) ----
    row = jax.lax.broadcasted_iota(jnp.int32, (H, W), 0)
    col = jax.lax.broadcasted_iota(jnp.int32, (H, W), 1)
    m_u = row >= 1          # reading x[h-1, w] is valid
    m_d = row <= H - 2      # reading x[h+1, w] is valid
    m_l = col >= 1          # reading x[h, w-1] is valid
    m_r = col <= W - 2      # reading x[h, w+1] is valid

    def dsconv_relu(get_plane, c_in, wd_ref, bd_ref, wp_ref, bp_ref, c_out):
        # Depthwise 3x3 (padding=1) per input channel with the pointwise 1x1
        # fused in: each depthwise plane is folded into the c_out accumulators
        # right away, so only c_out accumulators + one working plane stay live.
        accs = [None] * c_out
        for ci in range(c_in):
            x = get_plane(ci)
            r_u = jnp.where(m_u, pltpu.roll(x, 1, 0), 0.0)        # x[h-1, w]
            r_d = jnp.where(m_d, pltpu.roll(x, H - 1, 0), 0.0)    # x[h+1, w]
            dw = None
            for r_idx, r in enumerate((r_u, x, r_d)):
                lft = jnp.where(m_l, pltpu.roll(r, 1, 1), 0.0)      # r[h, w-1]
                rgt = jnp.where(m_r, pltpu.roll(r, W - 1, 1), 0.0)  # r[h, w+1]
                k = 3 * r_idx
                t = (lft * wd_ref[k, ci] + r * wd_ref[k + 1, ci]
                     + rgt * wd_ref[k + 2, ci])
                dw = t if dw is None else dw + t
            dw = dw + bd_ref[ci]
            for co in range(c_out):                 # fused pointwise accumulation
                t = dw * wp_ref[ci, co]
                accs[co] = t if accs[co] is None else accs[co] + t
        return [jnp.maximum(accs[co] + bp_ref[co], 0.0) for co in range(c_out)]

    # channel concat fused away: x2's channels and the upsampled channels feed
    # the same fused depthwise+pointwise loop (depthwise never mixes channels).
    def in_plane(ci):
        if ci < C2:
            return x2_ref[0, ci]
        c = ci - C2
        return up[c * H:(c + 1) * H, :]            # 8-aligned sublane slice

    mid = dsconv_relu(in_plane, Cin, wd1_ref, bd1_ref, wp1_ref, bp1_ref, Cmid)
    res = dsconv_relu(lambda ci: mid[ci], Cmid,
                      wd2_ref, bd2_ref, wp2_ref, bp2_ref, Cout)
    for co in range(Cout):
        o_ref[0, co] = res[co]


# ----------------------------------------------------------------------------
# Wrapper
# ----------------------------------------------------------------------------
def bilinear_matrix(n_in, n_out):
    # align_corners=True interpolation matrix (n_out, n_in)
    A = np.zeros((n_out, n_in), np.float32)
    if n_in == 1 or n_out == 1:
        A[:, 0] = 1.0
        return A
    for i in range(n_out):
        src = i * (n_in - 1) / (n_out - 1)
        i0 = int(np.floor(src))
        i1 = min(i0 + 1, n_in - 1)
        f = src - i0
        A[i, i0] += 1.0 - f
        A[i, i1] += f
    return A


def light_up_forward(x1, x2, params):
    # x1: (N, C1, H1, W1) NCHW, x2: (N, C2, H, W) NCHW, C1 + C2 == in_channels
    N, C1, H1, W1 = x1.shape
    N2, C2, H, W = x2.shape
    assert N == N2
    Hup, Wup = 2 * H1, 2 * W1
    diffY, diffX = H - Hup, W - Wup
    # TODO(synk): F.pad with negative padding (crop) not implemented.
    assert diffY >= 0 and diffX >= 0, "x2 must be spatially >= upsampled x1"
    py0, px0 = diffY // 2, diffX // 2

    # Interpolation matrices with the centred F.pad baked in as zero rows / cols.
    ahp = np.zeros((H, H1), np.float32)
    ahp[py0:py0 + Hup, :] = bilinear_matrix(H1, Hup)
    ahbd = np.zeros((C1 * H, C1 * H1), np.float32)      # block-diag over channels
    for c in range(C1):
        ahbd[c * H:(c + 1) * H, c * H1:(c + 1) * H1] = ahp
    awt = np.zeros((W1, W), np.float32)
    awt[:, px0:px0 + Wup] = bilinear_matrix(W1, Wup).T
    ahbd = jnp.asarray(ahbd)
    awt = jnp.asarray(awt)

    # Free (contiguous) reshape: fold channels into the M dim of both matmuls.
    x1f = x1.reshape(N, C1 * H1, W1)

    Cout = params["wp2"].shape[1]
    smem = lambda: pl.BlockSpec(memory_space=pltpu.MemorySpace.SMEM)

    return pl.pallas_call(
        light_up_kernel,
        out_shape=jax.ShapeDtypeStruct((N, Cout, H, W), jnp.float32),
        grid=(N,),
        in_specs=[
            pl.BlockSpec((1, C1 * H1, W1), lambda n: (n, 0, 0)),
            pl.BlockSpec((1, C2, H, W), lambda n: (n, 0, 0, 0)),
            # grid-invariant interp matrices stay resident (constant index maps)
            pl.BlockSpec((C1 * H, C1 * H1), lambda n: (0, 0)),
            pl.BlockSpec((W1, W), lambda n: (0, 0)),
            smem(), smem(), smem(), smem(),   # wd1, bd1, wp1, bp1
            smem(), smem(), smem(), smem(),   # wd2, bd2, wp2, bp2
        ],
        out_specs=pl.BlockSpec((1, Cout, H, W), lambda n: (n, 0, 0, 0)),
        compiler_params=pltpu.CompilerParams(
            dimension_semantics=("parallel",),
            # leave headroom below v7x's 64 MiB physical VMEM (128 MiB on v5e/v6e)
            vmem_limit_bytes=48 * 1024 * 1024,
        ),
    )(x1f, x2, ahbd, awt,
      params["wd1"], params["bd1"], params["wp1"], params["bp1"],
      params["wd2"], params["bd2"], params["wp2"], params["bp2"])


# ----------------------------------------------------------------------------
# Pure-JAX reference (for correctness check of the Pallas path)
# ----------------------------------------------------------------------------
def ref_forward(x1, x2, torch_params):
    N, C1, H1, W1 = x1.shape
    ah = jnp.asarray(bilinear_matrix(H1, 2 * H1))
    aw = jnp.asarray(bilinear_matrix(W1, 2 * W1))
    up = jnp.einsum("oh,nchw,pw->ncop", ah, x1, aw)
    diffY = x2.shape[2] - up.shape[2]
    diffX = x2.shape[3] - up.shape[3]
    up = jnp.pad(up, ((0, 0), (0, 0),
                      (diffY // 2, diffY - diffY // 2),
                      (diffX // 2, diffX - diffX // 2)))
    x = jnp.concatenate([x2, up], axis=1)

    def dsconv(x, wd, bd, wp, bp):
        cin = x.shape[1]
        y = jax.lax.conv_general_dilated(
            x, wd, (1, 1), ((1, 1), (1, 1)),
            dimension_numbers=("NCHW", "OIHW", "NCHW"), feature_group_count=cin)
        y = y + bd[None, :, None, None]
        y = jax.lax.conv_general_dilated(
            y, wp, (1, 1), "VALID", dimension_numbers=("NCHW", "OIHW", "NCHW"))
        y = y + bp[None, :, None, None]
        return jnp.maximum(y, 0.0)

    p = torch_params
    y = dsconv(x, p["dw1_w"], p["dw1_b"], p["pw1_w"], p["pw1_b"])
    y = dsconv(y, p["dw2_w"], p["dw2_b"], p["pw2_w"], p["pw2_b"])
    return y


if __name__ == "__main__":
    # LightUp(in_channels=8, out_channels=4, bilinear=True) -> mid_channels = 4
    in_channels, out_channels = 8, 4
    mid_channels = in_channels // 2
    N = 2
    C1 = C2 = in_channels // 2            # concat of x2 and upsampled x1 gives in_channels

    key = jax.random.PRNGKey(0)
    k = jax.random.split(key, 10)
    x1 = jax.random.normal(k[0], (N, C1, 8, 8), jnp.float32)      # low-res decoder feature
    x2 = jax.random.normal(k[1], (N, C2, 16, 16), jnp.float32)    # skip connection

    # PyTorch-shaped parameters, then repacked for the fused kernel.
    torch_params = {
        "dw1_w": 0.2 * jax.random.normal(k[2], (in_channels, 1, 3, 3), jnp.float32),
        "dw1_b": 0.1 * jax.random.normal(k[3], (in_channels,), jnp.float32),
        "pw1_w": 0.2 * jax.random.normal(k[4], (mid_channels, in_channels, 1, 1), jnp.float32),
        "pw1_b": 0.1 * jax.random.normal(k[5], (mid_channels,), jnp.float32),
        "dw2_w": 0.2 * jax.random.normal(k[6], (mid_channels, 1, 3, 3), jnp.float32),
        "dw2_b": 0.1 * jax.random.normal(k[7], (mid_channels,), jnp.float32),
        "pw2_w": 0.2 * jax.random.normal(k[8], (out_channels, mid_channels, 1, 1), jnp.float32),
        "pw2_b": 0.1 * jax.random.normal(k[9], (out_channels,), jnp.float32),
    }
    kernel_params = {
        # depthwise (C,1,3,3) -> (9, C) row-major (dy,dx); pointwise (Cout,Cin,1,1) -> (Cin,Cout)
        "wd1": jnp.transpose(torch_params["dw1_w"][:, 0], (1, 2, 0)).reshape(9, in_channels),
        "bd1": torch_params["dw1_b"],
        "wp1": torch_params["pw1_w"][:, :, 0, 0].T,
        "bp1": torch_params["pw1_b"],
        "wd2": jnp.transpose(torch_params["dw2_w"][:, 0], (1, 2, 0)).reshape(9, mid_channels),
        "bd2": torch_params["dw2_b"],
        "wp2": torch_params["pw2_w"][:, :, 0, 0].T,
        "bp2": torch_params["pw2_b"],
    }

    out = jax.block_until_ready(light_up_forward(x1, x2, kernel_params))
    ref = jax.block_until_ready(ref_forward(x1, x2, torch_params))

    assert out.shape == (N, out_channels, 16, 16), out.shape
    if not jnp.allclose(out, ref, atol=1e-4, rtol=1e-4):
        raise SystemExit("Pallas output does not match reference")
    print("KERNEL_OK")
</pallas_src>

<mosaic_0001>
module attributes {stable_mosaic.version = 11 : i64} {
  func.func @light_up_kernel(%arg0: i32, %arg1: memref<1x32x8xf32, #tpu.memory_space<vmem>>, %arg2: memref<1x4x16x16xf32, #tpu.memory_space<vmem>>, %arg3: memref<64x32xf32, #tpu.memory_space<vmem>>, %arg4: memref<8x16xf32, #tpu.memory_space<vmem>>, %arg5: memref<9x8xf32, #tpu.memory_space<smem>>, %arg6: memref<8xf32, #tpu.memory_space<smem>>, %arg7: memref<8x4xf32, #tpu.memory_space<smem>>, %arg8: memref<4xf32, #tpu.memory_space<smem>>, %arg9: memref<9x4xf32, #tpu.memory_space<smem>>, %arg10: memref<4xf32, #tpu.memory_space<smem>>, %arg11: memref<4x4xf32, #tpu.memory_space<smem>>, %arg12: memref<4xf32, #tpu.memory_space<smem>>, %arg13: memref<1x4x16x16xf32, #tpu.memory_space<vmem>>) attributes {dimension_semantics = [#tpu.dimension_semantics<parallel>], iteration_bounds = array<i64: 2>, scalar_prefetch = 0 : i64, scratch_operands = 0 : i64, tpu.core_type = #tpu.core_type<tc>, window_params = [{transform_indices = @transform_0, window_bounds = array<i64: 1, 32, 8>}, {transform_indices = @transform_1, window_bounds = array<i64: 1, 4, 16, 16>}, {pipeline_mode = #tpu.pipeline_mode<synchronous>, transform_indices = @transform_2, window_bounds = array<i64: 64, 32>}, {pipeline_mode = #tpu.pipeline_mode<synchronous>, transform_indices = @transform_3, window_bounds = array<i64: 8, 16>}, {transform_indices = @transform_4, window_bounds = array<i64: 9, 8>}, {transform_indices = @transform_5, window_bounds = array<i64: 8>}, {transform_indices = @transform_6, window_bounds = array<i64: 8, 4>}, {transform_indices = @transform_7, window_bounds = array<i64: 4>}, {transform_indices = @transform_8, window_bounds = array<i64: 9, 4>}, {transform_indices = @transform_9, window_bounds = array<i64: 4>}, {transform_indices = @transform_10, window_bounds = array<i64: 4, 4>}, {transform_indices = @transform_11, window_bounds = array<i64: 4>}, {transform_indices = @transform_12, window_bounds = array<i64: 1, 4, 16, 16>}]} {
    %c0 = arith.constant 0 : index
    %c0_0 = arith.constant 0 : index
    %c0_1 = arith.constant 0 : index
    %0 = vector.load %arg1[%c0, %c0_0, %c0_1] : memref<1x32x8xf32, #tpu.memory_space<vmem>>, vector<1x32x8xf32>
    %1 = vector.shape_cast %0 : vector<1x32x8xf32> to vector<32x8xf32>
    %c0_2 = arith.constant 0 : index
    %c0_3 = arith.constant 0 : index
    %2 = vector.load %arg4[%c0_2, %c0_3] : memref<8x16xf32, #tpu.memory_space<vmem>>, vector<8x16xf32>
    %cst = arith.constant dense<0.000000e+00> : vector<32x16xf32>
    %3 = tpu.matmul %1, %2, %cst {dimension_numbers = #tpu.dot_dimension_numbers<[1], [0], [0], [1], [0, 0, 1, 1], [], []>} : vector<32x8xf32>, vector<8x16xf32>, vector<32x16xf32> -> vector<32x16xf32>
    %c0_4 = arith.constant 0 : index
    %c0_5 = arith.constant 0 : index
    %4 = vector.load %arg3[%c0_4, %c0_5] : memref<64x32xf32, #tpu.memory_space<vmem>>, vector<64x32xf32>
    %cst_6 = arith.constant dense<0.000000e+00> : vector<64x16xf32>
    %5 = tpu.matmul %4, %3, %cst_6 {dimension_numbers = #tpu.dot_dimension_numbers<[1], [0], [0], [1], [0, 0, 1, 1], [], []>} : vector<64x32xf32>, vector<32x16xf32>, vector<64x16xf32> -> vector<64x16xf32>
    %6 = tpu.iota {dimensions = array<i32: 0>} : vector<16x16xi32>
    %7 = tpu.iota {dimensions = array<i32: 1>} : vector<16x16xi32>
    %c1_i32 = arith.constant 1 : i32
    %8 = vector.broadcast %c1_i32 : i32 to vector<16x16xi32>
    %9 = arith.cmpi sge, %6, %8 : vector<16x16xi32>
    %c14_i32 = arith.constant 14 : i32
    %10 = vector.broadcast %c14_i32 : i32 to vector<16x16xi32>
    %11 = arith.cmpi sle, %6, %10 : vector<16x16xi32>
    %c1_i32_7 = arith.constant 1 : i32
    %12 = vector.broadcast %c1_i32_7 : i32 to vector<16x16xi32>
    %13 = arith.cmpi sge, %7, %12 : vector<16x16xi32>
    %c14_i32_8 = arith.constant 14 : i32
    %14 = vector.broadcast %c14_i32_8 : i32 to vector<16x16xi32>
    %15 = arith.cmpi sle, %7, %14 : vector<16x16xi32>
    %c0_9 = arith.constant 0 : index
    %c0_10 = arith.constant 0 : index
    %c0_11 = arith.constant 0 : index
    %c0_12 = arith.constant 0 : index
    %16 = vector.load %arg2[%c0_9, %c0_10, %c0_11, %c0_12] : memref<1x4x16x16xf32, #tpu.memory_space<vmem>>, vector<1x1x16x16xf32>
    %17 = vector.shape_cast %16 : vector<1x1x16x16xf32> to vector<16x16xf32>
    %c1_i32_13 = arith.constant 1 : i32
    %18 = tpu.dynamic_rotate %17 by %c1_i32_13 dim 0 : vector<16x16xf32>, i32 -> vector<16x16xf32>
    %cst_14 = arith.constant 0.000000e+00 : f32
    %19 = vector.broadcast %cst_14 : f32 to vector<16x16xf32>
    %20 = arith.select %9, %18, %19 : vector<16x16xi1>, vector<16x16xf32>
    %c15_i32 = arith.constant 15 : i32
    %21 = tpu.dynamic_rotate %17 by %c15_i32 dim 0 : vector<16x16xf32>, i32 -> vector<16x16xf32>
    %cst_15 = arith.constant 0.000000e+00 : f32
    %22 = vector.broadcast %cst_15 : f32 to vector<16x16xf32>
    %23 = arith.select %11, %21, %22 : vector<16x16xi1>, vector<16x16xf32>
    %c1_i32_16 = arith.constant 1 : i32
    %24 = tpu.dynamic_rotate %20 by %c1_i32_16 dim 1 : vector<16x16xf32>, i32 -> vector<16x16xf32>
    %cst_17 = arith.constant 0.000000e+00 : f32
    %25 = vector.broadcast %cst_17 : f32 to vector<16x16xf32>
    %26 = arith.select %13, %24, %25 : vector<16x16xi1>, vector<16x16xf32>
    %c15_i32_18 = arith.constant 15 : i32
    %27 = tpu.dynamic_rotate %20 by %c15_i32_18 dim 1 : vector<16x16xf32>, i32 -> vector<16x16xf32>
    %cst_19 = arith.constant 0.000000e+00 : f32
    %28 = vector.broadcast %cst_19 : f32 to vector<16x16xf32>
    %29 = arith.select %15, %27, %28 : vector<16x16xi1>, vector<16x16xf32>
    %c0_20 = arith.constant 0 : index
    %c0_21 = arith.constant 0 : index
    %30 = memref.load %arg5[%c0_20, %c0_21] : memref<9x8xf32, #tpu.memory_space<smem>>
    %31 = vector.broadcast %30 : f32 to vector<16x16xf32>
    %32 = arith.mulf %26, %31 : vector<16x16xf32>
    %c1 = arith.constant 1 : index
    %c0_22 = arith.constant 0 : index
    %33 = memref.load %arg5[%c1, %c0_22] : memref<9x8xf32, #tpu.memory_space<smem>>
    %34 = vector.broadcast %33 : f32 to vector<16x16xf32>
    %35 = arith.mulf %20, %34 : vector<16x16xf32>
    %36 = arith.addf %32, %35 : vector<16x16xf32>
    %c2 = arith.constant 2 : index
    %c0_23 = arith.constant 0 : index
    %37 = memref.load %arg5[%c2, %c0_23] : memref<9x8xf32, #tpu.memory_space<smem>>
    %38 = vector.broadcast %37 : f32 to vector<16x16xf32>
    %39 = arith.mulf %29, %38 : vector<16x16xf32>
    %40 = arith.addf %36, %39 : vector<16x16xf32>
    %c1_i32_24 = arith.constant 1 : i32
    %41 = tpu.dynamic_rotate %17 by %c1_i32_24 dim 1 : vector<16x16xf32>, i32 -> vector<16x16xf32>
    %cst_25 = arith.constant 0.000000e+00 : f32
    %42 = vector.broadcast %cst_25 : f32 to vector<16x16xf32>
    %43 = arith.select %13, %41, %42 : vector<16x16xi1>, vector<16x16xf32>
    %c15_i32_26 = arith.constant 15 : i32
    %44 = tpu.dynamic_rotate %17 by %c15_i32_26 dim 1 : vector<16x16xf32>, i32 -> vector<16x16xf32>
    %cst_27 = arith.constant 0.000000e+00 : f32
    %45 = vector.broadcast %cst_27 : f32 to vector<16x16xf32>
    %46 = arith.select %15, %44, %45 : vector<16x16xi1>, vector<16x16xf32>
    %c3 = arith.constant 3 : index
    %c0_28 = arith.constant 0 : index
    %47 = memref.load %arg5[%c3, %c0_28] : memref<9x8xf32, #tpu.memory_space<smem>>
    %48 = vector.broadcast %47 : f32 to vector<16x16xf32>
    %49 = arith.mulf %43, %48 : vector<16x16xf32>
    %c4 = arith.constant 4 : index
    %c0_29 = arith.constant 0 : index
    %50 = memref.load %arg5[%c4, %c0_29] : memref<9x8xf32, #tpu.memory_space<smem>>
    %51 = vector.broadcast %50 : f32 to vector<16x16xf32>
    %52 = arith.mulf %17, %51 : vector<16x16xf32>
    %53 = arith.addf %49, %52 : vector<16x16xf32>
    %c5 = arith.constant 5 : index
    %c0_30 = arith.constant 0 : index
    %54 = memref.load %arg5[%c5, %c0_30] : memref<9x8xf32, #tpu.memory_space<smem>>
    %55 = vector.broadcast %54 : f32 to vector<16x16xf32>
    %56 = arith.mulf %46, %55 : vector<16x16xf32>
    %57 = arith.addf %53, %56 : vector<16x16xf32>
    %58 = arith.addf %40, %57 : vector<16x16xf32>
    %c1_i32_31 = arith.constant 1 : i32
    %59 = tpu.dynamic_rotate %23 by %c1_i32_31 dim 1 : vector<16x16xf32>, i32 -> vector<16x16xf32>
    %cst_32 = arith.constant 0.000000e+00 : f32
    %60 = vector.broadcast %cst_32 : f32 to vector<16x16xf32>
    %61 = arith.select %13, %59, %60 : vector<16x16xi1>, vector<16x16xf32>
    %c15_i32_33 = arith.constant 15 : i32
    %62 = tpu.dynamic_rotate %23 by %c15_i32_33 dim 1 : vector<16x16xf32>, i32 -> vector<16x16xf32>
    %cst_34 = arith.constant 0.000000e+00 : f32
    %63 = vector.broadcast %cst_34 : f32 to vector<16x16xf32>
    %64 = arith.select %15, %62, %63 : vector<16x16xi1>, vector<16x16xf32>
    %c6 = arith.constant 6 : index
    %c0_35 = arith.constant 0 : index
    %65 = memref.load %arg5[%c6, %c0_35] : memref<9x8xf32, #tpu.memory_space<smem>>
    %66 = vector.broadcast %65 : f32 to vector<16x16xf32>
    %67 = arith.mulf %61, %66 : vector<16x16xf32>
    %c7 = arith.constant 7 : index
    %c0_36 = arith.constant 0 : index
    %68 = memref.load %arg5[%c7, %c0_36] : memref<9x8xf32, #tpu.memory_space<smem>>
    %69 = vector.broadcast %68 : f32 to vector<16x16xf32>
    %70 = arith.mulf %23, %69 : vector<16x16xf32>
    %71 = arith.addf %67, %70 : vector<16x16xf32>
    %c8 = arith.constant 8 : index
    %c0_37 = arith.constant 0 : index
    %72 = memref.load %arg5[%c8, %c0_37] : memref<9x8xf32, #tpu.memory_space<smem>>
    %73 = vector.broadcast %72 : f32 to vector<16x16xf32>
    %74 = arith.mulf %64, %73 : vector<16x16xf32>
    %75 = arith.addf %71, %74 : vector<16x16xf32>
    %76 = arith.addf %58, %75 : vector<16x16xf32>
    %c0_38 = arith.constant 0 : index
    %77 = memref.load %arg6[%c0_38] : memref<8xf32, #tpu.memory_space<smem>>
    %78 = vector.broadcast %77 : f32 to vector<16x16xf32>
    %79 = arith.addf %76, %78 : vector<16x16xf32>
    %c0_39 = arith.constant 0 : index
    %c0_40 = arith.constant 0 : index
    %80 = memref.load %arg7[%c0_39, %c0_40] : memref<8x4xf32, #tpu.memory_space<smem>>
    %81 = vector.broadcast %80 : f32 to vector<16x16xf32>
    %82 = arith.mulf %79, %81 : vector<16x16xf32>
    %c0_41 = arith.constant 0 : index
    %c1_42 = arith.constant 1 : index
    %83 = memref.load %arg7[%c0_41, %c1_42] : memref<8x4xf32, #tpu.memory_space<smem>>
    %84 = vector.broadcast %83 : f32 to vector<16x16xf32>
    %85 = arith.mulf %79, %84 : vector<16x16xf32>
    %c0_43 = arith.constant 0 : index
    %c2_44 = arith.constant 2 : index
    %86 = memref.load %arg7[%c0_43, %c2_44] : memref<8x4xf32, #tpu.memory_space<smem>>
    %87 = vector.broadcast %86 : f32 to vector<16x16xf32>
    %88 = arith.mulf %79, %87 : vector<16x16xf32>
    %c0_45 = arith.constant 0 : index
    %c3_46 = arith.constant 3 : index
    %89 = memref.load %arg7[%c0_45, %c3_46] : memref<8x4xf32, #tpu.memory_space<smem>>
    %90 = vector.broadcast %89 : f32 to vector<16x16xf32>
    %91 = arith.mulf %79, %90 : vector<16x16xf32>
    %c0_47 = arith.constant 0 : index
    %c1_48 = arith.constant 1 : index
    %c0_49 = arith.constant 0 : index
    %c0_50 = arith.constant 0 : index
    %92 = vector.load %arg2[%c0_47, %c1_48, %c0_49, %c0_50] : memref<1x4x16x16xf32, #tpu.memory_space<vmem>>, vector<1x1x16x16xf32>
    %93 = vector.shape_cast %92 : vector<1x1x16x16xf32> to vector<16x16xf32>
    %c1_i32_51 = arith.constant 1 : i32
    %94 = tpu.dynamic_rotate %93 by %c1_i32_51 dim 0 : vector<16x16xf32>, i32 -> vector<16x16xf32>
    %cst_52 = arith.constant 0.000000e+00 : f32
    %95 = vector.broadcast %cst_52 : f32 to vector<16x16xf32>
    %96 = arith.select %9, %94, %95 : vector<16x16xi1>, vector<16x16xf32>
    %c15_i32_53 = arith.constant 15 : i32
    %97 = tpu.dynamic_rotate %93 by %c15_i32_53 dim 0 : vector<16x16xf32>, i32 -> vector<16x16xf32>
    %cst_54 = arith.constant 0.000000e+00 : f32
    %98 = vector.broadcast %cst_54 : f32 to vector<16x16xf32>
    %99 = arith.select %11, %97, %98 : vector<16x16xi1>, vector<16x16xf32>
    %c1_i32_55 = arith.constant 1 : i32
    %100 = tpu.dynamic_rotate %96 by %c1_i32_55 dim 1 : vector<16x16xf32>, i32 -> vector<16x16xf32>
    %cst_56 = arith.constant 0.000000e+00 : f32
    %101 = vector.broadcast %cst_56 : f32 to vector<16x16xf32>
    %102 = arith.select %13, %100, %101 : vector<16x16xi1>, vector<16x16xf32>
    %c15_i32_57 = arith.constant 15 : i32
    %103 = tpu.dynamic_rotate %96 by %c15_i32_57 dim 1 : vector<16x16xf32>, i32 -> vector<16x16xf32>
    %cst_58 = arith.constant 0.000000e+00 : f32
    %104 = vector.broadcast %cst_58 : f32 to vector<16x16xf32>
    %105 = arith.select %15, %103, %104 : vector<16x16xi1>, vector<16x16xf32>
    %c0_59 = arith.constant 0 : index
    %c1_60 = arith.constant 1 : index
    %106 = memref.load %arg5[%c0_59, %c1_60] : memref<9x8xf32, #tpu.memory_space<smem>>
    %107 = vector.broadcast %106 : f32 to vector<16x16xf32>
    %108 = arith.mulf %102, %107 : vector<16x16xf32>
    %c1_61 = arith.constant 1 : index
    %c1_62 = arith.constant 1 : index
    %109 = memref.load %arg5[%c1_61, %c1_62] : memref<9x8xf32, #tpu.memory_space<smem>>
    %110 = vector.broadcast %109 : f32 to vector<16x16xf32>
    %111 = arith.mulf %96, %110 : vector<16x16xf32>
    %112 = arith.addf %108, %111 : vector<16x16xf32>
    %c2_63 = arith.constant 2 : index
    %c1_64 = arith.constant 1 : index
    %113 = memref.load %arg5[%c2_63, %c1_64] : memref<9x8xf32, #tpu.memory_space<smem>>
    %114 = vector.broadcast %113 : f32 to vector<16x16xf32>
    %115 = arith.mulf %105, %114 : vector<16x16xf32>
    %116 = arith.addf %112, %115 : vector<16x16xf32>
    %c1_i32_65 = arith.constant 1 : i32
    %117 = tpu.dynamic_rotate %93 by %c1_i32_65 dim 1 : vector<16x16xf32>, i32 -> vector<16x16xf32>
    %cst_66 = arith.constant 0.000000e+00 : f32
    %118 = vector.broadcast %cst_66 : f32 to vector<16x16xf32>
    %119 = arith.select %13, %117, %118 : vector<16x16xi1>, vector<16x16xf32>
    %c15_i32_67 = arith.constant 15 : i32
    %120 = tpu.dynamic_rotate %93 by %c15_i32_67 dim 1 : vector<16x16xf32>, i32 -> vector<16x16xf32>
    %cst_68 = arith.constant 0.000000e+00 : f32
    %121 = vector.broadcast %cst_68 : f32 to vector<16x16xf32>
    %122 = arith.select %15, %120, %121 : vector<16x16xi1>, vector<16x16xf32>
    %c3_69 = arith.constant 3 : index
    %c1_70 = arith.constant 1 : index
    %123 = memref.load %arg5[%c3_69, %c1_70] : memref<9x8xf32, #tpu.memory_space<smem>>
    %124 = vector.broadcast %123 : f32 to vector<16x16xf32>
    %125 = arith.mulf %119, %124 : vector<16x16xf32>
    %c4_71 = arith.constant 4 : index
    %c1_72 = arith.constant 1 : index
    %126 = memref.load %arg5[%c4_71, %c1_72] : memref<9x8xf32, #tpu.memory_space<smem>>
    %127 = vector.broadcast %126 : f32 to vector<16x16xf32>
    %128 = arith.mulf %93, %127 : vector<16x16xf32>
    %129 = arith.addf %125, %128 : vector<16x16xf32>
    %c5_73 = arith.constant 5 : index
    %c1_74 = arith.constant 1 : index
    %130 = memref.load %arg5[%c5_73, %c1_74] : memref<9x8xf32, #tpu.memory_space<smem>>
    %131 = vector.broadcast %130 : f32 to vector<16x16xf32>
    %132 = arith.mulf %122, %131 : vector<16x16xf32>
    %133 = arith.addf %129, %132 : vector<16x16xf32>
    %134 = arith.addf %116, %133 : vector<16x16xf32>
    %c1_i32_75 = arith.constant 1 : i32
    %135 = tpu.dynamic_rotate %99 by %c1_i32_75 dim 1 : vector<16x16xf32>, i32 -> vector<16x16xf32>
    %cst_76 = arith.constant 0.000000e+00 : f32
    %136 = vector.broadcast %cst_76 : f32 to vector<16x16xf32>
    %137 = arith.select %13, %135, %136 : vector<16x16xi1>, vector<16x16xf32>
    %c15_i32_77 = arith.constant 15 : i32
    %138 = tpu.dynamic_rotate %99 by %c15_i32_77 dim 1 : vector<16x16xf32>, i32 -> vector<16x16xf32>
    %cst_78 = arith.constant 0.000000e+00 : f32
    %139 = vector.broadcast %cst_78 : f32 to vector<16x16xf32>
    %140 = arith.select %15, %138, %139 : vector<16x16xi1>, vector<16x16xf32>
    %c6_79 = arith.constant 6 : index
    %c1_80 = arith.constant 1 : index
    %141 = memref.load %arg5[%c6_79, %c1_80] : memref<9x8xf32, #tpu.memory_space<smem>>
    %142 = vector.broadcast %141 : f32 to vector<16x16xf32>
    %143 = arith.mulf %137, %142 : vector<16x16xf32>
    %c7_81 = arith.constant 7 : index
    %c1_82 = arith.constant 1 : index
    %144 = memref.load %arg5[%c7_81, %c1_82] : memref<9x8xf32, #tpu.memory_space<smem>>
    %145 = vector.broadcast %144 : f32 to vector<16x16xf32>
    %146 = arith.mulf %99, %145 : vector<16x16xf32>
    %147 = arith.addf %143, %146 : vector<16x16xf32>
    %c8_83 = arith.constant 8 : index
    %c1_84 = arith.constant 1 : index
    %148 = memref.load %arg5[%c8_83, %c1_84] : memref<9x8xf32, #tpu.memory_space<smem>>
    %149 = vector.broadcast %148 : f32 to vector<16x16xf32>
    %150 = arith.mulf %140, %149 : vector<16x16xf32>
    %151 = arith.addf %147, %150 : vector<16x16xf32>
    %152 = arith.addf %134, %151 : vector<16x16xf32>
    %c1_85 = arith.constant 1 : index
    %153 = memref.load %arg6[%c1_85] : memref<8xf32, #tpu.memory_space<smem>>
    %154 = vector.broadcast %153 : f32 to vector<16x16xf32>
    %155 = arith.addf %152, %154 : vector<16x16xf32>
    %c1_86 = arith.constant 1 : index
    %c0_87 = arith.constant 0 : index
    %156 = memref.load %arg7[%c1_86, %c0_87] : memref<8x4xf32, #tpu.memory_space<smem>>
    %157 = vector.broadcast %156 : f32 to vector<16x16xf32>
    %158 = arith.mulf %155, %157 : vector<16x16xf32>
    %159 = arith.addf %82, %158 : vector<16x16xf32>
    %c1_88 = arith.constant 1 : index
    %c1_89 = arith.constant 1 : index
    %160 = memref.load %arg7[%c1_88, %c1_89] : memref<8x4xf32, #tpu.memory_space<smem>>
    %161 = vector.broadcast %160 : f32 to vector<16x16xf32>
    %162 = arith.mulf %155, %161 : vector<16x16xf32>
    %163 = arith.addf %85, %162 : vector<16x16xf32>
    %c1_90 = arith.constant 1 : index
    %c2_91 = arith.constant 2 : index
    %164 = memref.load %arg7[%c1_90, %c2_91] : memref<8x4xf32, #tpu.memory_space<smem>>
    %165 = vector.broadcast %164 : f32 to vector<16x16xf32>
    %166 = arith.mulf %155, %165 : vector<16x16xf32>
    %167 = arith.addf %88, %166 : vector<16x16xf32>
    %c1_92 = arith.constant 1 : index
    %c3_93 = arith.constant 3 : index
    %168 = memref.load %arg7[%c1_92, %c3_93] : memref<8x4xf32, #tpu.memory_space<smem>>
    %169 = vector.broadcast %168 : f32 to vector<16x16xf32>
    %170 = arith.mulf %155, %169 : vector<16x16xf32>
    %171 = arith.addf %91, %170 : vector<16x16xf32>
    %c0_94 = arith.constant 0 : index
    %c2_95 = arith.constant 2 : index
    %c0_96 = arith.constant 0 : index
    %c0_97 = arith.constant 0 : index
    %172 = vector.load %arg2[%c0_94, %c2_95, %c0_96, %c0_97] : memref<1x4x16x16xf32, #tpu.memory_space<vmem>>, vector<1x1x16x16xf32>
    %173 = vector.shape_cast %172 : vector<1x1x16x16xf32> to vector<16x16xf32>
    %c1_i32_98 = arith.constant 1 : i32
    %174 = tpu.dynamic_rotate %173 by %c1_i32_98 dim 0 : vector<16x16xf32>, i32 -> vector<16x16xf32>
    %cst_99 = arith.constant 0.000000e+00 : f32
    %175 = vector.broadcast %cst_99 : f32 to vector<16x16xf32>
    %176 = arith.select %9, %174, %175 : vector<16x16xi1>, vector<16x16xf32>
    %c15_i32_100 = arith.constant 15 : i32
    %177 = tpu.dynamic_rotate %173 by %c15_i32_100 dim 0 : vector<16x16xf32>, i32 -> vector<16x16xf32>
    %cst_101 = arith.constant 0.000000e+00 : f32
    %178 = vector.broadcast %cst_101 : f32 to vector<16x16xf32>
    %179 = arith.select %11, %177, %178 : vector<16x16xi1>, vector<16x16xf32>
    %c1_i32_102 = arith.constant 1 : i32
    %180 = tpu.dynamic_rotate %176 by %c1_i32_102 dim 1 : vector<16x16xf32>, i32 -> vector<16x16xf32>
    %cst_103 = arith.constant 0.000000e+00 : f32
    %181 = vector.broadcast %cst_103 : f32 to vector<16x16xf32>
    %182 = arith.select %13, %180, %181 : vector<16x16xi1>, vector<16x16xf32>
    %c15_i32_104 = arith.constant 15 : i32
    %183 = tpu.dynamic_rotate %176 by %c15_i32_104 dim 1 : vector<16x16xf32>, i32 -> vector<16x16xf32>
    %cst_105 = arith.constant 0.000000e+00 : f32
    %184 = vector.broadcast %cst_105 : f32 to vector<16x16xf32>
    %185 = arith.select %15, %183, %184 : vector<16x16xi1>, vector<16x16xf32>
    %c0_106 = arith.constant 0 : index
    %c2_107 = arith.constant 2 : index
    %186 = memref.load %arg5[%c0_106, %c2_107] : memref<9x8xf32, #tpu.memory_space<smem>>
    %187 = vector.broadcast %186 : f32 to vector<16x16xf32>
    %188 = arith.mulf %182, %187 : vector<16x16xf32>
    %c1_108 = arith.constant 1 : index
    %c2_109 = arith.constant 2 : index
    %189 = memref.load %arg5[%c1_108, %c2_109] : memref<9x8xf32, #tpu.memory_space<smem>>
    %190 = vector.broadcast %189 : f32 to vector<16x16xf32>
    %191 = arith.mulf %176, %190 : vector<16x16xf32>
    %192 = arith.addf %188, %191 : vector<16x16xf32>
    %c2_110 = arith.constant 2 : index
    %c2_111 = arith.constant 2 : index
    %193 = memref.load %arg5[%c2_110, %c2_111] : memref<9x8xf32, #tpu.memory_space<smem>>
    %194 = vector.broadcast %193 : f32 to vector<16x16xf32>
    %195 = arith.mulf %185, %194 : vector<16x16xf32>
    %196 = arith.addf %192, %195 : vector<16x16xf32>
    %c1_i32_112 = arith.constant 1 : i32
    %197 = tpu.dynamic_rotate %173 by %c1_i32_112 dim 1 : vector<16x16xf32>, i32 -> vector<16x16xf32>
    %cst_113 = arith.constant 0.000000e+00 : f32
    %198 = vector.broadcast %cst_113 : f32 to vector<16x16xf32>
    %199 = arith.select %13, %197, %198 : vector<16x16xi1>, vector<16x16xf32>
    %c15_i32_114 = arith.constant 15 : i32
    %200 = tpu.dynamic_rotate %173 by %c15_i32_114 dim 1 : vector<16x16xf32>, i32 -> vector<16x16xf32>
    %cst_115 = arith.constant 0.000000e+00 : f32
    %201 = vector.broadcast %cst_115 : f32 to vector<16x16xf32>
    %202 = arith.select %15, %200, %201 : vector<16x16xi1>, vector<16x16xf32>
    %c3_116 = arith.constant 3 : index
    %c2_117 = arith.constant 2 : index
    %203 = memref.load %arg5[%c3_116, %c2_117] : memref<9x8xf32, #tpu.memory_space<smem>>
    %204 = vector.broadcast %203 : f32 to vector<16x16xf32>
    %205 = arith.mulf %199, %204 : vector<16x16xf32>
    %c4_118 = arith.constant 4 : index
    %c2_119 = arith.constant 2 : index
    %206 = memref.load %arg5[%c4_118, %c2_119] : memref<9x8xf32, #tpu.memory_space<smem>>
    %207 = vector.broadcast %206 : f32 to vector<16x16xf32>
    %208 = arith.mulf %173, %207 : vector<16x16xf32>
    %209 = arith.addf %205, %208 : vector<16x16xf32>
    %c5_120 = arith.constant 5 : index
    %c2_121 = arith.constant 2 : index
    %210 = memref.load %arg5[%c5_120, %c2_121] : memref<9x8xf32, #tpu.memory_space<smem>>
    %211 = vector.broadcast %210 : f32 to vector<16x16xf32>
    %212 = arith.mulf %202, %211 : vector<16x16xf32>
    %213 = arith.addf %209, %212 : vector<16x16xf32>
    %214 = arith.addf %196, %213 : vector<16x16xf32>
    %c1_i32_122 = arith.constant 1 : i32
    %215 = tpu.dynamic_rotate %179 by %c1_i32_122 dim 1 : vector<16x16xf32>, i32 -> vector<16x16xf32>
    %cst_123 = arith.constant 0.000000e+00 : f32
    %216 = vector.broadcast %cst_123 : f32 to vector<16x16xf32>
    %217 = arith.select %13, %215, %216 : vector<16x16xi1>, vector<16x16xf32>
    %c15_i32_124 = arith.constant 15 : i32
    %218 = tpu.dynamic_rotate %179 by %c15_i32_124 dim 1 : vector<16x16xf32>, i32 -> vector<16x16xf32>
    %cst_125 = arith.constant 0.000000e+00 : f32
    %219 = vector.broadcast %cst_125 : f32 to vector<16x16xf32>
    %220 = arith.select %15, %218, %219 : vector<16x16xi1>, vector<16x16xf32>
    %c6_126 = arith.constant 6 : index
    %c2_127 = arith.constant 2 : index
    %221 = memref.load %arg5[%c6_126, %c2_127] : memref<9x8xf32, #tpu.memory_space<smem>>
    %222 = vector.broadcast %221 : f32 to vector<16x16xf32>
    %223 = arith.mulf %217, %222 : vector<16x16xf32>
    %c7_128 = arith.constant 7 : index
    %c2_129 = arith.constant 2 : index
    %224 = memref.load %arg5[%c7_128, %c2_129] : memref<9x8xf32, #tpu.memory_space<smem>>
    %225 = vector.broadcast %224 : f32 to vector<16x16xf32>
    %226 = arith.mulf %179, %225 : vector<16x16xf32>
    %227 = arith.addf %223, %226 : vector<16x16xf32>
    %c8_130 = arith.constant 8 : index
    %c2_131 = arith.constant 2 : index
    %228 = memref.load %arg5[%c8_130, %c2_131] : memref<9x8xf32, #tpu.memory_space<smem>>
    %229 = vector.broadcast %228 : f32 to vector<16x16xf32>
    %230 = arith.mulf %220, %229 : vector<16x16xf32>
    %231 = arith.addf %227, %230 : vector<16x16xf32>
    %232 = arith.addf %214, %231 : vector<16x16xf32>
    %c2_132 = arith.constant 2 : index
    %233 = memref.load %arg6[%c2_132] : memref<8xf32, #tpu.memory_space<smem>>
    %234 = vector.broadcast %233 : f32 to vector<16x16xf32>
    %235 = arith.addf %232, %234 : vector<16x16xf32>
    %c2_133 = arith.constant 2 : index
    %c0_134 = arith.constant 0 : index
    %236 = memref.load %arg7[%c2_133, %c0_134] : memref<8x4xf32, #tpu.memory_space<smem>>
    %237 = vector.broadcast %236 : f32 to vector<16x16xf32>
    %238 = arith.mulf %235, %237 : vector<16x16xf32>
    %239 = arith.addf %159, %238 : vector<16x16xf32>
    %c2_135 = arith.constant 2 : index
    %c1_136 = arith.constant 1 : index
    %240 = memref.load %arg7[%c2_135, %c1_136] : memref<8x4xf32, #tpu.memory_space<smem>>
    %241 = vector.broadcast %240 : f32 to vector<16x16xf32>
    %242 = arith.mulf %235, %241 : vector<16x16xf32>
    %243 = arith.addf %163, %242 : vector<16x16xf32>
    %c2_137 = arith.constant 2 : index
    %c2_138 = arith.constant 2 : index
    %244 = memref.load %arg7[%c2_137, %c2_138] : memref<8x4xf32, #tpu.memory_space<smem>>
    %245 = vector.broadcast %244 : f32 to vector<16x16xf32>
    %246 = arith.mulf %235, %245 : vector<16x16xf32>
    %247 = arith.addf %167, %246 : vector<16x16xf32>
    %c2_139 = arith.constant 2 : index
    %c3_140 = arith.constant 3 : index
    %248 = memref.load %arg7[%c2_139, %c3_140] : memref<8x4xf32, #tpu.memory_space<smem>>
    %249 = vector.broadcast %248 : f32 to vector<16x16xf32>
    %250 = arith.mulf %235, %249 : vector<16x16xf32>
    %251 = arith.addf %171, %250 : vector<16x16xf32>
    %c0_141 = arith.constant 0 : index
    %c3_142 = arith.constant 3 : index
    %c0_143 = arith.constant 0 : index
    %c0_144 = arith.constant 0 : index
    %252 = vector.load %arg2[%c0_141, %c3_142, %c0_143, %c0_144] : memref<1x4x16x16xf32, #tpu.memory_space<vmem>>, vector<1x1x16x16xf32>
    %253 = vector.shape_cast %252 : vector<1x1x16x16xf32> to vector<16x16xf32>
    %c1_i32_145 = arith.constant 1 : i32
    %254 = tpu.dynamic_rotate %253 by %c1_i32_145 dim 0 : vector<16x16xf32>, i32 -> vector<16x16xf32>
    %cst_146 = arith.constant 0.000000e+00 : f32
    %255 = vector.broadcast %cst_146 : f32 to vector<16x16xf32>
    %256 = arith.select %9, %254, %255 : vector<16x16xi1>, vector<16x16xf32>
    %c15_i32_147 = arith.constant 15 : i32
    %257 = tpu.dynamic_rotate %253 by %c15_i32_147 dim 0 : vector<16x16xf32>, i32 -> vector<16x16xf32>
    %cst_148 = arith.constant 0.000000e+00 : f32
    %258 = vector.broadcast %cst_148 : f32 to vector<16x16xf32>
    %259 = arith.select %11, %257, %258 : vector<16x16xi1>, vector<16x16xf32>
    %c1_i32_149 = arith.constant 1 : i32
    %260 = tpu.dynamic_rotate %256 by %c1_i32_149 dim 1 : vector<16x16xf32>, i32 -> vector<16x16xf32>
    %cst_150 = arith.constant 0.000000e+00 : f32
    %261 = vector.broadcast %cst_150 : f32 to vector<16x16xf32>
    %262 = arith.select %13, %260, %261 : vector<16x16xi1>, vector<16x16xf32>
    %c15_i32_151 = arith.constant 15 : i32
    %263 = tpu.dynamic_rotate %256 by %c15_i32_151 dim 1 : vector<16x16xf32>, i32 -> vector<16x16xf32>
    %cst_152 = arith.constant 0.000000e+00 : f32
    %264 = vector.broadcast %cst_152 : f32 to vector<16x16xf32>
    %265 = arith.select %15, %263, %264 : vector<16x16xi1>, vector<16x16xf32>
    %c0_153 = arith.constant 0 : index
    %c3_154 = arith.constant 3 : index
    %266 = memref.load %arg5[%c0_153, %c3_154] : memref<9x8xf32, #tpu.memory_space<smem>>
    %267 = vector.broadcast %266 : f32 to vector<16x16xf32>
    %268 = arith.mulf %262, %267 : vector<16x16xf32>
    %c1_155 = arith.constant 1 : index
    %c3_156 = arith.constant 3 : index
    %269 = memref.load %arg5[%c1_155, %c3_156] : memref<9x8xf32, #tpu.memory_space<smem>>
    %270 = vector.broadcast %269 : f32 to vector<16x16xf32>
    %271 = arith.mulf %256, %270 : vector<16x16xf32>
    %272 = arith.addf %268, %271 : vector<16x16xf32>
    %c2_157 = arith.constant 2 : index
    %c3_158 = arith.constant 3 : index
    %273 = memref.load %arg5[%c2_157, %c3_158] : memref<9x8xf32, #tpu.memory_space<smem>>
    %274 = vector.broadcast %273 : f32 to vector<16x16xf32>
    %275 = arith.mulf %265, %274 : vector<16x16xf32>
    %276 = arith.addf %272, %275 : vector<16x16xf32>
    %c1_i32_159 = arith.constant 1 : i32
    %277 = tpu.dynamic_rotate %253 by %c1_i32_159 dim 1 : vector<16x16xf32>, i32 -> vector<16x16xf32>
    %cst_160 = arith.constant 0.000000e+00 : f32
    %278 = vector.broadcast %cst_160 : f32 to vector<16x16xf32>
    %279 = arith.select %13, %277, %278 : vector<16x16xi1>, vector<16x16xf32>
    %c15_i32_161 = arith.constant 15 : i32
    %280 = tpu.dynamic_rotate %253 by %c15_i32_161 dim 1 : vector<16x16xf32>, i32 -> vector<16x16xf32>
    %cst_162 = arith.constant 0.000000e+00 : f32
    %281 = vector.broadcast %cst_162 : f32 to vector<16x16xf32>
    %282 = arith.select %15, %280, %281 : vector<16x16xi1>, vector<16x16xf32>
    %c3_163 = arith.constant 3 : index
    %c3_164 = arith.constant 3 : index
    %283 = memref.load %arg5[%c3_163, %c3_164] : memref<9x8xf32, #tpu.memory_space<smem>>
    %284 = vector.broadcast %283 : f32 to vector<16x16xf32>
    %285 = arith.mulf %279, %284 : vector<16x16xf32>
    %c4_165 = arith.constant 4 : index
    %c3_166 = arith.constant 3 : index
    %286 = memref.load %arg5[%c4_165, %c3_166] : memref<9x8xf32, #tpu.memory_space<smem>>
    %287 = vector.broadcast %286 : f32 to vector<16x16xf32>
    %288 = arith.mulf %253, %287 : vector<16x16xf32>
    %289 = arith.addf %285, %288 : vector<16x16xf32>
    %c5_167 = arith.constant 5 : index
    %c3_168 = arith.constant 3 : index
    %290 = memref.load %arg5[%c5_167, %c3_168] : memref<9x8xf32, #tpu.memory_space<smem>>
    %291 = vector.broadcast %290 : f32 to vector<16x16xf32>
    %292 = arith.mulf %282, %291 : vector<16x16xf32>
    %293 = arith.addf %289, %292 : vector<16x16xf32>
    %294 = arith.addf %276, %293 : vector<16x16xf32>
    %c1_i32_169 = arith.constant 1 : i32
    %295 = tpu.dynamic_rotate %259 by %c1_i32_169 dim 1 : vector<16x16xf32>, i32 -> vector<16x16xf32>
    %cst_170 = arith.constant 0.000000e+00 : f32
    %296 = vector.broadcast %cst_170 : f32 to vector<16x16xf32>
    %297 = arith.select %13, %295, %296 : vector<16x16xi1>, vector<16x16xf32>
    %c15_i32_171 = arith.constant 15 : i32
    %298 = tpu.dynamic_rotate %259 by %c15_i32_171 dim 1 : vector<16x16xf32>, i32 -> vector<16x16xf32>
    %cst_172 = arith.constant 0.000000e+00 : f32
    %299 = vector.broadcast %cst_172 : f32 to vector<16x16xf32>
    %300 = arith.select %15, %298, %299 : vector<16x16xi1>, vector<16x16xf32>
    %c6_173 = arith.constant 6 : index
    %c3_174 = arith.constant 3 : index
    %301 = memref.load %arg5[%c6_173, %c3_174] : memref<9x8xf32, #tpu.memory_space<smem>>
    %302 = vector.broadcast %301 : f32 to vector<16x16xf32>
    %303 = arith.mulf %297, %302 : vector<16x16xf32>
    %c7_175 = arith.constant 7 : index
    %c3_176 = arith.constant 3 : index
    %304 = memref.load %arg5[%c7_175, %c3_176] : memref<9x8xf32, #tpu.memory_space<smem>>
    %305 = vector.broadcast %304 : f32 to vector<16x16xf32>
    %306 = arith.mulf %259, %305 : vector<16x16xf32>
    %307 = arith.addf %303, %306 : vector<16x16xf32>
    %c8_177 = arith.constant 8 : index
    %c3_178 = arith.constant 3 : index
    %308 = memref.load %arg5[%c8_177, %c3_178] : memref<9x8xf32, #tpu.memory_space<smem>>
    %309 = vector.broadcast %308 : f32 to vector<16x16xf32>
    %310 = arith.mulf %300, %309 : vector<16x16xf32>
    %311 = arith.addf %307, %310 : vector<16x16xf32>
    %312 = arith.addf %294, %311 : vector<16x16xf32>
    %c3_179 = arith.constant 3 : index
    %313 = memref.load %arg6[%c3_179] : memref<8xf32, #tpu.memory_space<smem>>
    %314 = vector.broadcast %313 : f32 to vector<16x16xf32>
    %315 = arith.addf %312, %314 : vector<16x16xf32>
    %c3_180 = arith.constant 3 : index
    %c0_181 = arith.constant 0 : index
    %316 = memref.load %arg7[%c3_180, %c0_181] : memref<8x4xf32, #tpu.memory_space<smem>>
    %317 = vector.broadcast %316 : f32 to vector<16x16xf32>
    %318 = arith.mulf %315, %317 : vector<16x16xf32>
    %319 = arith.addf %239, %318 : vector<16x16xf32>
    %c3_182 = arith.constant 3 : index
    %c1_183 = arith.constant 1 : index
    %320 = memref.load %arg7[%c3_182, %c1_183] : memref<8x4xf32, #tpu.memory_space<smem>>
    %321 = vector.broadcast %320 : f32 to vector<16x16xf32>
    %322 = arith.mulf %315, %321 : vector<16x16xf32>
    %323 = arith.addf %243, %322 : vector<16x16xf32>
    %c3_184 = arith.constant 3 : index
    %c2_185 = arith.constant 2 : index
    %324 = memref.load %arg7[%c3_184, %c2_185] : memref<8x4xf32, #tpu.memory_space<smem>>
    %325 = vector.broadcast %324 : f32 to vector<16x16xf32>
    %326 = arith.mulf %315, %325 : vector<16x16xf32>
    %327 = arith.addf %247, %326 : vector<16x16xf32>
    %c3_186 = arith.constant 3 : index
    %c3_187 = arith.constant 3 : index
    %328 = memref.load %arg7[%c3_186, %c3_187] : memref<8x4xf32, #tpu.memory_space<smem>>
    %329 = vector.broadcast %328 : f32 to vector<16x16xf32>
    %330 = arith.mulf %315, %329 : vector<16x16xf32>
    %331 = arith.addf %251, %330 : vector<16x16xf32>
    %332 = vector.extract_strided_slice %5 {offsets = [0, 0], sizes = [16, 16], strides = [1, 1]} : vector<64x16xf32> to vector<16x16xf32>
    %c1_i32_188 = arith.constant 1 : i32
    %333 = tpu.dynamic_rotate %332 by %c1_i32_188 dim 0 : vector<16x16xf32>, i32 -> vector<16x16xf32>
    %cst_189 = arith.constant 0.000000e+00 : f32
    %334 = vector.broadcast %cst_189 : f32 to vector<16x16xf32>
    %335 = arith.select %9, %333, %334 : vector<16x16xi1>, vector<16x16xf32>
    %c15_i32_190 = arith.constant 15 : i32
    %336 = tpu.dynamic_rotate %332 by %c15_i32_190 dim 0 : vector<16x16xf32>, i32 -> vector<16x16xf32>
    %cst_191 = arith.constant 0.000000e+00 : f32
    %337 = vector.broadcast %cst_191 : f32 to vector<16x16xf32>
    %338 = arith.select %11, %336, %337 : vector<16x16xi1>, vector<16x16xf32>
    %c1_i32_192 = arith.constant 1 : i32
    %339 = tpu.dynamic_rotate %335 by %c1_i32_192 dim 1 : vector<16x16xf32>, i32 -> vector<16x16xf32>
    %cst_193 = arith.constant 0.000000e+00 : f32
    %340 = vector.broadcast %cst_193 : f32 to vector<16x16xf32>
    %341 = arith.select %13, %339, %340 : vector<16x16xi1>, vector<16x16xf32>
    %c15_i32_194 = arith.constant 15 : i32
    %342 = tpu.dynamic_rotate %335 by %c15_i32_194 dim 1 : vector<16x16xf32>, i32 -> vector<16x16xf32>
    %cst_195 = arith.constant 0.000000e+00 : f32
    %343 = vector.broadcast %cst_195 : f32 to vector<16x16xf32>
    %344 = arith.select %15, %342, %343 : vector<16x16xi1>, vector<16x16xf32>
    %c0_196 = arith.constant 0 : index
    %c4_197 = arith.constant 4 : index
    %345 = memref.load %arg5[%c0_196, %c4_197] : memref<9x8xf32, #tpu.memory_space<smem>>
    %346 = vector.broadcast %345 : f32 to vector<16x16xf32>
    %347 = arith.mulf %341, %346 : vector<16x16xf32>
    %c1_198 = arith.constant 1 : index
    %c4_199 = arith.constant 4 : index
    %348 = memref.load %arg5[%c1_198, %c4_199] : memref<9x8xf32, #tpu.memory_space<smem>>
    %349 = vector.broadcast %348 : f32 to vector<16x16xf32>
    %350 = arith.mulf %335, %349 : vector<16x16xf32>
    %351 = arith.addf %347, %350 : vector<16x16xf32>
    %c2_200 = arith.constant 2 : index
    %c4_201 = arith.constant 4 : index
    %352 = memref.load %arg5[%c2_200, %c4_201] : memref<9x8xf32, #tpu.memory_space<smem>>
    %353 = vector.broadcast %352 : f32 to vector<16x16xf32>
    %354 = arith.mulf %344, %353 : vector<16x16xf32>
    %355 = arith.addf %351, %354 : vector<16x16xf32>
    %c1_i32_202 = arith.constant 1 : i32
    %356 = tpu.dynamic_rotate %332 by %c1_i32_202 dim 1 : vector<16x16xf32>, i32 -> vector<16x16xf32>
    %cst_203 = arith.constant 0.000000e+00 : f32
    %357 = vector.broadcast %cst_203 : f32 to vector<16x16xf32>
    %358 = arith.select %13, %356, %357 : vector<16x16xi1>, vector<16x16xf32>
    %c15_i32_204 = arith.constant 15 : i32
    %359 = tpu.dynamic_rotate %332 by %c15_i32_204 dim 1 : vector<16x16xf32>, i32 -> vector<16x16xf32>
    %cst_205 = arith.constant 0.000000e+00 : f32
    %360 = vector.broadcast %cst_205 : f32 to vector<16x16xf32>
    %361 = arith.select %15, %359, %360 : vector<16x16xi1>, vector<16x16xf32>
    %c3_206 = arith.constant 3 : index
    %c4_207 = arith.constant 4 : index
    %362 = memref.load %arg5[%c3_206, %c4_207] : memref<9x8xf32, #tpu.memory_space<smem>>
    %363 = vector.broadcast %362 : f32 to vector<16x16xf32>
    %364 = arith.mulf %358, %363 : vector<16x16xf32>
    %c4_208 = arith.constant 4 : index
    %c4_209 = arith.constant 4 : index
    %365 = memref.load %arg5[%c4_208, %c4_209] : memref<9x8xf32, #tpu.memory_space<smem>>
    %366 = vector.broadcast %365 : f32 to vector<16x16xf32>
    %367 = arith.mulf %332, %366 : vector<16x16xf32>
    %368 = arith.addf %364, %367 : vector<16x16xf32>
    %c5_210 = arith.constant 5 : index
    %c4_211 = arith.constant 4 : index
    %369 = memref.load %arg5[%c5_210, %c4_211] : memref<9x8xf32, #tpu.memory_space<smem>>
    %370 = vector.broadcast %369 : f32 to vector<16x16xf32>
    %371 = arith.mulf %361, %370 : vector<16x16xf32>
    %372 = arith.addf %368, %371 : vector<16x16xf32>
    %373 = arith.addf %355, %372 : vector<16x16xf32>
    %c1_i32_212 = arith.constant 1 : i32
    %374 = tpu.dynamic_rotate %338 by %c1_i32_212 dim 1 : vector<16x16xf32>, i32 -> vector<16x16xf32>
    %cst_213 = arith.constant 0.000000e+00 : f32
    %375 = vector.broadcast %cst_213 : f32 to vector<16x16xf32>
    %376 = arith.select %13, %374, %375 : vector<16x16xi1>, vector<16x16xf32>
    %c15_i32_214 = arith.constant 15 : i32
    %377 = tpu.dynamic_rotate %338 by %c15_i32_214 dim 1 : vector<16x16xf32>, i32 -> vector<16x16xf32>
    %cst_215 = arith.constant 0.000000e+00 : f32
    %378 = vector.broadcast %cst_215 : f32 to vector<16x16xf32>
    %379 = arith.select %15, %377, %378 : vector<16x16xi1>, vector<16x16xf32>
    %c6_216 = arith.constant 6 : index
    %c4_217 = arith.constant 4 : index
    %380 = memref.load %arg5[%c6_216, %c4_217] : memref<9x8xf32, #tpu.memory_space<smem>>
    %381 = vector.broadcast %380 : f32 to vector<16x16xf32>
    %382 = arith.mulf %376, %381 : vector<16x16xf32>
    %c7_218 = arith.constant 7 : index
    %c4_219 = arith.constant 4 : index
    %383 = memref.load %arg5[%c7_218, %c4_219] : memref<9x8xf32, #tpu.memory_space<smem>>
    %384 = vector.broadcast %383 : f32 to vector<16x16xf32>
    %385 = arith.mulf %338, %384 : vector<16x16xf32>
    %386 = arith.addf %382, %385 : vector<16x16xf32>
    %c8_220 = arith.constant 8 : index
    %c4_221 = arith.constant 4 : index
    %387 = memref.load %arg5[%c8_220, %c4_221] : memref<9x8xf32, #tpu.memory_space<smem>>
    %388 = vector.broadcast %387 : f32 to vector<16x16xf32>
    %389 = arith.mulf %379, %388 : vector<16x16xf32>
    %390 = arith.addf %386, %389 : vector<16x16xf32>
    %391 = arith.addf %373, %390 : vector<16x16xf32>
    %c4_222 = arith.constant 4 : index
    %392 = memref.load %arg6[%c4_222] : memref<8xf32, #tpu.memory_space<smem>>
    %393 = vector.broadcast %392 : f32 to vector<16x16xf32>
    %394 = arith.addf %391, %393 : vector<16x16xf32>
    %c4_223 = arith.constant 4 : index
    %c0_224 = arith.constant 0 : index
    %395 = memref.load %arg7[%c4_223, %c0_224] : memref<8x4xf32, #tpu.memory_space<smem>>
    %396 = vector.broadcast %395 : f32 to vector<16x16xf32>
    %397 = arith.mulf %394, %396 : vector<16x16xf32>
    %398 = arith.addf %319, %397 : vector<16x16xf32>
    %c4_225 = arith.constant 4 : index
    %c1_226 = arith.constant 1 : index
    %399 = memref.load %arg7[%c4_225, %c1_226] : memref<8x4xf32, #tpu.memory_space<smem>>
    %400 = vector.broadcast %399 : f32 to vector<16x16xf32>
    %401 = arith.mulf %394, %400 : vector<16x16xf32>
    %402 = arith.addf %323, %401 : vector<16x16xf32>
    %c4_227 = arith.constant 4 : index
    %c2_228 = arith.constant 2 : index
    %403 = memref.load %arg7[%c4_227, %c2_228] : memref<8x4xf32, #tpu.memory_space<smem>>
    %404 = vector.broadcast %403 : f32 to vector<16x16xf32>
    %405 = arith.mulf %394, %404 : vector<16x16xf32>
    %406 = arith.addf %327, %405 : vector<16x16xf32>
    %c4_229 = arith.constant 4 : index
    %c3_230 = arith.constant 3 : index
    %407 = memref.load %arg7[%c4_229, %c3_230] : memref<8x4xf32, #tpu.memory_space<smem>>
    %408 = vector.broadcast %407 : f32 to vector<16x16xf32>
    %409 = arith.mulf %394, %408 : vector<16x16xf32>
    %410 = arith.addf %331, %409 : vector<16x16xf32>
    %411 = vector.extract_strided_slice %5 {offsets = [16, 0], sizes = [16, 16], strides = [1, 1]} : vector<64x16xf32> to vector<16x16xf32>
    %c1_i32_231 = arith.constant 1 : i32
    %412 = tpu.dynamic_rotate %411 by %c1_i32_231 dim 0 : vector<16x16xf32>, i32 -> vector<16x16xf32>
    %cst_232 = arith.constant 0.000000e+00 : f32
    %413 = vector.broadcast %cst_232 : f32 to vector<16x16xf32>
    %414 = arith.select %9, %412, %413 : vector<16x16xi1>, vector<16x16xf32>
    %c15_i32_233 = arith.constant 15 : i32
    %415 = tpu.dynamic_rotate %411 by %c15_i32_233 dim 0 : vector<16x16xf32>, i32 -> vector<16x16xf32>
    %cst_234 = arith.constant 0.000000e+00 : f32
    %416 = vector.broadcast %cst_234 : f32 to vector<16x16xf32>
    %417 = arith.select %11, %415, %416 : vector<16x16xi1>, vector<16x16xf32>
    %c1_i32_235 = arith.constant 1 : i32
    %418 = tpu.dynamic_rotate %414 by %c1_i32_235 dim 1 : vector<16x16xf32>, i32 -> vector<16x16xf32>
    %cst_236 = arith.constant 0.000000e+00 : f32
    %419 = vector.broadcast %cst_236 : f32 to vector<16x16xf32>
    %420 = arith.select %13, %418, %419 : vector<16x16xi1>, vector<16x16xf32>
    %c15_i32_237 = arith.constant 15 : i32
    %421 = tpu.dynamic_rotate %414 by %c15_i32_237 dim 1 : vector<16x16xf32>, i32 -> vector<16x16xf32>
    %cst_238 = arith.constant 0.000000e+00 : f32
    %422 = vector.broadcast %cst_238 : f32 to vector<16x16xf32>
    %423 = arith.select %15, %421, %422 : vector<16x16xi1>, vector<16x16xf32>
    %c0_239 = arith.constant 0 : index
    %c5_240 = arith.constant 5 : index
    %424 = memref.load %arg5[%c0_239, %c5_240] : memref<9x8xf32, #tpu.memory_space<smem>>
    %425 = vector.broadcast %424 : f32 to vector<16x16xf32>
    %426 = arith.mulf %420, %425 : vector<16x16xf32>
    %c1_241 = arith.constant 1 : index
    %c5_242 = arith.constant 5 : index
    %427 = memref.load %arg5[%c1_241, %c5_242] : memref<9x8xf32, #tpu.memory_space<smem>>
    %428 = vector.broadcast %427 : f32 to vector<16x16xf32>
    %429 = arith.mulf %414, %428 : vector<16x16xf32>
    %430 = arith.addf %426, %429 : vector<16x16xf32>
    %c2_243 = arith.constant 2 : index
    %c5_244 = arith.constant 5 : index
    %431 = memref.load %arg5[%c2_243, %c5_244] : memref<9x8xf32, #tpu.memory_space<smem>>
    %432 = vector.broadcast %431 : f32 to vector<16x16xf32>
    %433 = arith.mulf %423, %432 : vector<16x16xf32>
    %434 = arith.addf %430, %433 : vector<16x16xf32>
    %c1_i32_245 = arith.constant 1 : i32
    %435 = tpu.dynamic_rotate %411 by %c1_i32_245 dim 1 : vector<16x16xf32>, i32 -> vector<16x16xf32>
    %cst_246 = arith.constant 0.000000e+00 : f32
    %436 = vector.broadcast %cst_246 : f32 to vector<16x16xf32>
    %437 = arith.select %13, %435, %436 : vector<16x16xi1>, vector<16x16xf32>
    %c15_i32_247 = arith.constant 15 : i32
    %438 = tpu.dynamic_rotate %411 by %c15_i32_247 dim 1 : vector<16x16xf32>, i32 -> vector<16x16xf32>
    %cst_248 = arith.constant 0.000000e+00 : f32
    %439 = vector.broadcast %cst_248 : f32 to vector<16x16xf32>
    %440 = arith.select %15, %438, %439 : vector<16x16xi1>, vector<16x16xf32>
    %c3_249 = arith.constant 3 : index
    %c5_250 = arith.constant 5 : index
    %441 = memref.load %arg5[%c3_249, %c5_250] : memref<9x8xf32, #tpu.memory_space<smem>>
    %442 = vector.broadcast %441 : f32 to vector<16x16xf32>
    %443 = arith.mulf %437, %442 : vector<16x16xf32>
    %c4_251 = arith.constant 4 : index
    %c5_252 = arith.constant 5 : index
    %444 = memref.load %arg5[%c4_251, %c5_252] : memref<9x8xf32, #tpu.memory_space<smem>>
    %445 = vector.broadcast %444 : f32 to vector<16x16xf32>
    %446 = arith.mulf %411, %445 : vector<16x16xf32>
    %447 = arith.addf %443, %446 : vector<16x16xf32>
    %c5_253 = arith.constant 5 : index
    %c5_254 = arith.constant 5 : index
    %448 = memref.load %arg5[%c5_253, %c5_254] : memref<9x8xf32, #tpu.memory_space<smem>>
    %449 = vector.broadcast %448 : f32 to vector<16x16xf32>
    %450 = arith.mulf %440, %449 : vector<16x16xf32>
    %451 = arith.addf %447, %450 : vector<16x16xf32>
    %452 = arith.addf %434, %451 : vector<16x16xf32>
    %c1_i32_255 = arith.constant 1 : i32
    %453 = tpu.dynamic_rotate %417 by %c1_i32_255 dim 1 : vector<16x16xf32>, i32 -> vector<16x16xf32>
    %cst_256 = arith.constant 0.000000e+00 : f32
    %454 = vector.broadcast %cst_256 : f32 to vector<16x16xf32>
    %455 = arith.select %13, %453, %454 : vector<16x16xi1>, vector<16x16xf32>
    %c15_i32_257 = arith.constant 15 : i32
    %456 = tpu.dynamic_rotate %417 by %c15_i32_257 dim 1 : vector<16x16xf32>, i32 -> vector<16x16xf32>
    %cst_258 = arith.constant 0.000000e+00 : f32
    %457 = vector.broadcast %cst_258 : f32 to vector<16x16xf32>
    %458 = arith.select %15, %456, %457 : vector<16x16xi1>, vector<16x16xf32>
    %c6_259 = arith.constant 6 : index
    %c5_260 = arith.constant 5 : index
    %459 = memref.load %arg5[%c6_259, %c5_260] : memref<9x8xf32, #tpu.memory_space<smem>>
    %460 = vector.broadcast %459 : f32 to vector<16x16xf32>
    %461 = arith.mulf %455, %460 : vector<16x16xf32>
    %c7_261 = arith.constant 7 : index
    %c5_262 = arith.constant 5 : index
    %462 = memref.load %arg5[%c7_261, %c5_262] : memref<9x8xf32, #tpu.memory_space<smem>>
    %463 = vector.broadcast %462 : f32 to vector<16x16xf32>
    %464 = arith.mulf %417, %463 : vector<16x16xf32>
    %465 = arith.addf %461, %464 : vector<16x16xf32>
    %c8_263 = arith.constant 8 : index
    %c5_264 = arith.constant 5 : index
    %466 = memref.load %arg5[%c8_263, %c5_264] : memref<9x8xf32, #tpu.memory_space<smem>>
    %467 = vector.broadcast %466 : f32 to vector<16x16xf32>
    %468 = arith.mulf %458, %467 : vector<16x16xf32>
    %469 = arith.addf %465, %468 : vector<16x16xf32>
    %470 = arith.addf %452, %469 : vector<16x16xf32>
    %c5_265 = arith.constant 5 : index
    %471 = memref.load %arg6[%c5_265] : memref<8xf32, #tpu.memory_space<smem>>
    %472 = vector.broadcast %471 : f32 to vector<16x16xf32>
    %473 = arith.addf %470, %472 : vector<16x16xf32>
    %c5_266 = arith.constant 5 : index
    %c0_267 = arith.constant 0 : index
    %474 = memref.load %arg7[%c5_266, %c0_267] : memref<8x4xf32, #tpu.memory_space<smem>>
    %475 = vector.broadcast %474 : f32 to vector<16x16xf32>
    %476 = arith.mulf %473, %475 : vector<16x16xf32>
    %477 = arith.addf %398, %476 : vector<16x16xf32>
    %c5_268 = arith.constant 5 : index
    %c1_269 = arith.constant 1 : index
    %478 = memref.load %arg7[%c5_268, %c1_269] : memref<8x4xf32, #tpu.memory_space<smem>>
    %479 = vector.broadcast %478 : f32 to vector<16x16xf32>
    %480 = arith.mulf %473, %479 : vector<16x16xf32>
    %481 = arith.addf %402, %480 : vector<16x16xf32>
    %c5_270 = arith.constant 5 : index
    %c2_271 = arith.constant 2 : index
    %482 = memref.load %arg7[%c5_270, %c2_271] : memref<8x4xf32, #tpu.memory_space<smem>>
    %483 = vector.broadcast %482 : f32 to vector<16x16xf32>
    %484 = arith.mulf %473, %483 : vector<16x16xf32>
    %485 = arith.addf %406, %484 : vector<16x16xf32>
    %c5_272 = arith.constant 5 : index
    %c3_273 = arith.constant 3 : index
    %486 = memref.load %arg7[%c5_272, %c3_273] : memref<8x4xf32, #tpu.memory_space<smem>>
    %487 = vector.broadcast %486 : f32 to vector<16x16xf32>
    %488 = arith.mulf %473, %487 : vector<16x16xf32>
    %489 = arith.addf %410, %488 : vector<16x16xf32>
    %490 = vector.extract_strided_slice %5 {offsets = [32, 0], sizes = [16, 16], strides = [1, 1]} : vector<64x16xf32> to vector<16x16xf32>
    %c1_i32_274 = arith.constant 1 : i32
    %491 = tpu.dynamic_rotate %490 by %c1_i32_274 dim 0 : vector<16x16xf32>, i32 -> vector<16x16xf32>
    %cst_275 = arith.constant 0.000000e+00 : f32
    %492 = vector.broadcast %cst_275 : f32 to vector<16x16xf32>
    %493 = arith.select %9, %491, %492 : vector<16x16xi1>, vector<16x16xf32>
    %c15_i32_276 = arith.constant 15 : i32
    %494 = tpu.dynamic_rotate %490 by %c15_i32_276 dim 0 : vector<16x16xf32>, i32 -> vector<16x16xf32>
    %cst_277 = arith.constant 0.000000e+00 : f32
    %495 = vector.broadcast %cst_277 : f32 to vector<16x16xf32>
    %496 = arith.select %11, %494, %495 : vector<16x16xi1>, vector<16x16xf32>
    %c1_i32_278 = arith.constant 1 : i32
    %497 = tpu.dynamic_rotate %493 by %c1_i32_278 dim 1 : vector<16x16xf32>, i32 -> vector<16x16xf32>
    %cst_279 = arith.constant 0.000000e+00 : f32
    %498 = vector.broadcast %cst_279 : f32 to vector<16x16xf32>
    %499 = arith.select %13, %497, %498 : vector<16x16xi1>, vector<16x16xf32>
    %c15_i32_280 = arith.constant 15 : i32
    %500 = tpu.dynamic_rotate %493 by %c15_i32_280 dim 1 : vector<16x16xf32>, i32 -> vector<16x16xf32>
    %cst_281 = arith.constant 0.000000e+00 : f32
    %501 = vector.broadcast %cst_281 : f32 to vector<16x16xf32>
    %502 = arith.select %15, %500, %501 : vector<16x16xi1>, vector<16x16xf32>
    %c0_282 = arith.constant 0 : index
    %c6_283 = arith.constant 6 : index
    %503 = memref.load %arg5[%c0_282, %c6_283] : memref<9x8xf32, #tpu.memory_space<smem>>
    %504 = vector.broadcast %503 : f32 to vector<16x16xf32>
    %505 = arith.mulf %499, %504 : vector<16x16xf32>
    %c1_284 = arith.constant 1 : index
    %c6_285 = arith.constant 6 : index
    %506 = memref.load %arg5[%c1_284, %c6_285] : memref<9x8xf32, #tpu.memory_space<smem>>
    %507 = vector.broadcast %506 : f32 to vector<16x16xf32>
    %508 = arith.mulf %493, %507 : vector<16x16xf32>
    %509 = arith.addf %505, %508 : vector<16x16xf32>
    %c2_286 = arith.constant 2 : index
    %c6_287 = arith.constant 6 : index
    %510 = memref.load %arg5[%c2_286, %c6_287] : memref<9x8xf32, #tpu.memory_space<smem>>
    %511 = vector.broadcast %510 : f32 to vector<16x16xf32>
    %512 = arith.mulf %502, %511 : vector<16x16xf32>
    %513 = arith.addf %509, %512 : vector<16x16xf32>
    %c1_i32_288 = arith.constant 1 : i32
    %514 = tpu.dynamic_rotate %490 by %c1_i32_288 dim 1 : vector<16x16xf32>, i32 -> vector<16x16xf32>
    %cst_289 = arith.constant 0.000000e+00 : f32
    %515 = vector.broadcast %cst_289 : f32 to vector<16x16xf32>
    %516 = arith.select %13, %514, %515 : vector<16x16xi1>, vector<16x16xf32>
    %c15_i32_290 = arith.constant 15 : i32
    %517 = tpu.dynamic_rotate %490 by %c15_i32_290 dim 1 : vector<16x16xf32>, i32 -> vector<16x16xf32>
    %cst_291 = arith.constant 0.000000e+00 : f32
    %518 = vector.broadcast %cst_291 : f32 to vector<16x16xf32>
    %519 = arith.select %15, %517, %518 : vector<16x16xi1>, vector<16x16xf32>
    %c3_292 = arith.constant 3 : index
    %c6_293 = arith.constant 6 : index
    %520 = memref.load %arg5[%c3_292, %c6_293] : memref<9x8xf32, #tpu.memory_space<smem>>
    %521 = vector.broadcast %520 : f32 to vector<16x16xf32>
    %522 = arith.mulf %516, %521 : vector<16x16xf32>
    %c4_294 = arith.constant 4 : index
    %c6_295 = arith.constant 6 : index
    %523 = memref.load %arg5[%c4_294, %c6_295] : memref<9x8xf32, #tpu.memory_space<smem>>
    %524 = vector.broadcast %523 : f32 to vector<16x16xf32>
    %525 = arith.mulf %490, %524 : vector<16x16xf32>
    %526 = arith.addf %522, %525 : vector<16x16xf32>
    %c5_296 = arith.constant 5 : index
    %c6_297 = arith.constant 6 : index
    %527 = memref.load %arg5[%c5_296, %c6_297] : memref<9x8xf32, #tpu.memory_space<smem>>
    %528 = vector.broadcast %527 : f32 to vector<16x16xf32>
    %529 = arith.mulf %519, %528 : vector<16x16xf32>
    %530 = arith.addf %526, %529 : vector<16x16xf32>
    %531 = arith.addf %513, %530 : vector<16x16xf32>
    %c1_i32_298 = arith.constant 1 : i32
    %532 = tpu.dynamic_rotate %496 by %c1_i32_298 dim 1 : vector<16x16xf32>, i32 -> vector<16x16xf32>
    %cst_299 = arith.constant 0.000000e+00 : f32
    %533 = vector.broadcast %cst_299 : f32 to vector<16x16xf32>
    %534 = arith.select %13, %532, %533 : vector<16x16xi1>, vector<16x16xf32>
    %c15_i32_300 = arith.constant 15 : i32
    %535 = tpu.dynamic_rotate %496 by %c15_i32_300 dim 1 : vector<16x16xf32>, i32 -> vector<16x16xf32>
    %cst_301 = arith.constant 0.000000e+00 : f32
    %536 = vector.broadcast %cst_301 : f32 to vector<16x16xf32>
    %537 = arith.select %15, %535, %536 : vector<16x16xi1>, vector<16x16xf32>
    %c6_302 = arith.constant 6 : index
    %c6_303 = arith.constant 6 : index
    %538 = memref.load %arg5[%c6_302, %c6_303] : memref<9x8xf32, #tpu.memory_space<smem>>
    %539 = vector.broadcast %538 : f32 to vector<16x16xf32>
    %540 = arith.mulf %534, %539 : vector<16x16xf32>
    %c7_304 = arith.constant 7 : index
    %c6_305 = arith.constant 6 : index
    %541 = memref.load %arg5[%c7_304, %c6_305] : memref<9x8xf32, #tpu.memory_space<smem>>
    %542 = vector.broadcast %541 : f32 to vector<16x16xf32>
    %543 = arith.mulf %496, %542 : vector<16x16xf32>
    %544 = arith.addf %540, %543 : vector<16x16xf32>
    %c8_306 = arith.constant 8 : index
    %c6_307 = arith.constant 6 : index
    %545 = memref.load %arg5[%c8_306, %c6_307] : memref<9x8xf32, #tpu.memory_space<smem>>
    %546 = vector.broadcast %545 : f32 to vector<16x16xf32>
    %547 = arith.mulf %537, %546 : vector<16x16xf32>
    %548 = arith.addf %544, %547 : vector<16x16xf32>
    %549 = arith.addf %531, %548 : vector<16x16xf32>
    %c6_308 = arith.constant 6 : index
    %550 = memref.load %arg6[%c6_308] : memref<8xf32, #tpu.memory_space<smem>>
    %551 = vector.broadcast %550 : f32 to vector<16x16xf32>
    %552 = arith.addf %549, %551 : vector<16x16xf32>
    %c6_309 = arith.constant 6 : index
    %c0_310 = arith.constant 0 : index
    %553 = memref.load %arg7[%c6_309, %c0_310] : memref<8x4xf32, #tpu.memory_space<smem>>
    %554 = vector.broadcast %553 : f32 to vector<16x16xf32>
    %555 = arith.mulf %552, %554 : vector<16x16xf32>
    %556 = arith.addf %477, %555 : vector<16x16xf32>
    %c6_311 = arith.constant 6 : index
    %c1_312 = arith.constant 1 : index
    %557 = memref.load %arg7[%c6_311, %c1_312] : memref<8x4xf32, #tpu.memory_space<smem>>
    %558 = vector.broadcast %557 : f32 to vector<16x16xf32>
    %559 = arith.mulf %552, %558 : vector<16x16xf32>
    %560 = arith.addf %481, %559 : vector<16x16xf32>
    %c6_313 = arith.constant 6 : index
    %c2_314 = arith.constant 2 : index
    %561 = memref.load %arg7[%c6_313, %c2_314] : memref<8x4xf32, #tpu.memory_space<smem>>
    %562 = vector.broadcast %561 : f32 to vector<16x16xf32>
    %563 = arith.mulf %552, %562 : vector<16x16xf32>
    %564 = arith.addf %485, %563 : vector<16x16xf32>
    %c6_315 = arith.constant 6 : index
    %c3_316 = arith.constant 3 : index
    %565 = memref.load %arg7[%c6_315, %c3_316] : memref<8x4xf32, #tpu.memory_space<smem>>
    %566 = vector.broadcast %565 : f32 to vector<16x16xf32>
    %567 = arith.mulf %552, %566 : vector<16x16xf32>
    %568 = arith.addf %489, %567 : vector<16x16xf32>
    %569 = vector.extract_strided_slice %5 {offsets = [48, 0], sizes = [16, 16], strides = [1, 1]} : vector<64x16xf32> to vector<16x16xf32>
    %c1_i32_317 = arith.constant 1 : i32
    %570 = tpu.dynamic_rotate %569 by %c1_i32_317 dim 0 : vector<16x16xf32>, i32 -> vector<16x16xf32>
    %cst_318 = arith.constant 0.000000e+00 : f32
    %571 = vector.broadcast %cst_318 : f32 to vector<16x16xf32>
    %572 = arith.select %9, %570, %571 : vector<16x16xi1>, vector<16x16xf32>
    %c15_i32_319 = arith.constant 15 : i32
    %573 = tpu.dynamic_rotate %569 by %c15_i32_319 dim 0 : vector<16x16xf32>, i32 -> vector<16x16xf32>
    %cst_320 = arith.constant 0.000000e+00 : f32
    %574 = vector.broadcast %cst_320 : f32 to vector<16x16xf32>
    %575 = arith.select %11, %573, %574 : vector<16x16xi1>, vector<16x16xf32>
    %c1_i32_321 = arith.constant 1 : i32
    %576 = tpu.dynamic_rotate %572 by %c1_i32_321 dim 1 : vector<16x16xf32>, i32 -> vector<16x16xf32>
    %cst_322 = arith.constant 0.000000e+00 : f32
    %577 = vector.broadcast %cst_322 : f32 to vector<16x16xf32>
    %578 = arith.select %13, %576, %577 : vector<16x16xi1>, vector<16x16xf32>
    %c15_i32_323 = arith.constant 15 : i32
    %579 = tpu.dynamic_rotate %572 by %c15_i32_323 dim 1 : vector<16x16xf32>, i32 -> vector<16x16xf32>
    %cst_324 = arith.constant 0.000000e+00 : f32
    %580 = vector.broadcast %cst_324 : f32 to vector<16x16xf32>
    %581 = arith.select %15, %579, %580 : vector<16x16xi1>, vector<16x16xf32>
    %c0_325 = arith.constant 0 : index
    %c7_326 = arith.constant 7 : index
    %582 = memref.load %arg5[%c0_325, %c7_326] : memref<9x8xf32, #tpu.memory_space<smem>>
    %583 = vector.broadcast %582 : f32 to vector<16x16xf32>
    %584 = arith.mulf %578, %583 : vector<16x16xf32>
    %c1_327 = arith.constant 1 : index
    %c7_328 = arith.constant 7 : index
    %585 = memref.load %arg5[%c1_327, %c7_328] : memref<9x8xf32, #tpu.memory_space<smem>>
    %586 = vector.broadcast %585 : f32 to vector<16x16xf32>
    %587 = arith.mulf %572, %586 : vector<16x16xf32>
    %588 = arith.addf %584, %587 : vector<16x16xf32>
    %c2_329 = arith.constant 2 : index
    %c7_330 = arith.constant 7 : index
    %589 = memref.load %arg5[%c2_329, %c7_330] : memref<9x8xf32, #tpu.memory_space<smem>>
    %590 = vector.broadcast %589 : f32 to vector<16x16xf32>
    %591 = arith.mulf %581, %590 : vector<16x16xf32>
    %592 = arith.addf %588, %591 : vector<16x16xf32>
    %c1_i32_331 = arith.constant 1 : i32
    %593 = tpu.dynamic_rotate %569 by %c1_i32_331 dim 1 : vector<16x16xf32>, i32 -> vector<16x16xf32>
    %cst_332 = arith.constant 0.000000e+00 : f32
    %594 = vector.broadcast %cst_332 : f32 to vector<16x16xf32>
    %595 = arith.select %13, %593, %594 : vector<16x16xi1>, vector<16x16xf32>
    %c15_i32_333 = arith.constant 15 : i32
    %596 = tpu.dynamic_rotate %569 by %c15_i32_333 dim 1 : vector<16x16xf32>, i32 -> vector<16x16xf32>
    %cst_334 = arith.constant 0.000000e+00 : f32
    %597 = vector.broadcast %cst_334 : f32 to vector<16x16xf32>
    %598 = arith.select %15, %596, %597 : vector<16x16xi1>, vector<16x16xf32>
    %c3_335 = arith.constant 3 : index
    %c7_336 = arith.constant 7 : index
    %599 = memref.load %arg5[%c3_335, %c7_336] : memref<9x8xf32, #tpu.memory_space<smem>>
    %600 = vector.broadcast %599 : f32 to vector<16x16xf32>
    %601 = arith.mulf %595, %600 : vector<16x16xf32>
    %c4_337 = arith.constant 4 : index
    %c7_338 = arith.constant 7 : index
    %602 = memref.load %arg5[%c4_337, %c7_338] : memref<9x8xf32, #tpu.memory_space<smem>>
    %603 = vector.broadcast %602 : f32 to vector<16x16xf32>
    %604 = arith.mulf %569, %603 : vector<16x16xf32>
    %605 = arith.addf %601, %604 : vector<16x16xf32>
    %c5_339 = arith.constant 5 : index
    %c7_340 = arith.constant 7 : index
    %606 = memref.load %arg5[%c5_339, %c7_340] : memref<9x8xf32, #tpu.memory_space<smem>>
    %607 = vector.broadcast %606 : f32 to vector<16x16xf32>
    %608 = arith.mulf %598, %607 : vector<16x16xf32>
    %609 = arith.addf %605, %608 : vector<16x16xf32>
    %610 = arith.addf %592, %609 : vector<16x16xf32>
    %c1_i32_341 = arith.constant 1 : i32
    %611 = tpu.dynamic_rotate %575 by %c1_i32_341 dim 1 : vector<16x16xf32>, i32 -> vector<16x16xf32>
    %cst_342 = arith.constant 0.000000e+00 : f32
    %612 = vector.broadcast %cst_342 : f32 to vector<16x16xf32>
    %613 = arith.select %13, %611, %612 : vector<16x16xi1>, vector<16x16xf32>
    %c15_i32_343 = arith.constant 15 : i32
    %614 = tpu.dynamic_rotate %575 by %c15_i32_343 dim 1 : vector<16x16xf32>, i32 -> vector<16x16xf32>
    %cst_344 = arith.constant 0.000000e+00 : f32
    %615 = vector.broadcast %cst_344 : f32 to vector<16x16xf32>
    %616 = arith.select %15, %614, %615 : vector<16x16xi1>, vector<16x16xf32>
    %c6_345 = arith.constant 6 : index
    %c7_346 = arith.constant 7 : index
    %617 = memref.load %arg5[%c6_345, %c7_346] : memref<9x8xf32, #tpu.memory_space<smem>>
    %618 = vector.broadcast %617 : f32 to vector<16x16xf32>
    %619 = arith.mulf %613, %618 : vector<16x16xf32>
    %c7_347 = arith.constant 7 : index
    %c7_348 = arith.constant 7 : index
    %620 = memref.load %arg5[%c7_347, %c7_348] : memref<9x8xf32, #tpu.memory_space<smem>>
    %621 = vector.broadcast %620 : f32 to vector<16x16xf32>
    %622 = arith.mulf %575, %621 : vector<16x16xf32>
    %623 = arith.addf %619, %622 : vector<16x16xf32>
    %c8_349 = arith.constant 8 : index
    %c7_350 = arith.constant 7 : index
    %624 = memref.load %arg5[%c8_349, %c7_350] : memref<9x8xf32, #tpu.memory_space<smem>>
    %625 = vector.broadcast %624 : f32 to vector<16x16xf32>
    %626 = arith.mulf %616, %625 : vector<16x16xf32>
    %627 = arith.addf %623, %626 : vector<16x16xf32>
    %628 = arith.addf %610, %627 : vector<16x16xf32>
    %c7_351 = arith.constant 7 : index
    %629 = memref.load %arg6[%c7_351] : memref<8xf32, #tpu.memory_space<smem>>
    %630 = vector.broadcast %629 : f32 to vector<16x16xf32>
    %631 = arith.addf %628, %630 : vector<16x16xf32>
    %c7_352 = arith.constant 7 : index
    %c0_353 = arith.constant 0 : index
    %632 = memref.load %arg7[%c7_352, %c0_353] : memref<8x4xf32, #tpu.memory_space<smem>>
    %633 = vector.broadcast %632 : f32 to vector<16x16xf32>
    %634 = arith.mulf %631, %633 : vector<16x16xf32>
    %635 = arith.addf %556, %634 : vector<16x16xf32>
    %c7_354 = arith.constant 7 : index
    %c1_355 = arith.constant 1 : index
    %636 = memref.load %arg7[%c7_354, %c1_355] : memref<8x4xf32, #tpu.memory_space<smem>>
    %637 = vector.broadcast %636 : f32 to vector<16x16xf32>
    %638 = arith.mulf %631, %637 : vector<16x16xf32>
    %639 = arith.addf %560, %638 : vector<16x16xf32>
    %c7_356 = arith.constant 7 : index
    %c2_357 = arith.constant 2 : index
    %640 = memref.load %arg7[%c7_356, %c2_357] : memref<8x4xf32, #tpu.memory_space<smem>>
    %641 = vector.broadcast %640 : f32 to vector<16x16xf32>
    %642 = arith.mulf %631, %641 : vector<16x16xf32>
    %643 = arith.addf %564, %642 : vector<16x16xf32>
    %c7_358 = arith.constant 7 : index
    %c3_359 = arith.constant 3 : index
    %644 = memref.load %arg7[%c7_358, %c3_359] : memref<8x4xf32, #tpu.memory_space<smem>>
    %645 = vector.broadcast %644 : f32 to vector<16x16xf32>
    %646 = arith.mulf %631, %645 : vector<16x16xf32>
    %647 = arith.addf %568, %646 : vector<16x16xf32>
    %c0_360 = arith.constant 0 : index
    %648 = memref.load %arg8[%c0_360] : memref<4xf32, #tpu.memory_space<smem>>
    %649 = vector.broadcast %648 : f32 to vector<16x16xf32>
    %650 = arith.addf %635, %649 : vector<16x16xf32>
    %cst_361 = arith.constant 0.000000e+00 : f32
    %651 = vector.broadcast %cst_361 : f32 to vector<16x16xf32>
    %652 = arith.maximumf %650, %651 : vector<16x16xf32>
    %c1_362 = arith.constant 1 : index
    %653 = memref.load %arg8[%c1_362] : memref<4xf32, #tpu.memory_space<smem>>
    %654 = vector.broadcast %653 : f32 to vector<16x16xf32>
    %655 = arith.addf %639, %654 : vector<16x16xf32>
    %cst_363 = arith.constant 0.000000e+00 : f32
    %656 = vector.broadcast %cst_363 : f32 to vector<16x16xf32>
    %657 = arith.maximumf %655, %656 : vector<16x16xf32>
    %c2_364 = arith.constant 2 : index
    %658 = memref.load %arg8[%c2_364] : memref<4xf32, #tpu.memory_space<smem>>
    %659 = vector.broadcast %658 : f32 to vector<16x16xf32>
    %660 = arith.addf %643, %659 : vector<16x16xf32>
    %cst_365 = arith.constant 0.000000e+00 : f32
    %661 = vector.broadcast %cst_365 : f32 to vector<16x16xf32>
    %662 = arith.maximumf %660, %661 : vector<16x16xf32>
    %c3_366 = arith.constant 3 : index
    %663 = memref.load %arg8[%c3_366] : memref<4xf32, #tpu.memory_space<smem>>
    %664 = vector.broadcast %663 : f32 to vector<16x16xf32>
    %665 = arith.addf %647, %664 : vector<16x16xf32>
    %cst_367 = arith.constant 0.000000e+00 : f32
    %666 = vector.broadcast %cst_367 : f32 to vector<16x16xf32>
    %667 = arith.maximumf %665, %666 : vector<16x16xf32>
    %c1_i32_368 = arith.constant 1 : i32
    %668 = tpu.dynamic_rotate %652 by %c1_i32_368 dim 0 : vector<16x16xf32>, i32 -> vector<16x16xf32>
    %cst_369 = arith.constant 0.000000e+00 : f32
    %669 = vector.broadcast %cst_369 : f32 to vector<16x16xf32>
    %670 = arith.select %9, %668, %669 : vector<16x16xi1>, vector<16x16xf32>
    %c15_i32_370 = arith.constant 15 : i32
    %671 = tpu.dynamic_rotate %652 by %c15_i32_370 dim 0 : vector<16x16xf32>, i32 -> vector<16x16xf32>
    %cst_371 = arith.constant 0.000000e+00 : f32
    %672 = vector.broadcast %cst_371 : f32 to vector<16x16xf32>
    %673 = arith.select %11, %671, %672 : vector<16x16xi1>, vector<16x16xf32>
    %c1_i32_372 = arith.constant 1 : i32
    %674 = tpu.dynamic_rotate %670 by %c1_i32_372 dim 1 : vector<16x16xf32>, i32 -> vector<16x16xf32>
    %cst_373 = arith.constant 0.000000e+00 : f32
    %675 = vector.broadcast %cst_373 : f32 to vector<16x16xf32>
    %676 = arith.select %13, %674, %675 : vector<16x16xi1>, vector<16x16xf32>
    %c15_i32_374 = arith.constant 15 : i32
    %677 = tpu.dynamic_rotate %670 by %c15_i32_374 dim 1 : vector<16x16xf32>, i32 -> vector<16x16xf32>
    %cst_375 = arith.constant 0.000000e+00 : f32
    %678 = vector.broadcast %cst_375 : f32 to vector<16x16xf32>
    %679 = arith.select %15, %677, %678 : vector<16x16xi1>, vector<16x16xf32>
    %c0_376 = arith.constant 0 : index
    %c0_377 = arith.constant 0 : index
    %680 = memref.load %arg9[%c0_376, %c0_377] : memref<9x4xf32, #tpu.memory_space<smem>>
    %681 = vector.broadcast %680 : f32 to vector<16x16xf32>
    %682 = arith.mulf %676, %681 : vector<16x16xf32>
    %c1_378 = arith.constant 1 : index
    %c0_379 = arith.constant 0 : index
    %683 = memref.load %arg9[%c1_378, %c0_379] : memref<9x4xf32, #tpu.memory_space<smem>>
    %684 = vector.broadcast %683 : f32 to vector<16x16xf32>
    %685 = arith.mulf %670, %684 : vector<16x16xf32>
    %686 = arith.addf %682, %685 : vector<16x16xf32>
    %c2_380 = arith.constant 2 : index
    %c0_381 = arith.constant 0 : index
    %687 = memref.load %arg9[%c2_380, %c0_381] : memref<9x4xf32, #tpu.memory_space<smem>>
    %688 = vector.broadcast %687 : f32 to vector<16x16xf32>
    %689 = arith.mulf %679, %688 : vector<16x16xf32>
    %690 = arith.addf %686, %689 : vector<16x16xf32>
    %c1_i32_382 = arith.constant 1 : i32
    %691 = tpu.dynamic_rotate %652 by %c1_i32_382 dim 1 : vector<16x16xf32>, i32 -> vector<16x16xf32>
    %cst_383 = arith.constant 0.000000e+00 : f32
    %692 = vector.broadcast %cst_383 : f32 to vector<16x16xf32>
    %693 = arith.select %13, %691, %692 : vector<16x16xi1>, vector<16x16xf32>
    %c15_i32_384 = arith.constant 15 : i32
    %694 = tpu.dynamic_rotate %652 by %c15_i32_384 dim 1 : vector<16x16xf32>, i32 -> vector<16x16xf32>
    %cst_385 = arith.constant 0.000000e+00 : f32
    %695 = vector.broadcast %cst_385 : f32 to vector<16x16xf32>
    %696 = arith.select %15, %694, %695 : vector<16x16xi1>, vector<16x16xf32>
    %c3_386 = arith.constant 3 : index
    %c0_387 = arith.constant 0 : index
    %697 = memref.load %arg9[%c3_386, %c0_387] : memref<9x4xf32, #tpu.memory_space<smem>>
    %698 = vector.broadcast %697 : f32 to vector<16x16xf32>
    %699 = arith.mulf %693, %698 : vector<16x16xf32>
    %c4_388 = arith.constant 4 : index
    %c0_389 = arith.constant 0 : index
    %700 = memref.load %arg9[%c4_388, %c0_389] : memref<9x4xf32, #tpu.memory_space<smem>>
    %701 = vector.broadcast %700 : f32 to vector<16x16xf32>
    %702 = arith.mulf %652, %701 : vector<16x16xf32>
    %703 = arith.addf %699, %702 : vector<16x16xf32>
    %c5_390 = arith.constant 5 : index
    %c0_391 = arith.constant 0 : index
    %704 = memref.load %arg9[%c5_390, %c0_391] : memref<9x4xf32, #tpu.memory_space<smem>>
    %705 = vector.broadcast %704 : f32 to vector<16x16xf32>
    %706 = arith.mulf %696, %705 : vector<16x16xf32>
    %707 = arith.addf %703, %706 : vector<16x16xf32>
    %708 = arith.addf %690, %707 : vector<16x16xf32>
    %c1_i32_392 = arith.constant 1 : i32
    %709 = tpu.dynamic_rotate %673 by %c1_i32_392 dim 1 : vector<16x16xf32>, i32 -> vector<16x16xf32>
    %cst_393 = arith.constant 0.000000e+00 : f32
    %710 = vector.broadcast %cst_393 : f32 to vector<16x16xf32>
    %711 = arith.select %13, %709, %710 : vector<16x16xi1>, vector<16x16xf32>
    %c15_i32_394 = arith.constant 15 : i32
    %712 = tpu.dynamic_rotate %673 by %c15_i32_394 dim 1 : vector<16x16xf32>, i32 -> vector<16x16xf32>
    %cst_395 = arith.constant 0.000000e+00 : f32
    %713 = vector.broadcast %cst_395 : f32 to vector<16x16xf32>
    %714 = arith.select %15, %712, %713 : vector<16x16xi1>, vector<16x16xf32>
    %c6_396 = arith.constant 6 : index
    %c0_397 = arith.constant 0 : index
    %715 = memref.load %arg9[%c6_396, %c0_397] : memref<9x4xf32, #tpu.memory_space<smem>>
    %716 = vector.broadcast %715 : f32 to vector<16x16xf32>
    %717 = arith.mulf %711, %716 : vector<16x16xf32>
    %c7_398 = arith.constant 7 : index
    %c0_399 = arith.constant 0 : index
    %718 = memref.load %arg9[%c7_398, %c0_399] : memref<9x4xf32, #tpu.memory_space<smem>>
    %719 = vector.broadcast %718 : f32 to vector<16x16xf32>
    %720 = arith.mulf %673, %719 : vector<16x16xf32>
    %721 = arith.addf %717, %720 : vector<16x16xf32>
    %c8_400 = arith.constant 8 : index
    %c0_401 = arith.constant 0 : index
    %722 = memref.load %arg9[%c8_400, %c0_401] : memref<9x4xf32, #tpu.memory_space<smem>>
    %723 = vector.broadcast %722 : f32 to vector<16x16xf32>
    %724 = arith.mulf %714, %723 : vector<16x16xf32>
    %725 = arith.addf %721, %724 : vector<16x16xf32>
    %726 = arith.addf %708, %725 : vector<16x16xf32>
    %c0_402 = arith.constant 0 : index
    %727 = memref.load %arg10[%c0_402] : memref<4xf32, #tpu.memory_space<smem>>
    %728 = vector.broadcast %727 : f32 to vector<16x16xf32>
    %729 = arith.addf %726, %728 : vector<16x16xf32>
    %c0_403 = arith.constant 0 : index
    %c0_404 = arith.constant 0 : index
    %730 = memref.load %arg11[%c0_403, %c0_404] : memref<4x4xf32, #tpu.memory_space<smem>>
    %731 = vector.broadcast %730 : f32 to vector<16x16xf32>
    %732 = arith.mulf %729, %731 : vector<16x16xf32>
    %c0_405 = arith.constant 0 : index
    %c1_406 = arith.constant 1 : index
    %733 = memref.load %arg11[%c0_405, %c1_406] : memref<4x4xf32, #tpu.memory_space<smem>>
    %734 = vector.broadcast %733 : f32 to vector<16x16xf32>
    %735 = arith.mulf %729, %734 : vector<16x16xf32>
    %c0_407 = arith.constant 0 : index
    %c2_408 = arith.constant 2 : index
    %736 = memref.load %arg11[%c0_407, %c2_408] : memref<4x4xf32, #tpu.memory_space<smem>>
    %737 = vector.broadcast %736 : f32 to vector<16x16xf32>
    %738 = arith.mulf %729, %737 : vector<16x16xf32>
    %c0_409 = arith.constant 0 : index
    %c3_410 = arith.constant 3 : index
    %739 = memref.load %arg11[%c0_409, %c3_410] : memref<4x4xf32, #tpu.memory_space<smem>>
    %740 = vector.broadcast %739 : f32 to vector<16x16xf32>
    %741 = arith.mulf %729, %740 : vector<16x16xf32>
    %c1_i32_411 = arith.constant 1 : i32
    %742 = tpu.dynamic_rotate %657 by %c1_i32_411 dim 0 : vector<16x16xf32>, i32 -> vector<16x16xf32>
    %cst_412 = arith.constant 0.000000e+00 : f32
    %743 = vector.broadcast %cst_412 : f32 to vector<16x16xf32>
    %744 = arith.select %9, %742, %743 : vector<16x16xi1>, vector<16x16xf32>
    %c15_i32_413 = arith.constant 15 : i32
    %745 = tpu.dynamic_rotate %657 by %c15_i32_413 dim 0 : vector<16x16xf32>, i32 -> vector<16x16xf32>
    %cst_414 = arith.constant 0.000000e+00 : f32
    %746 = vector.broadcast %cst_414 : f32 to vector<16x16xf32>
    %747 = arith.select %11, %745, %746 : vector<16x16xi1>, vector<16x16xf32>
    %c1_i32_415 = arith.constant 1 : i32
    %748 = tpu.dynamic_rotate %744 by %c1_i32_415 dim 1 : vector<16x16xf32>, i32 -> vector<16x16xf32>
    %cst_416 = arith.constant 0.000000e+00 : f32
    %749 = vector.broadcast %cst_416 : f32 to vector<16x16xf32>
    %750 = arith.select %13, %748, %749 : vector<16x16xi1>, vector<16x16xf32>
    %c15_i32_417 = arith.constant 15 : i32
    %751 = tpu.dynamic_rotate %744 by %c15_i32_417 dim 1 : vector<16x16xf32>, i32 -> vector<16x16xf32>
    %cst_418 = arith.constant 0.000000e+00 : f32
    %752 = vector.broadcast %cst_418 : f32 to vector<16x16xf32>
    %753 = arith.select %15, %751, %752 : vector<16x16xi1>, vector<16x16xf32>
    %c0_419 = arith.constant 0 : index
    %c1_420 = arith.constant 1 : index
    %754 = memref.load %arg9[%c0_419, %c1_420] : memref<9x4xf32, #tpu.memory_space<smem>>
    %755 = vector.broadcast %754 : f32 to vector<16x16xf32>
    %756 = arith.mulf %750, %755 : vector<16x16xf32>
    %c1_421 = arith.constant 1 : index
    %c1_422 = arith.constant 1 : index
    %757 = memref.load %arg9[%c1_421, %c1_422] : memref<9x4xf32, #tpu.memory_space<smem>>
    %758 = vector.broadcast %757 : f32 to vector<16x16xf32>
    %759 = arith.mulf %744, %758 : vector<16x16xf32>
    %760 = arith.addf %756, %759 : vector<16x16xf32>
    %c2_423 = arith.constant 2 : index
    %c1_424 = arith.constant 1 : index
    %761 = memref.load %arg9[%c2_423, %c1_424] : memref<9x4xf32, #tpu.memory_space<smem>>
    %762 = vector.broadcast %761 : f32 to vector<16x16xf32>
    %763 = arith.mulf %753, %762 : vector<16x16xf32>
    %764 = arith.addf %760, %763 : vector<16x16xf32>
    %c1_i32_425 = arith.constant 1 : i32
    %765 = tpu.dynamic_rotate %657 by %c1_i32_425 dim 1 : vector<16x16xf32>, i32 -> vector<16x16xf32>
    %cst_426 = arith.constant 0.000000e+00 : f32
    %766 = vector.broadcast %cst_426 : f32 to vector<16x16xf32>
    %767 = arith.select %13, %765, %766 : vector<16x16xi1>, vector<16x16xf32>
    %c15_i32_427 = arith.constant 15 : i32
    %768 = tpu.dynamic_rotate %657 by %c15_i32_427 dim 1 : vector<16x16xf32>, i32 -> vector<16x16xf32>
    %cst_428 = arith.constant 0.000000e+00 : f32
    %769 = vector.broadcast %cst_428 : f32 to vector<16x16xf32>
    %770 = arith.select %15, %768, %769 : vector<16x16xi1>, vector<16x16xf32>
    %c3_429 = arith.constant 3 : index
    %c1_430 = arith.constant 1 : index
    %771 = memref.load %arg9[%c3_429, %c1_430] : memref<9x4xf32, #tpu.memory_space<smem>>
    %772 = vector.broadcast %771 : f32 to vector<16x16xf32>
    %773 = arith.mulf %767, %772 : vector<16x16xf32>
    %c4_431 = arith.constant 4 : index
    %c1_432 = arith.constant 1 : index
    %774 = memref.load %arg9[%c4_431, %c1_432] : memref<9x4xf32, #tpu.memory_space<smem>>
    %775 = vector.broadcast %774 : f32 to vector<16x16xf32>
    %776 = arith.mulf %657, %775 : vector<16x16xf32>
    %777 = arith.addf %773, %776 : vector<16x16xf32>
    %c5_433 = arith.constant 5 : index
    %c1_434 = arith.constant 1 : index
    %778 = memref.load %arg9[%c5_433, %c1_434] : memref<9x4xf32, #tpu.memory_space<smem>>
    %779 = vector.broadcast %778 : f32 to vector<16x16xf32>
    %780 = arith.mulf %770, %779 : vector<16x16xf32>
    %781 = arith.addf %777, %780 : vector<16x16xf32>
    %782 = arith.addf %764, %781 : vector<16x16xf32>
    %c1_i32_435 = arith.constant 1 : i32
    %783 = tpu.dynamic_rotate %747 by %c1_i32_435 dim 1 : vector<16x16xf32>, i32 -> vector<16x16xf32>
    %cst_436 = arith.constant 0.000000e+00 : f32
    %784 = vector.broadcast %cst_436 : f32 to vector<16x16xf32>
    %785 = arith.select %13, %783, %784 : vector<16x16xi1>, vector<16x16xf32>
    %c15_i32_437 = arith.constant 15 : i32
    %786 = tpu.dynamic_rotate %747 by %c15_i32_437 dim 1 : vector<16x16xf32>, i32 -> vector<16x16xf32>
    %cst_438 = arith.constant 0.000000e+00 : f32
    %787 = vector.broadcast %cst_438 : f32 to vector<16x16xf32>
    %788 = arith.select %15, %786, %787 : vector<16x16xi1>, vector<16x16xf32>
    %c6_439 = arith.constant 6 : index
    %c1_440 = arith.constant 1 : index
    %789 = memref.load %arg9[%c6_439, %c1_440] : memref<9x4xf32, #tpu.memory_space<smem>>
    %790 = vector.broadcast %789 : f32 to vector<16x16xf32>
    %791 = arith.mulf %785, %790 : vector<16x16xf32>
    %c7_441 = arith.constant 7 : index
    %c1_442 = arith.constant 1 : index
    %792 = memref.load %arg9[%c7_441, %c1_442] : memref<9x4xf32, #tpu.memory_space<smem>>
    %793 = vector.broadcast %792 : f32 to vector<16x16xf32>
    %794 = arith.mulf %747, %793 : vector<16x16xf32>
    %795 = arith.addf %791, %794 : vector<16x16xf32>
    %c8_443 = arith.constant 8 : index
    %c1_444 = arith.constant 1 : index
    %796 = memref.load %arg9[%c8_443, %c1_444] : memref<9x4xf32, #tpu.memory_space<smem>>
    %797 = vector.broadcast %796 : f32 to vector<16x16xf32>
    %798 = arith.mulf %788, %797 : vector<16x16xf32>
    %799 = arith.addf %795, %798 : vector<16x16xf32>
    %800 = arith.addf %782, %799 : vector<16x16xf32>
    %c1_445 = arith.constant 1 : index
    %801 = memref.load %arg10[%c1_445] : memref<4xf32, #tpu.memory_space<smem>>
    %802 = vector.broadcast %801 : f32 to vector<16x16xf32>
    %803 = arith.addf %800, %802 : vector<16x16xf32>
    %c1_446 = arith.constant 1 : index
    %c0_447 = arith.constant 0 : index
    %804 = memref.load %arg11[%c1_446, %c0_447] : memref<4x4xf32, #tpu.memory_space<smem>>
    %805 = vector.broadcast %804 : f32 to vector<16x16xf32>
    %806 = arith.mulf %803, %805 : vector<16x16xf32>
    %807 = arith.addf %732, %806 : vector<16x16xf32>
    %c1_448 = arith.constant 1 : index
    %c1_449 = arith.constant 1 : index
    %808 = memref.load %arg11[%c1_448, %c1_449] : memref<4x4xf32, #tpu.memory_space<smem>>
    %809 = vector.broadcast %808 : f32 to vector<16x16xf32>
    %810 = arith.mulf %803, %809 : vector<16x16xf32>
    %811 = arith.addf %735, %810 : vector<16x16xf32>
    %c1_450 = arith.constant 1 : index
    %c2_451 = arith.constant 2 : index
    %812 = memref.load %arg11[%c1_450, %c2_451] : memref<4x4xf32, #tpu.memory_space<smem>>
    %813 = vector.broadcast %812 : f32 to vector<16x16xf32>
    %814 = arith.mulf %803, %813 : vector<16x16xf32>
    %815 = arith.addf %738, %814 : vector<16x16xf32>
    %c1_452 = arith.constant 1 : index
    %c3_453 = arith.constant 3 : index
    %816 = memref.load %arg11[%c1_452, %c3_453] : memref<4x4xf32, #tpu.memory_space<smem>>
    %817 = vector.broadcast %816 : f32 to vector<16x16xf32>
    %818 = arith.mulf %803, %817 : vector<16x16xf32>
    %819 = arith.addf %741, %818 : vector<16x16xf32>
    %c1_i32_454 = arith.constant 1 : i32
    %820 = tpu.dynamic_rotate %662 by %c1_i32_454 dim 0 : vector<16x16xf32>, i32 -> vector<16x16xf32>
    %cst_455 = arith.constant 0.000000e+00 : f32
    %821 = vector.broadcast %cst_455 : f32 to vector<16x16xf32>
    %822 = arith.select %9, %820, %821 : vector<16x16xi1>, vector<16x16xf32>
    %c15_i32_456 = arith.constant 15 : i32
    %823 = tpu.dynamic_rotate %662 by %c15_i32_456 dim 0 : vector<16x16xf32>, i32 -> vector<16x16xf32>
    %cst_457 = arith.constant 0.000000e+00 : f32
    %824 = vector.broadcast %cst_457 : f32 to vector<16x16xf32>
    %825 = arith.select %11, %823, %824 : vector<16x16xi1>, vector<16x16xf32>
    %c1_i32_458 = arith.constant 1 : i32
    %826 = tpu.dynamic_rotate %822 by %c1_i32_458 dim 1 : vector<16x16xf32>, i32 -> vector<16x16xf32>
    %cst_459 = arith.constant 0.000000e+00 : f32
    %827 = vector.broadcast %cst_459 : f32 to vector<16x16xf32>
    %828 = arith.select %13, %826, %827 : vector<16x16xi1>, vector<16x16xf32>
    %c15_i32_460 = arith.constant 15 : i32
    %829 = tpu.dynamic_rotate %822 by %c15_i32_460 dim 1 : vector<16x16xf32>, i32 -> vector<16x16xf32>
    %cst_461 = arith.constant 0.000000e+00 : f32
    %830 = vector.broadcast %cst_461 : f32 to vector<16x16xf32>
    %831 = arith.select %15, %829, %830 : vector<16x16xi1>, vector<16x16xf32>
    %c0_462 = arith.constant 0 : index
    %c2_463 = arith.constant 2 : index
    %832 = memref.load %arg9[%c0_462, %c2_463] : memref<9x4xf32, #tpu.memory_space<smem>>
    %833 = vector.broadcast %832 : f32 to vector<16x16xf32>
    %834 = arith.mulf %828, %833 : vector<16x16xf32>
    %c1_464 = arith.constant 1 : index
    %c2_465 = arith.constant 2 : index
    %835 = memref.load %arg9[%c1_464, %c2_465] : memref<9x4xf32, #tpu.memory_space<smem>>
    %836 = vector.broadcast %835 : f32 to vector<16x16xf32>
    %837 = arith.mulf %822, %836 : vector<16x16xf32>
    %838 = arith.addf %834, %837 : vector<16x16xf32>
    %c2_466 = arith.constant 2 : index
    %c2_467 = arith.constant 2 : index
    %839 = memref.load %arg9[%c2_466, %c2_467] : memref<9x4xf32, #tpu.memory_space<smem>>
    %840 = vector.broadcast %839 : f32 to vector<16x16xf32>
    %841 = arith.mulf %831, %840 : vector<16x16xf32>
    %842 = arith.addf %838, %841 : vector<16x16xf32>
    %c1_i32_468 = arith.constant 1 : i32
    %843 = tpu.dynamic_rotate %662 by %c1_i32_468 dim 1 : vector<16x16xf32>, i32 -> vector<16x16xf32>
    %cst_469 = arith.constant 0.000000e+00 : f32
    %844 = vector.broadcast %cst_469 : f32 to vector<16x16xf32>
    %845 = arith.select %13, %843, %844 : vector<16x16xi1>, vector<16x16xf32>
    %c15_i32_470 = arith.constant 15 : i32
    %846 = tpu.dynamic_rotate %662 by %c15_i32_470 dim 1 : vector<16x16xf32>, i32 -> vector<16x16xf32>
    %cst_471 = arith.constant 0.000000e+00 : f32
    %847 = vector.broadcast %cst_471 : f32 to vector<16x16xf32>
    %848 = arith.select %15, %846, %847 : vector<16x16xi1>, vector<16x16xf32>
    %c3_472 = arith.constant 3 : index
    %c2_473 = arith.constant 2 : index
    %849 = memref.load %arg9[%c3_472, %c2_473] : memref<9x4xf32, #tpu.memory_space<smem>>
    %850 = vector.broadcast %849 : f32 to vector<16x16xf32>
    %851 = arith.mulf %845, %850 : vector<16x16xf32>
    %c4_474 = arith.constant 4 : index
    %c2_475 = arith.constant 2 : index
    %852 = memref.load %arg9[%c4_474, %c2_475] : memref<9x4xf32, #tpu.memory_space<smem>>
    %853 = vector.broadcast %852 : f32 to vector<16x16xf32>
    %854 = arith.mulf %662, %853 : vector<16x16xf32>
    %855 = arith.addf %851, %854 : vector<16x16xf32>
    %c5_476 = arith.constant 5 : index
    %c2_477 = arith.constant 2 : index
    %856 = memref.load %arg9[%c5_476, %c2_477] : memref<9x4xf32, #tpu.memory_space<smem>>
    %857 = vector.broadcast %856 : f32 to vector<16x16xf32>
    %858 = arith.mulf %848, %857 : vector<16x16xf32>
    %859 = arith.addf %855, %858 : vector<16x16xf32>
    %860 = arith.addf %842, %859 : vector<16x16xf32>
    %c1_i32_478 = arith.constant 1 : i32
    %861 = tpu.dynamic_rotate %825 by %c1_i32_478 dim 1 : vector<16x16xf32>, i32 -> vector<16x16xf32>
    %cst_479 = arith.constant 0.000000e+00 : f32
    %862 = vector.broadcast %cst_479 : f32 to vector<16x16xf32>
    %863 = arith.select %13, %861, %862 : vector<16x16xi1>, vector<16x16xf32>
    %c15_i32_480 = arith.constant 15 : i32
    %864 = tpu.dynamic_rotate %825 by %c15_i32_480 dim 1 : vector<16x16xf32>, i32 -> vector<16x16xf32>
    %cst_481 = arith.constant 0.000000e+00 : f32
    %865 = vector.broadcast %cst_481 : f32 to vector<16x16xf32>
    %866 = arith.select %15, %864, %865 : vector<16x16xi1>, vector<16x16xf32>
    %c6_482 = arith.constant 6 : index
    %c2_483 = arith.constant 2 : index
    %867 = memref.load %arg9[%c6_482, %c2_483] : memref<9x4xf32, #tpu.memory_space<smem>>
    %868 = vector.broadcast %867 : f32 to vector<16x16xf32>
    %869 = arith.mulf %863, %868 : vector<16x16xf32>
    %c7_484 = arith.constant 7 : index
    %c2_485 = arith.constant 2 : index
    %870 = memref.load %arg9[%c7_484, %c2_485] : memref<9x4xf32, #tpu.memory_space<smem>>
    %871 = vector.broadcast %870 : f32 to vector<16x16xf32>
    %872 = arith.mulf %825, %871 : vector<16x16xf32>
    %873 = arith.addf %869, %872 : vector<16x16xf32>
    %c8_486 = arith.constant 8 : index
    %c2_487 = arith.constant 2 : index
    %874 = memref.load %arg9[%c8_486, %c2_487] : memref<9x4xf32, #tpu.memory_space<smem>>
    %875 = vector.broadcast %874 : f32 to vector<16x16xf32>
    %876 = arith.mulf %866, %875 : vector<16x16xf32>
    %877 = arith.addf %873, %876 : vector<16x16xf32>
    %878 = arith.addf %860, %877 : vector<16x16xf32>
    %c2_488 = arith.constant 2 : index
    %879 = memref.load %arg10[%c2_488] : memref<4xf32, #tpu.memory_space<smem>>
    %880 = vector.broadcast %879 : f32 to vector<16x16xf32>
    %881 = arith.addf %878, %880 : vector<16x16xf32>
    %c2_489 = arith.constant 2 : index
    %c0_490 = arith.constant 0 : index
    %882 = memref.load %arg11[%c2_489, %c0_490] : memref<4x4xf32, #tpu.memory_space<smem>>
    %883 = vector.broadcast %882 : f32 to vector<16x16xf32>
    %884 = arith.mulf %881, %883 : vector<16x16xf32>
    %885 = arith.addf %807, %884 : vector<16x16xf32>
    %c2_491 = arith.constant 2 : index
    %c1_492 = arith.constant 1 : index
    %886 = memref.load %arg11[%c2_491, %c1_492] : memref<4x4xf32, #tpu.memory_space<smem>>
    %887 = vector.broadcast %886 : f32 to vector<16x16xf32>
    %888 = arith.mulf %881, %887 : vector<16x16xf32>
    %889 = arith.addf %811, %888 : vector<16x16xf32>
    %c2_493 = arith.constant 2 : index
    %c2_494 = arith.constant 2 : index
    %890 = memref.load %arg11[%c2_493, %c2_494] : memref<4x4xf32, #tpu.memory_space<smem>>
    %891 = vector.broadcast %890 : f32 to vector<16x16xf32>
    %892 = arith.mulf %881, %891 : vector<16x16xf32>
    %893 = arith.addf %815, %892 : vector<16x16xf32>
    %c2_495 = arith.constant 2 : index
    %c3_496 = arith.constant 3 : index
    %894 = memref.load %arg11[%c2_495, %c3_496] : memref<4x4xf32, #tpu.memory_space<smem>>
    %895 = vector.broadcast %894 : f32 to vector<16x16xf32>
    %896 = arith.mulf %881, %895 : vector<16x16xf32>
    %897 = arith.addf %819, %896 : vector<16x16xf32>
    %c1_i32_497 = arith.constant 1 : i32
    %898 = tpu.dynamic_rotate %667 by %c1_i32_497 dim 0 : vector<16x16xf32>, i32 -> vector<16x16xf32>
    %cst_498 = arith.constant 0.000000e+00 : f32
    %899 = vector.broadcast %cst_498 : f32 to vector<16x16xf32>
    %900 = arith.select %9, %898, %899 : vector<16x16xi1>, vector<16x16xf32>
    %c15_i32_499 = arith.constant 15 : i32
    %901 = tpu.dynamic_rotate %667 by %c15_i32_499 dim 0 : vector<16x16xf32>, i32 -> vector<16x16xf32>
    %cst_500 = arith.constant 0.000000e+00 : f32
    %902 = vector.broadcast %cst_500 : f32 to vector<16x16xf32>
    %903 = arith.select %11, %901, %902 : vector<16x16xi1>, vector<16x16xf32>
    %c1_i32_501 = arith.constant 1 : i32
    %904 = tpu.dynamic_rotate %900 by %c1_i32_501 dim 1 : vector<16x16xf32>, i32 -> vector<16x16xf32>
    %cst_502 = arith.constant 0.000000e+00 : f32
    %905 = vector.broadcast %cst_502 : f32 to vector<16x16xf32>
    %906 = arith.select %13, %904, %905 : vector<16x16xi1>, vector<16x16xf32>
    %c15_i32_503 = arith.constant 15 : i32
    %907 = tpu.dynamic_rotate %900 by %c15_i32_503 dim 1 : vector<16x16xf32>, i32 -> vector<16x16xf32>
    %cst_504 = arith.constant 0.000000e+00 : f32
    %908 = vector.broadcast %cst_504 : f32 to vector<16x16xf32>
    %909 = arith.select %15, %907, %908 : vector<16x16xi1>, vector<16x16xf32>
    %c0_505 = arith.constant 0 : index
    %c3_506 = arith.constant 3 : index
    %910 = memref.load %arg9[%c0_505, %c3_506] : memref<9x4xf32, #tpu.memory_space<smem>>
    %911 = vector.broadcast %910 : f32 to vector<16x16xf32>
    %912 = arith.mulf %906, %911 : vector<16x16xf32>
    %c1_507 = arith.constant 1 : index
    %c3_508 = arith.constant 3 : index
    %913 = memref.load %arg9[%c1_507, %c3_508] : memref<9x4xf32, #tpu.memory_space<smem>>
    %914 = vector.broadcast %913 : f32 to vector<16x16xf32>
    %915 = arith.mulf %900, %914 : vector<16x16xf32>
    %916 = arith.addf %912, %915 : vector<16x16xf32>
    %c2_509 = arith.constant 2 : index
    %c3_510 = arith.constant 3 : index
    %917 = memref.load %arg9[%c2_509, %c3_510] : memref<9x4xf32, #tpu.memory_space<smem>>
    %918 = vector.broadcast %917 : f32 to vector<16x16xf32>
    %919 = arith.mulf %909, %918 : vector<16x16xf32>
    %920 = arith.addf %916, %919 : vector<16x16xf32>
    %c1_i32_511 = arith.constant 1 : i32
    %921 = tpu.dynamic_rotate %667 by %c1_i32_511 dim 1 : vector<16x16xf32>, i32 -> vector<16x16xf32>
    %cst_512 = arith.constant 0.000000e+00 : f32
    %922 = vector.broadcast %cst_512 : f32 to vector<16x16xf32>
    %923 = arith.select %13, %921, %922 : vector<16x16xi1>, vector<16x16xf32>
    %c15_i32_513 = arith.constant 15 : i32
    %924 = tpu.dynamic_rotate %667 by %c15_i32_513 dim 1 : vector<16x16xf32>, i32 -> vector<16x16xf32>
    %cst_514 = arith.constant 0.000000e+00 : f32
    %925 = vector.broadcast %cst_514 : f32 to vector<16x16xf32>
    %926 = arith.select %15, %924, %925 : vector<16x16xi1>, vector<16x16xf32>
    %c3_515 = arith.constant 3 : index
    %c3_516 = arith.constant 3 : index
    %927 = memref.load %arg9[%c3_515, %c3_516] : memref<9x4xf32, #tpu.memory_space<smem>>
    %928 = vector.broadcast %927 : f32 to vector<16x16xf32>
    %929 = arith.mulf %923, %928 : vector<16x16xf32>
    %c4_517 = arith.constant 4 : index
    %c3_518 = arith.constant 3 : index
    %930 = memref.load %arg9[%c4_517, %c3_518] : memref<9x4xf32, #tpu.memory_space<smem>>
    %931 = vector.broadcast %930 : f32 to vector<16x16xf32>
    %932 = arith.mulf %667, %931 : vector<16x16xf32>
    %933 = arith.addf %929, %932 : vector<16x16xf32>
    %c5_519 = arith.constant 5 : index
    %c3_520 = arith.constant 3 : index
    %934 = memref.load %arg9[%c5_519, %c3_520] : memref<9x4xf32, #tpu.memory_space<smem>>
    %935 = vector.broadcast %934 : f32 to vector<16x16xf32>
    %936 = arith.mulf %926, %935 : vector<16x16xf32>
    %937 = arith.addf %933, %936 : vector<16x16xf32>
    %938 = arith.addf %920, %937 : vector<16x16xf32>
    %c1_i32_521 = arith.constant 1 : i32
    %939 = tpu.dynamic_rotate %903 by %c1_i32_521 dim 1 : vector<16x16xf32>, i32 -> vector<16x16xf32>
    %cst_522 = arith.constant 0.000000e+00 : f32
    %940 = vector.broadcast %cst_522 : f32 to vector<16x16xf32>
    %941 = arith.select %13, %939, %940 : vector<16x16xi1>, vector<16x16xf32>
    %c15_i32_523 = arith.constant 15 : i32
    %942 = tpu.dynamic_rotate %903 by %c15_i32_523 dim 1 : vector<16x16xf32>, i32 -> vector<16x16xf32>
    %cst_524 = arith.constant 0.000000e+00 : f32
    %943 = vector.broadcast %cst_524 : f32 to vector<16x16xf32>
    %944 = arith.select %15, %942, %943 : vector<16x16xi1>, vector<16x16xf32>
    %c6_525 = arith.constant 6 : index
    %c3_526 = arith.constant 3 : index
    %945 = memref.load %arg9[%c6_525, %c3_526] : memref<9x4xf32, #tpu.memory_space<smem>>
    %946 = vector.broadcast %945 : f32 to vector<16x16xf32>
    %947 = arith.mulf %941, %946 : vector<16x16xf32>
    %c7_527 = arith.constant 7 : index
    %c3_528 = arith.constant 3 : index
    %948 = memref.load %arg9[%c7_527, %c3_528] : memref<9x4xf32, #tpu.memory_space<smem>>
    %949 = vector.broadcast %948 : f32 to vector<16x16xf32>
    %950 = arith.mulf %903, %949 : vector<16x16xf32>
    %951 = arith.addf %947, %950 : vector<16x16xf32>
    %c8_529 = arith.constant 8 : index
    %c3_530 = arith.constant 3 : index
    %952 = memref.load %arg9[%c8_529, %c3_530] : memref<9x4xf32, #tpu.memory_space<smem>>
    %953 = vector.broadcast %952 : f32 to vector<16x16xf32>
    %954 = arith.mulf %944, %953 : vector<16x16xf32>
    %955 = arith.addf %951, %954 : vector<16x16xf32>
    %956 = arith.addf %938, %955 : vector<16x16xf32>
    %c3_531 = arith.constant 3 : index
    %957 = memref.load %arg10[%c3_531] : memref<4xf32, #tpu.memory_space<smem>>
    %958 = vector.broadcast %957 : f32 to vector<16x16xf32>
    %959 = arith.addf %956, %958 : vector<16x16xf32>
    %c3_532 = arith.constant 3 : index
    %c0_533 = arith.constant 0 : index
    %960 = memref.load %arg11[%c3_532, %c0_533] : memref<4x4xf32, #tpu.memory_space<smem>>
    %961 = vector.broadcast %960 : f32 to vector<16x16xf32>
    %962 = arith.mulf %959, %961 : vector<16x16xf32>
    %963 = arith.addf %885, %962 : vector<16x16xf32>
    %c3_534 = arith.constant 3 : index
    %c1_535 = arith.constant 1 : index
    %964 = memref.load %arg11[%c3_534, %c1_535] : memref<4x4xf32, #tpu.memory_space<smem>>
    %965 = vector.broadcast %964 : f32 to vector<16x16xf32>
    %966 = arith.mulf %959, %965 : vector<16x16xf32>
    %967 = arith.addf %889, %966 : vector<16x16xf32>
    %c3_536 = arith.constant 3 : index
    %c2_537 = arith.constant 2 : index
    %968 = memref.load %arg11[%c3_536, %c2_537] : memref<4x4xf32, #tpu.memory_space<smem>>
    %969 = vector.broadcast %968 : f32 to vector<16x16xf32>
    %970 = arith.mulf %959, %969 : vector<16x16xf32>
    %971 = arith.addf %893, %970 : vector<16x16xf32>
    %c3_538 = arith.constant 3 : index
    %c3_539 = arith.constant 3 : index
    %972 = memref.load %arg11[%c3_538, %c3_539] : memref<4x4xf32, #tpu.memory_space<smem>>
    %973 = vector.broadcast %972 : f32 to vector<16x16xf32>
    %974 = arith.mulf %959, %973 : vector<16x16xf32>
    %975 = arith.addf %897, %974 : vector<16x16xf32>
    %c0_540 = arith.constant 0 : index
    %976 = memref.load %arg12[%c0_540] : memref<4xf32, #tpu.memory_space<smem>>
    %977 = vector.broadcast %976 : f32 to vector<16x16xf32>
    %978 = arith.addf %963, %977 : vector<16x16xf32>
    %cst_541 = arith.constant 0.000000e+00 : f32
    %979 = vector.broadcast %cst_541 : f32 to vector<16x16xf32>
    %980 = arith.maximumf %978, %979 : vector<16x16xf32>
    %c1_542 = arith.constant 1 : index
    %981 = memref.load %arg12[%c1_542] : memref<4xf32, #tpu.memory_space<smem>>
    %982 = vector.broadcast %981 : f32 to vector<16x16xf32>
    %983 = arith.addf %967, %982 : vector<16x16xf32>
    %cst_543 = arith.constant 0.000000e+00 : f32
    %984 = vector.broadcast %cst_543 : f32 to vector<16x16xf32>
    %985 = arith.maximumf %983, %984 : vector<16x16xf32>
    %c2_544 = arith.constant 2 : index
    %986 = memref.load %arg12[%c2_544] : memref<4xf32, #tpu.memory_space<smem>>
    %987 = vector.broadcast %986 : f32 to vector<16x16xf32>
    %988 = arith.addf %971, %987 : vector<16x16xf32>
    %cst_545 = arith.constant 0.000000e+00 : f32
    %989 = vector.broadcast %cst_545 : f32 to vector<16x16xf32>
    %990 = arith.maximumf %988, %989 : vector<16x16xf32>
    %c3_546 = arith.constant 3 : index
    %991 = memref.load %arg12[%c3_546] : memref<4xf32, #tpu.memory_space<smem>>
    %992 = vector.broadcast %991 : f32 to vector<16x16xf32>
    %993 = arith.addf %975, %992 : vector<16x16xf32>
    %cst_547 = arith.constant 0.000000e+00 : f32
    %994 = vector.broadcast %cst_547 : f32 to vector<16x16xf32>
    %995 = arith.maximumf %993, %994 : vector<16x16xf32>
    %c0_548 = arith.constant 0 : index
    %c0_549 = arith.constant 0 : index
    %c0_550 = arith.constant 0 : index
    %c0_551 = arith.constant 0 : index
    %996 = vector.load %arg13[%c0_548, %c0_549, %c0_550, %c0_551] : memref<1x4x16x16xf32, #tpu.memory_space<vmem>>, vector<1x1x16x16xf32>
    %997 = vector.shape_cast %996 : vector<1x1x16x16xf32> to vector<16x16xf32>
    %998 = vector.shape_cast %980 : vector<16x16xf32> to vector<1x1x16x16xf32>
    tpu.vector_store %arg13[%c0_548, %c0_549, %c0_550, %c0_551], %998 {strides = array<i32>} : memref<1x4x16x16xf32, #tpu.memory_space<vmem>>, vector<1x1x16x16xf32>,
    %c0_552 = arith.constant 0 : index
    %c1_553 = arith.constant 1 : index
    %c0_554 = arith.constant 0 : index
    %c0_555 = arith.constant 0 : index
    %999 = vector.load %arg13[%c0_552, %c1_553, %c0_554, %c0_555] : memref<1x4x16x16xf32, #tpu.memory_space<vmem>>, vector<1x1x16x16xf32>
    %1000 = vector.shape_cast %999 : vector<1x1x16x16xf32> to vector<16x16xf32>
    %1001 = vector.shape_cast %985 : vector<16x16xf32> to vector<1x1x16x16xf32>
    tpu.vector_store %arg13[%c0_552, %c1_553, %c0_554, %c0_555], %1001 {strides = array<i32>} : memref<1x4x16x16xf32, #tpu.memory_space<vmem>>, vector<1x1x16x16xf32>,
    %c0_556 = arith.constant 0 : index
    %c2_557 = arith.constant 2 : index
    %c0_558 = arith.constant 0 : index
    %c0_559 = arith.constant 0 : index
    %1002 = vector.load %arg13[%c0_556, %c2_557, %c0_558, %c0_559] : memref<1x4x16x16xf32, #tpu.memory_space<vmem>>, vector<1x1x16x16xf32>
    %1003 = vector.shape_cast %1002 : vector<1x1x16x16xf32> to vector<16x16xf32>
    %1004 = vector.shape_cast %990 : vector<16x16xf32> to vector<1x1x16x16xf32>
    tpu.vector_store %arg13[%c0_556, %c2_557, %c0_558, %c0_559], %1004 {strides = array<i32>} : memref<1x4x16x16xf32, #tpu.memory_space<vmem>>, vector<1x1x16x16xf32>,
    %c0_560 = arith.constant 0 : index
    %c3_561 = arith.constant 3 : index
    %c0_562 = arith.constant 0 : index
    %c0_563 = arith.constant 0 : index
    %1005 = vector.load %arg13[%c0_560, %c3_561, %c0_562, %c0_563] : memref<1x4x16x16xf32, #tpu.memory_space<vmem>>, vector<1x1x16x16xf32>
    %1006 = vector.shape_cast %1005 : vector<1x1x16x16xf32> to vector<16x16xf32>
    %1007 = vector.shape_cast %995 : vector<16x16xf32> to vector<1x1x16x16xf32>
    tpu.vector_store %arg13[%c0_560, %c3_561, %c0_562, %c0_563], %1007 {strides = array<i32>} : memref<1x4x16x16xf32, #tpu.memory_space<vmem>>, vector<1x1x16x16xf32>,
    return
  }
  func.func @transform_0(%arg0: i32) -> (i32, i32, i32) {
    %c0_i32 = arith.constant 0 : i32
    %c0_i32_0 = arith.constant 0 : i32
    %c0_i32_1 = arith.constant 0 : i32
    return %arg0, %c0_i32, %c0_i32_0 : i32, i32, i32
  }
  func.func @transform_1(%arg0: i32) -> (i32, i32, i32, i32) {
    %c0_i32 = arith.constant 0 : i32
    %c0_i32_0 = arith.constant 0 : i32
    %c0_i32_1 = arith.constant 0 : i32
    %c0_i32_2 = arith.constant 0 : i32
    return %arg0, %c0_i32, %c0_i32_0, %c0_i32_1 : i32, i32, i32, i32
  }
  func.func @transform_2(%arg0: i32) -> (i32, i32) {
    %c0_i32 = arith.constant 0 : i32
    %c0_i32_0 = arith.constant 0 : i32
    %c0_i32_1 = arith.constant 0 : i32
    return %c0_i32, %c0_i32_0 : i32, i32
  }
  func.func @transform_3(%arg0: i32) -> (i32, i32) {
    %c0_i32 = arith.constant 0 : i32
    %c0_i32_0 = arith.constant 0 : i32
    %c0_i32_1 = arith.constant 0 : i32
    return %c0_i32, %c0_i32_0 : i32, i32
  }
  func.func @transform_4(%arg0: i32) -> (i32, i32) {
    %c0_i32 = arith.constant 0 : i32
    %c0_i32_0 = arith.constant 0 : i32
    %c0_i32_1 = arith.constant 0 : i32
    return %c0_i32, %c0_i32_0 : i32, i32
  }
  func.func @transform_5(%arg0: i32) -> i32 {
    %c0_i32 = arith.constant 0 : i32
    %c0_i32_0 = arith.constant 0 : i32
    return %c0_i32 : i32
  }
  func.func @transform_6(%arg0: i32) -> (i32, i32) {
    %c0_i32 = arith.constant 0 : i32
    %c0_i32_0 = arith.constant 0 : i32
    %c0_i32_1 = arith.constant 0 : i32
    return %c0_i32, %c0_i32_0 : i32, i32
  }
  func.func @transform_7(%arg0: i32) -> i32 {
    %c0_i32 = arith.constant 0 : i32
    %c0_i32_0 = arith.constant 0 : i32
    return %c0_i32 : i32
  }
  func.func @transform_8(%arg0: i32) -> (i32, i32) {
    %c0_i32 = arith.constant 0 : i32
    %c0_i32_0 = arith.constant 0 : i32
    %c0_i32_1 = arith.constant 0 : i32
    return %c0_i32, %c0_i32_0 : i32, i32
  }
  func.func @transform_9(%arg0: i32) -> i32 {
    %c0_i32 = arith.constant 0 : i32
    %c0_i32_0 = arith.constant 0 : i32
    return %c0_i32 : i32
  }
  func.func @transform_10(%arg0: i32) -> (i32, i32) {
    %c0_i32 = arith.constant 0 : i32
    %c0_i32_0 = arith.constant 0 : i32
    %c0_i32_1 = arith.constant 0 : i32
    return %c0_i32, %c0_i32_0 : i32, i32
  }
  func.func @transform_11(%arg0: i32) -> i32 {
    %c0_i32 = arith.constant 0 : i32
    %c0_i32_0 = arith.constant 0 : i32
    return %c0_i32 : i32
  }
  func.func @transform_12(%arg0: i32) -> (i32, i32, i32, i32) {
    %c0_i32 = arith.constant 0 : i32
    %c0_i32_0 = arith.constant 0 : i32
    %c0_i32_1 = arith.constant 0 : i32
    %c0_i32_2 = arith.constant 0 : i32
    return %arg0, %c0_i32, %c0_i32_0, %c0_i32_1 : i32, i32, i32, i32
  }
}

</mosaic_0001>

<bundles_post_ra>
// kernel: tpu_custom_call.1
= control target key start
LH: loop header
LB: loop body
LE: loop exit
PB: predicated region body
PF: predicated region fallthrough
CT: control target
= control target key end

     0   :  { %s6804_s0 = inlined_call_operand.vmem [shape: f32[2,32,8], index: 0, kind: input, shape index: {}]   ;;  %s6805_s1 = inlined_call_operand.vmem [shape: f32[2,4,16,16], index: 1, kind: input, shape index: {}]   ;;  %s6806_s2 = inlined_call_operand.vmem [shape: f32[64,32], index: 2, kind: input, shape index: {}]   ;;  %s6807_s3 = inlined_call_operand.vmem [shape: f32[8,16], index: 3, kind: input, shape index: {}]   ;;  %s6808_s4 = inlined_call_operand.vmem [shape: f32[9,8], index: 4, kind: input, shape index: {}]   ;;  %s6809_s5 = inlined_call_operand.vmem [shape: f32[8], index: 5, kind: input, shape index: {}]   ;;  %s6810_s6 = inlined_call_operand.vmem [shape: f32[8,4], index: 6, kind: input, shape index: {}]   ;;  %s6811_s7 = inlined_call_operand.vmem [shape: f32[4], index: 7, kind: input, shape index: {}]   ;;  %s6812_s8 = inlined_call_operand.vmem [shape: f32[9,4], index: 8, kind: input, shape index: {}]   ;;  %s6813_s9 = inlined_call_operand.vmem [shape: f32[4], index: 9, kind: input, shape index: {}]   ;;  %s6814_s10 = inlined_call_operand.vmem [shape: f32[4,4], index: 10, kind: input, shape index: {}]   ;;  %s6815_s11 = inlined_call_operand.vmem [shape: f32[4], index: 11, kind: input, shape index: {}]   ;;  %s6816_s12 = inlined_call_operand.hbm [shape: f32[2,4,16,16], index: 12, kind: output, shape index: {}]  }
   0x1   :  { %6902 = sst [smem:[#allocation95_spill]] %s6804_s0 }
   0x2   :  { %6903 = sst [smem:[#allocation96_spill]] %s6805_s1 }
   0x3   :  { %6904 = sst [smem:[#allocation97_spill]] %s6806_s2 }
   0x4   :  { %6905 = sst [smem:[#allocation98_spill]] %s6807_s3 }
   0x5   :  { %6906 = sst [smem:[#allocation99_spill]] %s6808_s4 }
   0x6   :  { %6907 = sst [smem:[#allocation100_spill]] %s6809_s5 }
   0x7   :  { %6908 = sst [smem:[#allocation101_spill]] %s6810_s6 }
   0x8   :  { %6909 = sst [smem:[#allocation102_spill]] %s6811_s7 }
   0x9   :  { %6910 = sst [smem:[#allocation103_spill]] %s6812_s8 }
   0xa   :  { %6911 = sst [smem:[#allocation104_spill]] %s6813_s9 }
   0xb   :  { %6912 = sst [smem:[#allocation105_spill]] %s6814_s10 }
   0xc   :  { %6913 = sst [smem:[#allocation106_spill]] %s6815_s11 }
   0xd   :  { %6914 = sst [smem:[#allocation107_spill]] %s6816_s12 }
   0xe   :  { %17 = vsyncpa [#allocation4], 0 }
   0xf   :  { %18 = vsyncpa [#allocation6], 0 }
  0x10   :  { %19 = vsyncpa [#allocation9], 0 }
  0x11   :  { %20 = vsyncpa [#allocation12], 0 }
  0x12   :  { %21 = vsyncpa [#allocation15], 0 }
  0x13   :  { %22 = vsyncpa [#allocation3], 0 }
  0x14   :  { %24 = vsyncpa [#allocation3 + $0x1], 0  ;;  %s3733_s21 = smov 0   ;;  %s3735_s22 = smov 0  }
  0x15   :  { %s3737_s23 = smov 0   ;;  %s3739_s24 = smov 0  }
  0x16 LB: > { %6915 = sst [smem:[#allocation23_spill]] %s3639_s21  ;;  %s3754_s25 = sadd.s32 4294967295, %s3651_s24   ;;  %s3651_s24 = sphi %s3739_s24, %s7180_s24   ;;  %s3647_s23 = sphi %s3737_s23, %s7183_s23   ;;  %s3643_s22 = sphi %s3735_s22, %s7182_s22   ;;  %s3639_s21 = sphi %s3733_s21, %s7181_s21  }
  0x17   : > { %6916 = sst [smem:[#allocation24_spill]] %s3643_s22  ;;  %s3081_s26 = sadd.s32 4294967294, %s3651_s24  }
  0x18   : > { %6917 = sst [smem:[#allocation25_spill]] %s3647_s23  ;;  %s3758_s27 = sadd.s32 1, %s3651_s24  }
  0x19   : > { %6918 = sst [smem:[#allocation26_spill]] %s3651_s24  ;;  %s299_s28 = sadd.s32 1, %s3647_s23 }
  0x1a   : > { %6919 = sst [smem:[#allocation27_spill]] %s3754_s25  ;;  %s296_s29 = ssub.s32 %s3651_s24, %s3758_s27 }
  0x1b   : > { %6920 = sst [smem:[#allocation28_spill]] %s3758_s27  ;;  %p309_p0 = scmp.ne.s32.totalorder %s3647_s23, %s3643_s22 }
  0x1c   : > { %p297_p1 = scmp.eq.s32.totalorder %s296_s29, 0  ;;  %p310_p2 = scmp.eq.s32.totalorder %s3754_s25, 1 }
  0x1d   : > { %p315_p3 = scmp.ne.s32.totalorder %s3643_s22, %s3639_s21  ;;  %p316_p4 = scmp.eq.s32.totalorder %s3081_s26, 1 }
  0x1e   : > { %s3769_s30 = scalar_select %p297_p1, %s3647_s23, %s299_s28  }
  0x1f   : > { %p3771_p5 = por %p310_p2, %p309_p0  ;;  %p3775_p6 = por %p316_p4, %p315_p3 }
  0x20   : > { %6921 = sst [smem:[#allocation29_spill]] %s3769_s30  ;;  %p3082_p7 = scmp.ge.s32.totalorder %s3651_s24, 1 }
  0x21   : > { %s6922_s13 = scalar_select %p3771_p5, 1, 0 }
  0x22   : > { %s6924_s14 = scalar_select %p3775_p6, 1, 0 }
  0x23   : > { %6923 = sst [smem:[#allocation30_spill]] %s6922_s13  ;;  %p323_p8 = scmp.lt.s32.totalorder %s3651_s24, 3 }
  0x24   : > { %6925 = sst [smem:[#allocation31_spill]] %s6924_s14  ;;  %p3377_p9 = scmp.eq.s32.totalorder %s3754_s25, 0 }
  0x25   : > { %p3782_p10 = pnand %p3082_p7, %p323_p8  ;;  %s6927_s5 = sld [smem:[#allocation100_spill]] }
  0x26   : > { %s6928_s7 = sld [smem:[#allocation102_spill]]  ;;  %s3653_s20 = smov [#allocation5]  }
  0x27   : > { %p3348_p11 = pneg %p3782_p10  ;;  %s6930_s9 = sld [smem:[#allocation104_spill]] }
  0x28   : > { %s6931_s4 = sld [smem:[#allocation99_spill]]  ;;  %s3655_s23 = smov [#allocation11]  }
  0x29   : > { %p3796_p12 = pnand %p3377_p9, %p3348_p11  ;;  %s3656_s30 = smov [#allocation2]  }
  0x2a   : > { %s3657_s29 = smov 128   ;;  %s6932_s6 = sld [smem:[#allocation101_spill]] }
  0x2b   : > { %s353_s18 = sshll.u32 %s6927_s5, 4  ;;  %s6933_s8 = sld [smem:[#allocation103_spill]]  ;;  %s354_s18 = int_to_ptr.vmem [resolvable:$true] %s353_s18 }
  0x2c   : > { %s373_s26 = sshll.u32 %s6928_s7, 4  ;;  %s3654_s7 = smov [#allocation8]   ;;  %s374_s26 = int_to_ptr.vmem [resolvable:$true] %s373_s26 }
  0x2d   : > { %s395_s16 = sshll.u32 %s6930_s9, 4  ;;  %s3658_s9 = smov 8   ;;  %s396_s16 = int_to_ptr.vmem [resolvable:$true] %s395_s16 }
  0x2e   : > { %s340_s19 = sshll.u32 %s6931_s4, 4  ;;  %s6934_s10 = sld [smem:[#allocation105_spill]]  ;;  %s341_s19 = int_to_ptr.vmem [resolvable:$true] %s340_s19 }
  0x2f   : > { %3354 = dma.vmem_to_smem (!%p3796_p12), %s354_s18, 16, %s3653_s20, [#allocation6]  }
  0x30   : > { %3360 = dma.vmem_to_smem (!%p3796_p12), %s374_s26, 16, %s3654_s7, [#allocation9]  }
  0x31   : > { %3366 = dma.vmem_to_smem (!%p3796_p12), %s396_s16, 16, %s3655_s23, [#allocation12]  }
  0x32   : > { %3351 = dma.vmem_to_smem (!%p3796_p12), %s341_s19, 256, %s3656_s30, [#allocation4], %s3657_s29, %s3657_s29, %s3658_s9  }
  0x33   : > { %s363_s4 = sshll.u32 %s6932_s6, 4  ;;  %s382_s7 = sshll.u32 %s6933_s8, 4  ;;  %s364_s4 = int_to_ptr.vmem [resolvable:$true] %s363_s4  ;;  %s383_s7 = int_to_ptr.vmem [resolvable:$true] %s382_s7 }
  0x34   : > { %s3659_s26 = smov [#allocation7]   ;;  %s3660_s23 = smov [#allocation10]  }
  0x35   : > { %3357 = dma.vmem_to_smem (!%p3796_p12), %s364_s4, 128, %s3659_s26, [#allocation6]  }
  0x36   : > { %3363 = dma.vmem_to_smem (!%p3796_p12), %s383_s7, 256, %s3660_s23, [#allocation9], %s3657_s29, %s3657_s29, %s3658_s9  }
  0x37   : > { %s405_s19 = sshll.u32 %s6934_s10, 4  ;;  %s6935_s11 = sld [smem:[#allocation106_spill]]  ;;  %s406_s19 = int_to_ptr.vmem [resolvable:$true] %s405_s19 }
  0x38   : > { %s3661_s6 = smov [#allocation13]   ;;  %s3662_s18 = smov [#allocation14]  }
  0x39   : > { %3369 = dma.vmem_to_smem (!%p3796_p12), %s406_s19, 64, %s3661_s6, [#allocation12]  }
  0x3a   : > { %444 = sbr.rel (%p3782_p10) target bundleno = 1434 (0x59a), region = 68 }
  0x3d   : > { %s415_s17 = sshll.u32 %s6935_s11, 4  ;;  %s416_s17 = int_to_ptr.vmem [resolvable:$true] %s415_s17 }
  0x3e   : > { %3372 = dma.vmem_to_smem (!%p3796_p12), %s416_s17, 16, %s3662_s18, [#allocation15]  }
  0x3f   : > { %3614 = dma.done.wait (%p3377_p9), [#allocation4], 256  }
  0x40   : > { %3616 = vsyncadd (%p3377_p9), [#allocation4], 4294967040 }
  0x41   : > { %3618 = dma.done.wait (%p3377_p9), [#allocation6], 144  }
  0x42   : > { %3620 = vsyncadd (%p3377_p9), [#allocation6], 4294967152 }
  0x43   : > { %3622 = dma.done.wait (%p3377_p9), [#allocation9], 272  }
  0x44   : > { %3624 = vsyncadd (%p3377_p9), [#allocation9], 4294967024 }
  0x45   : > { %3626 = dma.done.wait (%p3377_p9), [#allocation12], 80  }
  0x46   : > { %3628 = vsyncadd (%p3377_p9), [#allocation12], 4294967216 }
  0x47   : > { %3630 = dma.done.wait (%p3377_p9), [#allocation15], 16  }
  0x48   : > { %3632 = vsyncadd (%p3377_p9), [#allocation15], 4294967280 }
  0x49   : > { %486 = sfence }
  0x4a   : > { %p528_p13 = scmp.lt.s32.totalorder %s3754_s25, 1  ;;  %v6820_v0 = vlaneseq  ;;  %s6937_s1 = sld [smem:[#allocation96_spill]]  ;;  %vm543_vm4 = vcmask 64512   ;;  %vm686_vm5 = vcmask 1047680   ;;  %vm593_vm6 = vcmask 261120  }
  0x4b   : > { %s6832_s28 = smov 16   ;;  %s6941_s0 = sld [smem:[#allocation95_spill]]  ;;  %vm2900_vm9 = vcmask 130048  }
  0x4c   : > { %s3858_s4 = scalar_select %p528_p13, %s3754_s25, 1  ;;  %v3861_v1 = vshrl.u32 %v6820_v0, 7 }
  0x4d   : > { %s6942_s3 = sld [smem:[#allocation98_spill]]  ;;  %s6840_s20 = smov 113  }
  0x4e   : > { %6936 = vst [vmem:[#allocation32_spill] sm:$0xff] %v3861_v1  ;;  %s3304_s6 = sshll.u32 %s3858_s4, 6  ;;  %v3870_v2 = vadd.s32 8, %v3861_v1  ;;  %vm674_vm0 = vcmp.lt.s32.totalorder %v3861_v1, 1  ;;  %vm681_vm1 = vcmp.lt.s32.totalorder %v3861_v1, 7  ;;  %vm664_vm3 = vcmp.ge.s32.totalorder %v3861_v1, 1 }
  0x4f   : > { %s3303_s29 = sshll.u32 %s3858_s4, 5  ;;  %s6951_s2 = sld [smem:[#allocation97_spill]] }
  0x50   : > { %s3867_s15 = scalar_lea.vmem %s6937_s1, %s3304_s6  ;;  %6938 = vst [vmem:[#allocation33_spill] sm:$0xff] %v3870_v2  ;;  %vm667_vm2 = vcmp.le.s32.totalorder %v3870_v2, 14  ;;  %s6834_s7 = smov 127  }
  0x51   : > { %v3873_v3 = vld [vmem:[%s3867_s15] sm:$0xff]  ;;  %v3876_v4 = vld [vmem:[%s3867_s15 + $0x8] sm:$0xff]  ;;  %v3916_v15 = vld [vmem:[%s3867_s15 + $0x10] sm:$0xff]  ;;  %s3924_s26 = scalar_lea.vmem %s6941_s0, %s3303_s29  ;;  %s4648_s17 = sld [smem:[#allocation2 + $0x280]] }
  0x52   : > { %733 = vrot.lane.b32.xlu2 %v3873_v3, %s6832_s28  ;;  %v672_v5 = vrot.slane %v3873_v3, 7  ;;  %v673_v6 = vrot.slane %v3876_v4, 7  ;;  %v679_v7 = vrot.slane %v3873_v3, 1  ;;  %v680_v8 = vrot.slane %v3876_v4, 1  ;;  %v3919_v16 = vld [vmem:[%s3867_s15 + $0x18] sm:$0xff]  ;;  %v538_v21 = vld [vmem:[%s3924_s26] sm:$0xff] }
  0x53   : > { %v852_v17 = vrot.slane %v3916_v15, 7  ;;  %v853_v18 = vrot.slane %v3919_v16, 7  ;;  %v542_v20 = vld [vmem:[%s6942_s3] sm:$0xff]  ;;  %v858_v22 = vrot.slane %v3916_v15, 1  ;;  %v859_v23 = vrot.slane %v3919_v16, 1  ;;  %v539_v26 = vld [vmem:[%s3924_s26 + $0x8] sm:$0xff] }
  0x54   : > { %v3888_v9 = vsel %vm674_vm0, %v672_v5, %v673_v6  ;;  %v683_v10 = vsel %vm681_vm1, %v680_v8, %v679_v7  ;;  %v3897_v11 = vsel %vm681_vm1, %v679_v7, %v680_v8  ;;  %v676_v13 = vsel %vm674_vm0, %v673_v6, %v672_v5  ;;  %571 = vmatpush.msra.mxu0 %v542_v20  ;;  %v3970_v30 = vld [vmem:[%s3867_s15 + $0x20] sm:$0xff]  ;;  %v3973_v31 = vld [vmem:[%s3867_s15 + $0x28] sm:$0xff]  ;;  %v540_v35 = vld [vmem:[%s3924_s26 + $0x10] sm:$0xff]  ;;  %s4650_s18 = sld [smem:[#allocation2 + $0x180]]  ;;  %s6997_s11 = smov 127  }
  0x55   : > { %690 = vrot.lane.b32.xlu0 %v3888_v9, %s6832_s28  ;;  %v3901_v12 = vsel %vm667_vm2, %v683_v10, 0.0  ;;  %781 = vrot.lane.b32.xlu1 %v3897_v11, %s6832_s28  ;;  %v3913_v14 = vsel %vm664_vm3, %v676_v13, 0.0  ;;  %v3932_v19 = vsel %vm674_vm0, %v852_v17, %v853_v18  ;;  %v861_v24 = vsel %vm681_vm1, %v859_v23, %v858_v22  ;;  %v541_v40 = vld [vmem:[%s3924_s26 + $0x18] sm:$0xff]  ;;  %v4013_v44 = vld [vmem:[%s3867_s15 + $0x30] sm:$0xff]  ;;  %s4654_s4 = sld [smem:[#allocation2 + $0x200]] }
  0x56   : > { %6939 = vst [vmem:[#allocation34_spill] sm:$0xff] %v3901_v12  ;;  %3106 = vmatmul.msk.f32.vlgmr.msra.gmra.mxu0 %vm543_vm4, %v538_v21  ;;  %v3951_v25 = vsel %vm681_vm1, %v858_v22, %v859_v23  ;;  %v3956_v27 = vsel %vm667_vm2, %v861_v24, 0.0  ;;  %v855_v28 = vsel %vm674_vm0, %v853_v18, %v852_v17  ;;  %v1037_v32 = vrot.slane %v3970_v30, 7  ;;  %v4007_v43 = vld [vmem:[%s3867_s15 + $0x38] sm:$0xff]  ;;  %s4658_s6 = sld [smem:[#allocation2 + $0x281]] }
  0x57   : > { %6940 = vst [vmem:[#allocation35_spill] sm:$0xff] %v3913_v14  ;;  %v3967_v29 = vsel %vm664_vm3, %v855_v28, 0.0  ;;  %v1038_v33 = vrot.slane %v3973_v31, 7  ;;  %v1043_v36 = vrot.slane %v3970_v30, 1  ;;  %v1044_v37 = vrot.slane %v3973_v31, 1  ;;  %s4662_s9 = sld [smem:[#allocation2 + $0x282]] }
  0x58   : > { %6943 = vst [vmem:[#allocation36_spill] sm:$0xff] %v3956_v27  ;;  %v1222_v46 = vrot.slane %v4013_v44, 7  ;;  %v1223_v47 = vrot.slane %v4007_v43, 7  ;;  %v1228_v49 = vrot.slane %v4013_v44, 1  ;;  %v1229_v50 = vrot.slane %v4007_v43, 1  ;;  %s4664_s27 = sld [smem:[#allocation2 + $0x181]] }
  0x59   : > { %6944 = vst [vmem:[#allocation37_spill] sm:$0xff] %v3967_v29  ;;  %v3981_v34 = vsel %vm674_vm0, %v1037_v32, %v1038_v33  ;;  %v1046_v38 = vsel %vm681_vm1, %v1044_v37, %v1043_v36  ;;  %v3997_v39 = vsel %vm681_vm1, %v1043_v36, %v1044_v37  ;;  %v1040_v42 = vsel %vm674_vm0, %v1038_v33, %v1037_v32  ;;  %s4666_s29 = sld [smem:[#allocation2 + $0x201]] }
  0x5a   : > { %784 = vrot.lane.b32.xlu2 %v3901_v12, %s6832_s28  ;;  %v4002_v41 = vsel %vm667_vm2, %v1046_v38, 0.0  ;;  %v4019_v45 = vsel %vm664_vm3, %v1040_v42, 0.0  ;;  %v4025_v48 = vsel %vm674_vm0, %v1222_v46, %v1223_v47  ;;  %v4037_v51 = vsel %vm681_vm1, %v1228_v49, %v1229_v50  ;;  %s4670_s26 = sld [smem:[#allocation2 + $0x283]] }
  0x5b   : > { %6945 = vst [vmem:[#allocation38_spill] sm:$0xff] %v4002_v41  ;;  %v1225_v52 = vsel %vm674_vm0, %v1223_v47, %v1222_v46  ;;  %v1231_v56 = vsel %vm681_vm1, %v1229_v50, %v1228_v49  ;;  %s4676_s23 = sld [smem:[#allocation2]] }
  0x5c   : > { %6946 = vst [vmem:[#allocation39_spill] sm:$0xff] %v4019_v45  ;;  %v4047_v53 = vsel %vm664_vm3, %v1225_v52, 0.0  ;;  %v4060_v57 = vsel %vm667_vm2, %v1231_v56, 0.0  ;;  %s4678_s16 = sld [smem:[#allocation2 + $0x80]] }
  0x5d   : > { %687 = vrot.lane.b32.xlu0 %v3913_v14, %s6832_s28  ;;  %867 = vrot.lane.b32.xlu1 %v3932_v19, %s6832_s28  ;;  %6947 = vst [vmem:[#allocation40_spill] sm:$0xff] %v4025_v48  ;;  %s4683_s19 = sld [smem:[#allocation2 + $0x204]] }
  0x5e   : > { %3107 = vmatmul.msk.f32.gmra.mxu0 %vm543_vm4, %v539_v26  ;;  %6948 = vst [vmem:[#allocation41_spill] sm:$0xff] %v4037_v51  ;;  %s4685_s30 = sld [smem:[#allocation2 + $0x182]] }
  0x5f   : > { %6949 = vst [vmem:[#allocation42_spill] sm:$0xff] %v4047_v53  ;;  %s4691_s5 = sld [smem:[#allocation2 + $0x202]] }
  0x60   : > { %6950 = vst [vmem:[#allocation43_spill] sm:$0xff] %v4060_v57  ;;  %s4700_s0 = sld [smem:[#allocation2 + $0x300]] }
  0x61   : > { %s4722_s1 = sld [smem:[#allocation2 + $0x81]] }
  0x62   : > { %910 = vrot.lane.b32.xlu2 %v3916_v15, %s6832_s28  ;;  %s4739_s3 = sld [smem:[#allocation2 + $0x203]] }
  0x63   : > { %s4757_s8 = sld [smem:[#allocation2 + $0x205]] }
  0x64   : > { %s4764_s10 = sld [smem:[#allocation2 + $0x301]] }
  0x65   : > { %736 = vrot.lane.b32.xlu0 %v3876_v4, %s6832_s28  ;;  %958 = vrot.lane.b32.xlu1 %v3951_v25, %s6832_s28  ;;  %s4778_s14 = sld [smem:[#allocation2 + $0x85]] }
  0x66   : > { %3108 = vmatmul.msk.f32.gmra.mxu0 %vm543_vm4, %v540_v35  ;;  %s4786_s21 = sld [smem:[#allocation2 + $0x284]] }
  0x67   : > { %6993 = sst [smem:[#allocation84_spill]] %s4722_s1 }
  0x68   : > { %s4879_s24 = sld [smem:[#allocation2 + $0x285]] }
  0x69   : > { %s4886_s13 = sld [smem:[#allocation2 + $0x207]] }
  0x6a   : > { %961 = vrot.lane.b32.xlu2 %v3956_v27, %s6832_s28  ;;  %s4888_s12 = sld [smem:[#allocation2 + $0x382]] }
  0x6b   : > { %s4904_s25 = sld [smem:[#allocation2 + $0x100]] }
  0x6c   : > { %s4920_s22 = sld [smem:[#allocation2 + $0x87]] }
  0x6d   : > { %864 = vrot.lane.b32.xlu0 %v3967_v29, %s6832_s28  ;;  %1052 = vrot.lane.b32.xlu1 %v3981_v34, %s6832_s28 }
  0x6e   : > { %3109 = vmatmul.msk.f32.gmra.mxu0 %vm543_vm4, %v541_v40  ;;  %7005 = sst [smem:[#allocation88_spill]] %s4879_s24 }
  0x72   : > { %1095 = vrot.lane.b32.xlu2 %v3970_v30, %s6832_s28 }
  0x75   : > { %913 = vrot.lane.b32.xlu0 %v3919_v16, %s6832_s28  ;;  %1143 = vrot.lane.b32.xlu1 %v3997_v39, %s6832_s28 }
  0x7a   : > { %1146 = vrot.lane.b32.xlu2 %v4002_v41, %s6832_s28 }
  0x7d   : > { %1049 = vrot.lane.b32.xlu0 %v4019_v45, %s6832_s28  ;;  %1237 = vrot.lane.b32.xlu1 %v4025_v48, %s6832_s28 }
  0x82   : > { %1280 = vrot.lane.b32.xlu2 %v4013_v44, %s6832_s28 }
  0x85   : > { %1098 = vrot.lane.b32.xlu0 %v3973_v31, %s6832_s28  ;;  %1328 = vrot.lane.b32.xlu1 %v4037_v51, %s6832_s28 }
  0x8a   : > { %1331 = vrot.lane.b32.xlu2 %v4060_v57, %s6832_s28 }
  0x8d   : > { %1234 = vrot.lane.b32.xlu0 %v4047_v53, %s6832_s28 }
  0x95   : > { %1283 = vrot.lane.b32.xlu0 %v4007_v43, %s6832_s28 }
  0xac   : > { %v734_v54 = vpop.permute.xlu2 %733 }
  0xad   : > { %v735_v55 = vsel %vm686_vm5, %v734_v54, %v3873_v3 }
  0xae   : > { %739 = vrot.lane.b32.xlu1 %v735_v55, %s6832_s28 }
  0xb4   : > { %v785_v58 = vpop.permute.xlu2 %784 }
  0xb5   : > { %v786_v54 = vsel %vm686_vm5, %v785_v58, %v3901_v12 }
  0xbc   : > { %v911_v59 = vpop.permute.xlu2 %910 }
  0xbd   : > { %v912_v60 = vsel %vm686_vm5, %v911_v59, %v3916_v15 }
  0xbe   : > { %916 = vrot.lane.b32.xlu1 %v912_v60, %s6832_s28 }
  0xc4   : > { %v962_v61 = vpop.permute.xlu2 %961 }
  0xc5   : > { %v963_v58 = vsel %vm686_vm5, %v962_v61, %v3956_v27 }
  0xc7   : > { %v691_v62 = vpop.permute.xlu0 %690  ;;  %v782_v63 = vpop.permute.xlu1 %781 }
  0xc8   : > { %v783_v5 = vsel %vm686_vm5, %v782_v63, %v3897_v11  ;;  %v692_v35 = vsel %vm686_vm5, %v691_v62, %v3888_v9 }
  0xc9   : > { %787 = vrot.lane.b32.xlu0 %v783_v5, %s6832_s28  ;;  %v588_v5 = vld [vmem:[%s6951_s2 + $0x18] sm:$0xff] }
  0xcc   : > { %v1096_v6 = vpop.permute.xlu2 %1095 }
  0xcd   : > { %v1097_v7 = vsel %vm686_vm5, %v1096_v6, %v3970_v30 }
  0xce   : > { %1101 = vrot.lane.b32.xlu1 %v1097_v7, %s6832_s28 }
  0xcf   : > { %v688_v8 = vpop.permute.xlu0 %687  ;;  %v868_v10 = vpop.permute.xlu1 %867 }
  0xd0   : > { %v869_v13 = vsel %vm686_vm5, %v868_v10, %v3932_v19  ;;  %v689_v46 = vsel %vm686_vm5, %v688_v8, %v3913_v14  ;;  %v585_v8 = vld [vmem:[%s6951_s2] sm:$0xff] }
  0xd1   : > { %872 = vrot.lane.b32.xlu0 %v869_v13, %s6832_s28 }
  0xd3   : > { %v573_v26 = vpop.f32.mrf.mxu0 }
  0xd4   : > { %v1147_v17 = vpop.permute.xlu2 %1146 }
  0xd5   : > { %v1148_v6 = vsel %vm686_vm5, %v1147_v17, %v4002_v41 }
  0xd7   : > { %v737_v18 = vpop.permute.xlu0 %736  ;;  %v959_v21 = vpop.permute.xlu1 %958 }
  0xd8   : > { %v738_v20 = vsel %vm686_vm5, %v737_v18, %v3876_v4  ;;  %v960_v22 = vsel %vm686_vm5, %v959_v21, %v3951_v25  ;;  %v586_v18 = vld [vmem:[%s6951_s2 + $0x8] sm:$0xff] }
  0xd9   : > { %741 = vrot.lane.b32.xlu2 %v738_v20, %s6832_s28  ;;  %964 = vrot.lane.b32.xlu0 %v960_v22, %s6832_s28  ;;  %v591_v20 = vld [vmem:[%s6951_s2 + $0x30] sm:$0xff]  ;;  %v592_v22 = vld [vmem:[%s6951_s2 + $0x38] sm:$0xff] }
  0xdb   : > { %v576_v36 = vpop.f32.mrf.mxu0 }
  0xdc   : > { %v1281_v23 = vpop.permute.xlu2 %1280 }
  0xdd   : > { %v1282_v24 = vsel %vm686_vm5, %v1281_v23, %v4013_v44 }
  0xde   : > { %1286 = vrot.lane.b32.xlu1 %v1282_v24, %s6832_s28 }
  0xdf   : > { %v865_v28 = vpop.permute.xlu0 %864  ;;  %v1053_v32 = vpop.permute.xlu1 %1052 }
  0xe0   : > { %v1054_v33 = vsel %vm686_vm5, %v1053_v32, %v3981_v34  ;;  %v866_v17 = vsel %vm686_vm5, %v865_v28, %v3967_v29  ;;  %v587_v28 = vld [vmem:[%s6951_s2 + $0x10] sm:$0xff] }
  0xe1   : > { %1057 = vrot.lane.b32.xlu0 %v1054_v33, %s6832_s28  ;;  %v589_v33 = vld [vmem:[%s6951_s2 + $0x20] sm:$0xff] }
  0xe3   : > { %v579_v47 = vpop.f32.mrf.mxu0 }
  0xe4   : > { %v1332_v10 = vpop.permute.xlu2 %1331 }
  0xe5   : > { %v1333_v13 = vsel %vm686_vm5, %v1332_v10, %v4060_v57 }
  0xe6   : > { %695 = vrot.lane.b32.xlu1 %v692_v35, %s6832_s28 }
  0xe7   : > { %v914_v37 = vpop.permute.xlu0 %913  ;;  %v1144_v40 = vpop.permute.xlu1 %1143 }
  0xe8   : > { %v915_v38 = vsel %vm686_vm5, %v914_v37, %v3919_v16  ;;  %v1145_v42 = vsel %vm686_vm5, %v1144_v40, %v3997_v39  ;;  %v590_v37 = vld [vmem:[%s6951_s2 + $0x28] sm:$0xff]  ;;  %s6994_s2 = smov 113  }
  0xe9   : > { %918 = vrot.lane.b32.xlu2 %v915_v38, %s6832_s28  ;;  %1149 = vrot.lane.b32.xlu0 %v1145_v42, %s6832_s28 }
  0xeb   : > { %v582_v55 = vpop.f32.mrf.mxu0 }
  0xec   : > { %630 = vmatpush.msra.mxu1 %v582_v55  ;;  %3306 = vmatpush.msra.mxu2 %v582_v55 }
  0xed   : > { %3307 = vmatpush.msra.mxu3 %v582_v55 }
  0xee   : > { %693 = vrot.lane.b32.xlu1 %v689_v46, %s6832_s28  ;;  %631 = vmatpush.msra.mxu1 %v579_v47 }
  0xef   : > { %v1050_v49 = vpop.permute.xlu0 %1049  ;;  %v1238_v50 = vpop.permute.xlu1 %1237  ;;  %3308 = vmatpush.msra.mxu2 %v579_v47  ;;  %3309 = vmatpush.msra.mxu3 %v579_v47 }
  0xf0   : > { %v1239_v52 = vsel %vm686_vm5, %v1238_v50, %v4025_v48  ;;  %632 = vmatpush.msra.mxu1 %v576_v36  ;;  %v1051_v21 = vsel %vm686_vm5, %v1050_v49, %v4019_v45 }
  0xf1   : > { %1242 = vrot.lane.b32.xlu0 %v1239_v52, %s6832_s28  ;;  %3310 = vmatpush.msra.mxu2 %v576_v36 }
  0xf2   : > { %3311 = vmatpush.msra.mxu3 %v576_v36  ;;  %633 = vmatpush.msra.mxu1 %v573_v26 }
  0xf3   : > { %3312 = vmatpush.msra.mxu2 %v573_v26  ;;  %3110 = vmatmul.msk.f32.vlgmr.msra.gmra.mxu1 %vm593_vm6, %v585_v8 }
  0xf4   : > { %3313 = vmatpush.msra.mxu3 %v573_v26  ;;  %3113 = vmatmul.msk.f32.vlgmr.msra.gmra.mxu2 %vm593_vm6, %v588_v5 }
  0xf5   : > { %3116 = vmatmul.msk.f32.vlgmr.msra.gmra.mxu3 %vm593_vm6, %v591_v20 }
  0xf6   : > { %789 = vrot.lane.b32.xlu1 %v786_v54, %s6832_s28 }
  0xf7   : > { %v1099_v56 = vpop.permute.xlu0 %1098  ;;  %v1329_v60 = vpop.permute.xlu1 %1328 }
  0xf8   : > { %v1100_v59 = vsel %vm686_vm5, %v1099_v56, %v3973_v31  ;;  %v1330_v62 = vsel %vm686_vm5, %v1329_v60, %v4037_v51 }
  0xf9   : > { %1103 = vrot.lane.b32.xlu2 %v1100_v59, %s6832_s28  ;;  %1334 = vrot.lane.b32.xlu0 %v1330_v62, %s6832_s28 }
  0xfb   : > { %3111 = vmatmul.msk.f32.gmra.mxu1 %vm593_vm6, %v586_v18 }
  0xfc   : > { %3114 = vmatmul.msk.f32.gmra.mxu2 %vm593_vm6, %v589_v33 }
  0xfd   : > { %3117 = vmatmul.msk.f32.gmra.mxu3 %vm593_vm6, %v592_v22 }
  0xfe   : > { %966 = vrot.lane.b32.xlu1 %v963_v58, %s6832_s28 }
  0xff   : > { %v1235_v63 = vpop.permute.xlu0 %1234 }
 0x100   : > { %v1236_v24 = vsel %vm686_vm5, %v1235_v63, %v4047_v53 }
 0x103   : > { %3112 = vmatmul.msk.f32.gmra.mxu1 %vm593_vm6, %v587_v28 }
 0x104   : > { %3115 = vmatmul.msk.f32.gmra.mxu2 %vm593_vm6, %v590_v37 }
 0x106   : > { %1151 = vrot.lane.b32.xlu1 %v1148_v6, %s6832_s28 }
 0x107   : > { %v1284_v7 = vpop.permute.xlu0 %1283 }
 0x108   : > { %v1285_v61 = vsel %vm686_vm5, %v1284_v7, %v4007_v43 }
 0x109   : > { %1288 = vrot.lane.b32.xlu2 %v1285_v61, %s6832_s28 }
 0x10e   : > { %1336 = vrot.lane.b32.xlu1 %v1333_v13, %s6832_s28 }
 0x111   : > { %870 = vrot.lane.b32.xlu2 %v866_v17, %s6832_s28 }
 0x119   : > { %1055 = vrot.lane.b32.xlu2 %v1051_v21, %s6832_s28 }
 0x120   : > { %v740_v23 = vpop.permute.xlu1 %739 }
 0x121   : > { %1240 = vrot.lane.b32.xlu2 %v1236_v24, %s6832_s28  ;;  %v743_v26 = vsel %vm686_vm5, %v740_v23, %v3873_v3 }
 0x122   : > { %747 = vrot.lane.b32.xlu0 %v743_v26, %s6840_s20 }
 0x129   : > { %755 = vrot.lane.b32.xlu2 %v743_v26, %s6834_s7 }
 0x130   : > { %v917_v32 = vpop.permute.xlu1 %916 }
 0x131   : > { %v920_v3 = vsel %vm686_vm5, %v917_v32, %v3916_v15 }
 0x132   : > { %932 = vrot.lane.b32.xlu2 %v920_v3, %s6834_s7 }
 0x133   : > { %v742_v35 = vpop.permute.xlu2 %741 }
 0x134   : > { %v744_v36 = vsel %vm686_vm5, %v742_v35, %v3876_v4 }
 0x135   : > { %757 = vrot.lane.b32.xlu0 %v744_v36, %s6834_s7  ;;  %749 = vrot.lane.b32.xlu1 %v744_v36, %s6840_s20 }
 0x13b   : > { %v788_v47 = vpop.permute.xlu0 %787 }
 0x13d   : > { %924 = vrot.lane.b32.xlu0 %v920_v3, %s6840_s20 }
 0x140   : > { %v1102_v15 = vpop.permute.xlu1 %1101 }
 0x141   : > { %v1105_v38 = vsel %vm686_vm5, %v1102_v15, %v3970_v30 }
 0x142   : > { %1117 = vrot.lane.b32.xlu2 %v1105_v38, %s6834_s7 }
 0x143   : > { %v919_v40 = vpop.permute.xlu2 %918  ;;  %v873_v52 = vpop.permute.xlu0 %872 }
 0x144   : > { %v921_v4 = vsel %vm686_vm5, %v919_v40, %v3919_v16  ;;  %v875_v59 = vsel %vm686_vm5, %v873_v52, %v3932_v19 }
 0x145   : > { %934 = vrot.lane.b32.xlu0 %v921_v4, %s6834_s7  ;;  %926 = vrot.lane.b32.xlu1 %v921_v4, %s6840_s20 }
 0x14b   : > { %v965_v55 = vpop.permute.xlu0 %964 }
 0x14d   : > { %1109 = vrot.lane.b32.xlu0 %v1105_v38, %s6840_s20 }
 0x150   : > { %v1287_v42 = vpop.permute.xlu1 %1286 }
 0x151   : > { %v1290_v46 = vsel %vm686_vm5, %v1287_v42, %v4013_v44  ;;  %v791_v44 = vsel %vm686_vm5, %v788_v47, %v3897_v11 }
 0x152   : > { %1302 = vrot.lane.b32.xlu2 %v1290_v46, %s6834_s7 }
 0x153   : > { %v1104_v30 = vpop.permute.xlu2 %1103  ;;  %v1058_v62 = vpop.permute.xlu0 %1057 }
 0x154   : > { %v1106_v49 = vsel %vm686_vm5, %v1104_v30, %v3973_v31  ;;  %v1060_v6 = vsel %vm686_vm5, %v1058_v62, %v3981_v34 }
 0x155   : > { %1119 = vrot.lane.b32.xlu0 %v1106_v49, %s6834_s7  ;;  %1111 = vrot.lane.b32.xlu1 %v1106_v49, %s6840_s20 }
 0x158   : > { %v696_v16 = vpop.permute.xlu1 %695 }
 0x159   : > { %v698_v50 = vsel %vm686_vm5, %v696_v16, %v3888_v9 }
 0x15a   : > { %703 = vrot.lane.b32.xlu2 %v698_v50, %s6840_s20 }
 0x15b   : > { %v1150_v7 = vpop.permute.xlu0 %1149 }
 0x15c   : > { %v1153_v8 = vsel %vm686_vm5, %v1150_v7, %v3997_v39 }
 0x15d   : > { %1294 = vrot.lane.b32.xlu0 %v1290_v46, %s6840_s20 }
 0x160   : > { %v694_v56 = vpop.permute.xlu1 %693 }
 0x161   : > { %v697_v60 = vsel %vm686_vm5, %v694_v56, %v3913_v14 }
 0x162   : > { %795 = vrot.lane.b32.xlu2 %v791_v44, %s6840_s20 }
 0x163   : > { %v1289_v54 = vpop.permute.xlu2 %1288  ;;  %v1243_v17 = vpop.permute.xlu0 %1242 }
 0x164   : > { %v1291_v31 = vsel %vm686_vm5, %v1289_v54, %v4007_v43  ;;  %v968_v43 = vsel %vm686_vm5, %v965_v55, %v3951_v25  ;;  %v1245_v20 = vsel %vm686_vm5, %v1243_v17, %v4025_v48 }
 0x165   : > { %1304 = vrot.lane.b32.xlu0 %v1291_v31, %s6834_s7  ;;  %1296 = vrot.lane.b32.xlu1 %v1291_v31, %s6840_s20 }
 0x168   : > { %v790_v58 = vpop.permute.xlu1 %789 }
 0x169   : > { %v792_v63 = vsel %vm686_vm5, %v790_v58, %v3901_v12 }
 0x16a   : > { %880 = vrot.lane.b32.xlu2 %v875_v59, %s6840_s20 }
 0x16b   : > { %v871_v5 = vpop.permute.xlu2 %870  ;;  %v1335_v23 = vpop.permute.xlu0 %1334 }
 0x16c   : > { %v874_v61 = vsel %vm686_vm5, %v871_v5, %v3967_v29  ;;  %v1338_v24 = vsel %vm686_vm5, %v1335_v23, %v4037_v51 }
 0x16d   : > { %709 = vrot.lane.b32.xlu0 %v697_v60, %s6834_s7  ;;  %711 = vrot.lane.b32.xlu1 %v698_v50, %s6834_s7 }
 0x170   : > { %v967_v13 = vpop.permute.xlu1 %966  ;;  %v4265_v40 = vpop.f32.mrf.mxu1 }
 0x171   : > { %v969_v18 = vsel %vm686_vm5, %v967_v13, %v3956_v27  ;;  %v1404_v30 = vrot.slane %v4265_v40, 7  ;;  %v1410_v7 = vrot.slane %v4265_v40, 1 }
 0x172   : > { %972 = vrot.lane.b32.xlu2 %v968_v43, %s6840_s20 }
 0x173   : > { %v1056_v10 = vpop.permute.xlu2 %1055 }
 0x174   : > { %v1059_v22 = vsel %vm686_vm5, %v1056_v10, %v4019_v45 }
 0x175   : > { %797 = vrot.lane.b32.xlu0 %v792_v63, %s6840_s20  ;;  %803 = vrot.lane.b32.xlu1 %v791_v44, %s6834_s7 }
 0x177   : > { %v4268_v4 = vpop.f32.mrf.mxu2 }
 0x178   : > { %v1152_v26 = vpop.permute.xlu1 %1151  ;;  %v4278_v47 = vpop.f32.mrf.mxu1 }
 0x179   : > { %v1154_v32 = vsel %vm686_vm5, %v1152_v26, %v4002_v41  ;;  %v1405_v49 = vrot.slane %v4278_v47, 7  ;;  %v4291_v44 = vpop.f32.mrf.mxu3 }
 0x17a   : > { %1065 = vrot.lane.b32.xlu2 %v1060_v6, %s6840_s20 }
 0x17b   : > { %v1241_v21 = vpop.permute.xlu2 %1240  ;;  %v1407_v52 = vsel %vm674_vm0, %v1405_v49, %v1404_v30  ;;  %v4317_v58 = vsel %vm674_vm0, %v1404_v30, %v1405_v49  ;;  %v1956_v30 = vrot.slane %v4291_v44, 1 }
 0x17c   : > { %v1244_v3 = vsel %vm686_vm5, %v1241_v21, %v4047_v53  ;;  %v4296_v54 = vsel %vm664_vm3, %v1407_v52, 0.0 }
 0x17d   : > { %886 = vrot.lane.b32.xlu0 %v874_v61, %s6834_s7  ;;  %888 = vrot.lane.b32.xlu1 %v875_v59, %s6834_s7 }
 0x180   : > { %v1337_v36 = vpop.permute.xlu1 %1336 }
 0x181   : > { %v1339_v15 = vsel %vm686_vm5, %v1337_v36, %v4060_v57  ;;  %v4309_v59 = vpop.f32.mrf.mxu3 }
 0x182   : > { %1157 = vrot.lane.b32.xlu2 %v1153_v8, %s6840_s20  ;;  %6952 = vst [vmem:[#allocation44_spill] sm:$0xff] %v4309_v59  ;;  %v1957_v49 = vrot.slane %v4309_v59, 1 }
 0x183   : > { %v4240_v28 = vpop.permute.xlu2 %755 }
 0x184   : > { %v1959_v41 = vsel %vm681_vm1, %v1957_v49, %v1956_v30 }
 0x185   : > { %974 = vrot.lane.b32.xlu0 %v969_v18, %s6840_s20  ;;  %980 = vrot.lane.b32.xlu1 %v968_v43, %s6834_s7  ;;  %v1950_v43 = vrot.slane %v4291_v44, 7 }
 0x18a   : > { %1250 = vrot.lane.b32.xlu2 %v1245_v20, %s6840_s20 }
 0x18c   : > { %v4247_v33 = vpop.permute.xlu2 %932 }
 0x18d   : > { %1071 = vrot.lane.b32.xlu0 %v1059_v22, %s6834_s7  ;;  %1073 = vrot.lane.b32.xlu1 %v1060_v6, %s6834_s7 }
 0x192   : > { %1342 = vrot.lane.b32.xlu2 %v1338_v24, %s6840_s20 }
 0x194   : > { %v4254_v35 = vpop.permute.xlu0 %747 }
 0x195   : > { %1159 = vrot.lane.b32.xlu0 %v1154_v32, %s6840_s20  ;;  %1165 = vrot.lane.b32.xlu1 %v1153_v8, %s6834_s7  ;;  %v4333_v8 = vpop.f32.mrf.mxu1 }
 0x196   : > { %6954 = vst [vmem:[#allocation46_spill] sm:$0xff] %v4333_v8 }
 0x19a   : > { %701 = vrot.lane.b32.xlu2 %v697_v60, %s6840_s20  ;;  %v1951_v60 = vrot.slane %v4309_v59, 7 }
 0x19c   : > { %v4257_v37 = vpop.permute.xlu2 %1117  ;;  %v1953_v6 = vsel %vm674_vm0, %v1951_v60, %v1950_v43 }
 0x19d   : > { %1256 = vrot.lane.b32.xlu0 %v1244_v3, %s6834_s7  ;;  %1258 = vrot.lane.b32.xlu1 %v1245_v20, %s6834_s7  ;;  %v4337_v10 = vsel %vm664_vm3, %v1953_v6, 0.0  ;;  %v1587_v20 = vrot.slane %v4268_v4, 7  ;;  %v4393_v6 = vsel %vm681_vm1, %v1956_v30, %v1957_v49 }
 0x1a2   : > { %805 = vrot.lane.b32.xlu2 %v792_v63, %s6834_s7 }
 0x1a5   : > { %1344 = vrot.lane.b32.xlu0 %v1339_v15, %s6840_s20  ;;  %878 = vrot.lane.b32.xlu1 %v874_v61, %s6840_s20  ;;  %v1411_v61 = vrot.slane %v4278_v47, 1 }
 0x1a7   : > { %v4263_v38 = vpop.permute.xlu0 %757  ;;  %v4303_v55 = vpop.permute.xlu1 %749  ;;  %v4343_v17 = vsel %vm681_vm1, %v1410_v7, %v1411_v61  ;;  %v1413_v21 = vsel %vm681_vm1, %v1411_v61, %v1410_v7 }
 0x1a8   : > { %v4361_v26 = vsel %vm667_vm2, %v1413_v21, 0.0 }
 0x1aa   : > { %982 = vrot.lane.b32.xlu2 %v969_v18, %s6834_s7  ;;  %v1586_v18 = vrot.slane %v4333_v8, 7 }
 0x1ac   : > { %v4270_v42 = vpop.permute.xlu2 %1302  ;;  %v4419_v29 = vsel %vm674_vm0, %v1586_v18, %v1587_v20 }
 0x1ad   : > { %1063 = vrot.lane.b32.xlu1 %v1059_v22, %s6840_s20  ;;  %1647 = vrot.lane.b32.xlu0 %v4268_v4, %s6832_s28 }
 0x1af   : > { %v4275_v46 = vpop.permute.xlu0 %924 }
 0x1b2   : > { %1167 = vrot.lane.b32.xlu2 %v1154_v32, %s6834_s7  ;;  %v1589_v32 = vsel %vm674_vm0, %v1587_v20, %v1586_v18  ;;  %v4435_v18 = vsel %vm667_vm2, %v1959_v41, 0.0 }
 0x1b4   : > { %v4282_v16 = vpop.permute.xlu2 %703 }
 0x1b5   : > { %1248 = vrot.lane.b32.xlu1 %v1244_v3, %s6840_s20  ;;  %1465 = vrot.lane.b32.xlu0 %v4278_v47, %s6832_s28  ;;  %v4369_v3 = vsel %vm674_vm0, %v1950_v43, %v1951_v60 }
 0x1b7   : > { %v4287_v50 = vpop.permute.xlu0 %934  ;;  %v4323_v63 = vpop.permute.xlu1 %926 }
 0x1ba   : > { %1352 = vrot.lane.b32.xlu2 %v1339_v15, %s6834_s7  ;;  %v4375_v15 = vsel %vm664_vm3, %v1589_v32, 0.0 }
 0x1bc   : > { %v4298_v31 = vpop.permute.xlu2 %795 }
 0x1bd   : > { %1350 = vrot.lane.b32.xlu1 %v1338_v24, %s6834_s7  ;;  %1416 = vrot.lane.b32.xlu0 %v4296_v54, %s6832_s28  ;;  %v4357_v24 = vpop.f32.mrf.mxu2 }
 0x1be   : > { %6956 = vst [vmem:[#allocation48_spill] sm:$0xff] %v4357_v24  ;;  %v1768_v61 = vrot.slane %v4357_v24, 7  ;;  %v1774_v14 = vrot.slane %v4357_v24, 1 }
 0x1bf   : > { %v4305_v56 = vpop.permute.xlu0 %1109 }
 0x1c2   : > { %1462 = vrot.lane.b32.xlu2 %v4265_v40, %s6832_s28 }
 0x1c4   : > { %v4313_v62 = vpop.permute.xlu2 %880 }
 0x1c5   : > { %2011 = vrot.lane.b32.xlu0 %v4309_v59, %s6832_s28  ;;  %1419 = vrot.lane.b32.xlu1 %v4317_v58, %s6832_s28  ;;  %v4389_v43 = vpop.f32.mrf.mxu2 }
 0x1c6   : > { %6960 = vst [vmem:[#allocation52_spill] sm:$0xff] %v4389_v43  ;;  %v1769_v7 = vrot.slane %v4389_v43, 7  ;;  %v1775_v41 = vrot.slane %v4389_v43, 1 }
 0x1c7   : > { %v4325_v5 = vpop.permute.xlu0 %1119  ;;  %v4353_v22 = vpop.permute.xlu1 %1111 }
 0x1c8   : > { %6953 = vst [vmem:[#allocation45_spill] sm:$0xff] %v4325_v5  ;;  %v1771_v53 = vsel %vm674_vm0, %v1769_v7, %v1768_v61 }
 0x1c9   : > { %v4413_v45 = vsel %vm664_vm3, %v1771_v53, 0.0  ;;  %v1592_v53 = vrot.slane %v4333_v8, 1 }
 0x1ca   : > { %2008 = vrot.lane.b32.xlu2 %v4291_v44, %s6832_s28  ;;  %6964 = vst [vmem:[#allocation56_spill] sm:$0xff] %v4413_v45 }
 0x1cc   : > { %v4339_v13 = vpop.permute.xlu2 %972 }
 0x1cd   : > { %6955 = vst [vmem:[#allocation47_spill] sm:$0xff] %v4339_v13  ;;  %1962 = vrot.lane.b32.xlu0 %v4337_v10, %s6832_s28  ;;  %1510 = vrot.lane.b32.xlu1 %v4343_v17, %s6832_s28 }
 0x1cf   : > { %v4355_v23 = vpop.permute.xlu0 %1294 }
 0x1d2   : > { %1513 = vrot.lane.b32.xlu2 %v4361_v26, %s6832_s28 }
 0x1d4   : > { %v4371_v36 = vpop.permute.xlu2 %1065 }
 0x1d5   : > { %6957 = vst [vmem:[#allocation49_spill] sm:$0xff] %v4371_v36  ;;  %1965 = vrot.lane.b32.xlu1 %v4369_v3, %s6832_s28  ;;  %1598 = vrot.lane.b32.xlu0 %v4375_v15, %s6832_s28  ;;  %v6847_v36 = vstv %s4662_s9 }
 0x1d7   : > { %v4383_v52 = vpop.permute.xlu1 %1296  ;;  %v4385_v60 = vpop.permute.xlu0 %1304 }
 0x1d8   : > { %6958 = vst [vmem:[#allocation50_spill] sm:$0xff] %v4383_v52  ;;  %v6846_v52 = vstv %s4678_s16 }
 0x1d9   : > { %6959 = vst [vmem:[#allocation51_spill] sm:$0xff] %v4385_v60 }
 0x1da   : > { %1826 = vrot.lane.b32.xlu2 %v4357_v24, %s6832_s28 }
 0x1dc   : > { %v4397_v21 = vpop.permute.xlu2 %1157 }
 0x1dd   : > { %6961 = vst [vmem:[#allocation53_spill] sm:$0xff] %v4397_v21  ;;  %2056 = vrot.lane.b32.xlu1 %v4393_v6, %s6832_s28  ;;  %1829 = vrot.lane.b32.xlu0 %v4389_v43, %s6832_s28  ;;  %v4463_v21 = vsel %vm674_vm0, %v1768_v61, %v1769_v7  ;;  %v4483_v7 = vsel %vm681_vm1, %v1774_v14, %v1775_v41 }
 0x1de   : > { %6975 = vst [vmem:[#allocation67_spill] sm:$0xff] %v4483_v7 }
 0x1df   : > { %v4403_v32 = vpop.permute.xlu1 %711  ;;  %v4405_v0 = vpop.permute.xlu0 %709 }
 0x1e0   : > { %6962 = vst [vmem:[#allocation54_spill] sm:$0xff] %v4403_v32 }
 0x1e1   : > { %6963 = vst [vmem:[#allocation55_spill] sm:$0xff] %v4405_v0 }
 0x1e2   : > { %1644 = vrot.lane.b32.xlu2 %v4333_v8, %s6832_s28 }
 0x1e4   : > { %v4415_v57 = vpop.permute.xlu2 %1250 }
 0x1e5   : > { %6965 = vst [vmem:[#allocation57_spill] sm:$0xff] %v4415_v57  ;;  %1780 = vrot.lane.b32.xlu0 %v4413_v45, %s6832_s28  ;;  %1601 = vrot.lane.b32.xlu1 %v4419_v29, %s6832_s28  ;;  %v1593_v57 = vrot.slane %v4268_v4, 1 }
 0x1e7   : > { %v4427_v0 = vpop.permute.xlu1 %803  ;;  %v4429_v27 = vpop.permute.xlu0 %797  ;;  %v4443_v30 = vsel %vm681_vm1, %v1592_v53, %v1593_v57  ;;  %v1595_v49 = vsel %vm681_vm1, %v1593_v57, %v1592_v53  ;;  %v1777_v53 = vsel %vm681_vm1, %v1775_v41, %v1774_v14 }
 0x1e8   : > { %6966 = vst [vmem:[#allocation58_spill] sm:$0xff] %v4427_v0 }
 0x1e9   : > { %6967 = vst [vmem:[#allocation59_spill] sm:$0xff] %v4429_v27 }
 0x1ea   : > { %2059 = vrot.lane.b32.xlu2 %v4435_v18, %s6832_s28 }
 0x1ec   : > { %v4439_v20 = vpop.permute.xlu2 %1342 }
 0x1ed   : > { %6968 = vst [vmem:[#allocation60_spill] sm:$0xff] %v4439_v20  ;;  %1692 = vrot.lane.b32.xlu1 %v4443_v30, %s6832_s28  ;;  %v4457_v20 = vsel %vm667_vm2, %v1595_v49, 0.0  ;;  %v4477_v49 = vsel %vm667_vm2, %v1777_v53, 0.0 }
 0x1ee   : > { %6974 = vst [vmem:[#allocation66_spill] sm:$0xff] %v4477_v49 }
 0x1ef   : > { %v4449_v27 = vpop.permute.xlu1 %888  ;;  %v4451_v0 = vpop.permute.xlu0 %886 }
 0x1f0   : > { %6969 = vst [vmem:[#allocation61_spill] sm:$0xff] %v4449_v27 }
 0x1f1   : > { %6970 = vst [vmem:[#allocation62_spill] sm:$0xff] %v4451_v0 }
 0x1f2   : > { %1695 = vrot.lane.b32.xlu2 %v4457_v20, %s6832_s28 }
 0x1f4   : > { %v4465_v57 = vpop.permute.xlu2 %701 }
 0x1f5   : > { %6971 = vst [vmem:[#allocation63_spill] sm:$0xff] %v4465_v57  ;;  %1783 = vrot.lane.b32.xlu1 %v4463_v21, %s6832_s28 }
 0x1f7   : > { %v4471_v0 = vpop.permute.xlu1 %980  ;;  %v4473_v27 = vpop.permute.xlu0 %974 }
 0x1f8   : > { %6972 = vst [vmem:[#allocation64_spill] sm:$0xff] %v4471_v0 }
 0x1f9   : > { %6973 = vst [vmem:[#allocation65_spill] sm:$0xff] %v4473_v27 }
 0x1fa   : > { %1877 = vrot.lane.b32.xlu2 %v4477_v49, %s6832_s28 }
 0x1fc   : > { %v4485_v61 = vpop.permute.xlu2 %805 }
 0x1fd   : > { %6976 = vst [vmem:[#allocation68_spill] sm:$0xff] %v4485_v61  ;;  %1874 = vrot.lane.b32.xlu1 %v4483_v7, %s6832_s28 }
 0x1ff   : > { %v4489_v57 = vpop.permute.xlu1 %1073  ;;  %v4491_v0 = vpop.permute.xlu0 %1071 }
 0x200   : > { %6977 = vst [vmem:[#allocation69_spill] sm:$0xff] %v4489_v57 }
 0x201   : > { %6978 = vst [vmem:[#allocation70_spill] sm:$0xff] %v4491_v0 }
 0x204   : > { %v4493_v27 = vpop.permute.xlu2 %982 }
 0x205   : > { %6979 = vst [vmem:[#allocation71_spill] sm:$0xff] %v4493_v27 }
 0x207   : > { %v4495_v53 = vpop.permute.xlu1 %1165  ;;  %v4497_v2 = vpop.permute.xlu0 %1159 }
 0x208   : > { %6980 = vst [vmem:[#allocation72_spill] sm:$0xff] %v4495_v53 }
 0x209   : > { %6981 = vst [vmem:[#allocation73_spill] sm:$0xff] %v4497_v2 }
 0x20c   : > { %v4499_v32 = vpop.permute.xlu2 %1167 }
 0x20d   : > { %6982 = vst [vmem:[#allocation74_spill] sm:$0xff] %v4499_v32 }
 0x20f   : > { %v4501_v1 = vpop.permute.xlu1 %1258  ;;  %v4503_v14 = vpop.permute.xlu0 %1256 }
 0x210   : > { %6983 = vst [vmem:[#allocation75_spill] sm:$0xff] %v4501_v1 }
 0x211   : > { %6984 = vst [vmem:[#allocation76_spill] sm:$0xff] %v4503_v14 }
 0x214   : > { %v4505_v41 = vpop.permute.xlu2 %1352 }
 0x215   : > { %6985 = vst [vmem:[#allocation77_spill] sm:$0xff] %v4505_v41 }
 0x217   : > { %v4507_v61 = vpop.permute.xlu1 %878  ;;  %v4509_v60 = vpop.permute.xlu0 %1344 }
 0x218   : > { %6986 = vst [vmem:[#allocation78_spill] sm:$0xff] %v4507_v61  ;;  %v768_v61 = vstv %s4654_s4  ;;  %s4716_s4 = sld [smem:[#allocation2 + $0x1]] }
 0x219   : > { %6987 = vst [vmem:[#allocation79_spill] sm:$0xff] %v4509_v60 }
 0x21c   : > { %v1463_v57 = vpop.permute.xlu2 %1462 }
 0x21d   : > { %v1464_v27 = vsel %vm686_vm5, %v1463_v57, %v4265_v40 }
 0x21e   : > { %1468 = vrot.lane.b32.xlu1 %v1464_v27, %s6832_s28  ;;  %6992 = sst [smem:[#allocation83_spill]] %s4716_s4 }
 0x21f   : > { %v4514_v53 = vpop.permute.xlu1 %1063  ;;  %v1648_v2 = vpop.permute.xlu0 %1647 }
 0x220   : > { %6988 = vst [vmem:[#allocation80_spill] sm:$0xff] %v4514_v53  ;;  %v1649_v1 = vsel %vm686_vm5, %v1648_v2, %v4268_v4 }
 0x221   : > { %1652 = vrot.lane.b32.xlu2 %v1649_v1, %s6832_s28 }
 0x224   : > { %v2009_v14 = vpop.permute.xlu2 %2008 }
 0x225   : > { %v2010_v41 = vsel %vm686_vm5, %v2009_v14, %v4291_v44 }
 0x226   : > { %2014 = vrot.lane.b32.xlu1 %v2010_v41, %s6832_s28 }
 0x227   : > { %v4522_v60 = vpop.permute.xlu1 %1248  ;;  %v1466_v32 = vpop.permute.xlu0 %1465 }
 0x228   : > { %6989 = vst [vmem:[#allocation81_spill] sm:$0xff] %v4522_v60  ;;  %v1467_v27 = vsel %vm686_vm5, %v1466_v32, %v4278_v47 }
 0x229   : > { %1470 = vrot.lane.b32.xlu2 %v1467_v27, %s6832_s28 }
 0x22c   : > { %v1514_v57 = vpop.permute.xlu2 %1513 }
 0x22d   : > { %v1515_v2 = vsel %vm686_vm5, %v1514_v57, %v4361_v26 }
 0x22e   : > { %1518 = vrot.lane.b32.xlu1 %v1515_v2, %s6832_s28 }
 0x22f   : > { %v4530_v1 = vpop.permute.xlu1 %1350  ;;  %v1417_v53 = vpop.permute.xlu0 %1416 }
 0x230   : > { %6990 = vst [vmem:[#allocation82_spill] sm:$0xff] %v4530_v1  ;;  %v1418_v14 = vsel %vm686_vm5, %v1417_v53, %v4296_v54 }
 0x231   : > { %1422 = vrot.lane.b32.xlu2 %v1418_v14, %s6832_s28 }
 0x234   : > { %v1827_v41 = vpop.permute.xlu2 %1826 }
 0x235   : > { %v1828_v32 = vsel %vm686_vm5, %v1827_v41, %v4357_v24 }
 0x236   : > { %1832 = vrot.lane.b32.xlu1 %v1828_v32, %s6832_s28 }
 0x237   : > { %v2012_v27 = vpop.permute.xlu0 %2011  ;;  %v1420_v60 = vpop.permute.xlu1 %1419 }
 0x238   : > { %v2013_v57 = vsel %vm686_vm5, %v2012_v27, %v4309_v59  ;;  %v1421_v2 = vsel %vm686_vm5, %v1420_v60, %v4317_v58 }
 0x239   : > { %2016 = vrot.lane.b32.xlu2 %v2013_v57, %s6832_s28  ;;  %1424 = vrot.lane.b32.xlu0 %v1421_v2, %s6832_s28 }
 0x23c   : > { %v1645_v53 = vpop.permute.xlu2 %1644 }
 0x23d   : > { %v1646_v14 = vsel %vm686_vm5, %v1645_v53, %v4333_v8 }
 0x23e   : > { %1650 = vrot.lane.b32.xlu1 %v1646_v14, %s6832_s28 }
 0x23f   : > { %v1963_v41 = vpop.permute.xlu0 %1962  ;;  %v1511_v32 = vpop.permute.xlu1 %1510 }
 0x240   : > { %v1964_v1 = vsel %vm686_vm5, %v1963_v41, %v4337_v10  ;;  %v1512_v27 = vsel %vm686_vm5, %v1511_v32, %v4343_v17 }
 0x241   : > { %1968 = vrot.lane.b32.xlu2 %v1964_v1, %s6832_s28  ;;  %1516 = vrot.lane.b32.xlu0 %v1512_v27, %s6832_s28 }
 0x244   : > { %v2060_v60 = vpop.permute.xlu2 %2059 }
 0x245   : > { %v2061_v57 = vsel %vm686_vm5, %v2060_v60, %v4435_v18 }
 0x246   : > { %2064 = vrot.lane.b32.xlu1 %v2061_v57, %s6832_s28 }
 0x247   : > { %v1966_v2 = vpop.permute.xlu1 %1965  ;;  %v1599_v53 = vpop.permute.xlu0 %1598 }
 0x248   : > { %v1967_v14 = vsel %vm686_vm5, %v1966_v2, %v4369_v3  ;;  %v1600_v41 = vsel %vm686_vm5, %v1599_v53, %v4375_v15 }
 0x249   : > { %1604 = vrot.lane.b32.xlu2 %v1600_v41, %s6832_s28  ;;  %1970 = vrot.lane.b32.xlu0 %v1967_v14, %s6832_s28 }
 0x24c   : > { %v1696_v1 = vpop.permute.xlu2 %1695 }
 0x24d   : > { %v1697_v32 = vsel %vm686_vm5, %v1696_v1, %v4457_v20 }
 0x24e   : > { %1700 = vrot.lane.b32.xlu1 %v1697_v32, %s6832_s28 }
 0x24f   : > { %v2057_v27 = vpop.permute.xlu1 %2056  ;;  %v1830_v60 = vpop.permute.xlu0 %1829 }
 0x250   : > { %v2058_v57 = vsel %vm686_vm5, %v2057_v27, %v4393_v6  ;;  %v1831_v2 = vsel %vm686_vm5, %v1830_v60, %v4389_v43 }
 0x251   : > { %1834 = vrot.lane.b32.xlu2 %v1831_v2, %s6832_s28  ;;  %2062 = vrot.lane.b32.xlu0 %v2058_v57, %s6832_s28 }
 0x254   : > { %v1878_v53 = vpop.permute.xlu2 %1877 }
 0x255   : > { %v1879_v14 = vsel %vm686_vm5, %v1878_v53, %v4477_v49 }
 0x256   : > { %1882 = vrot.lane.b32.xlu1 %v1879_v14, %s6832_s28 }
 0x257   : > { %v1781_v41 = vpop.permute.xlu0 %1780  ;;  %v1602_v1 = vpop.permute.xlu1 %1601 }
 0x258   : > { %v1782_v32 = vsel %vm686_vm5, %v1781_v41, %v4413_v45  ;;  %v1603_v27 = vsel %vm686_vm5, %v1602_v1, %v4419_v29 }
 0x259   : > { %1786 = vrot.lane.b32.xlu2 %v1782_v32, %s6832_s28  ;;  %1606 = vrot.lane.b32.xlu0 %v1603_v27, %s6832_s28 }
 0x25f   : > { %v1693_v60 = vpop.permute.xlu1 %1692 }
 0x260   : > { %v1694_v57 = vsel %vm686_vm5, %v1693_v60, %v4443_v30 }
 0x261   : > { %1698 = vrot.lane.b32.xlu0 %v1694_v57, %s6832_s28 }
 0x267   : > { %v1784_v2 = vpop.permute.xlu1 %1783 }
 0x268   : > { %v1785_v53 = vsel %vm686_vm5, %v1784_v2, %v4463_v21 }
 0x269   : > { %1788 = vrot.lane.b32.xlu0 %v1785_v53, %s6832_s28 }
 0x26f   : > { %v1875_v14 = vpop.permute.xlu1 %1874 }
 0x270   : > { %v1876_v41 = vsel %vm686_vm5, %v1875_v14, %v4483_v7 }
 0x271   : > { %1880 = vrot.lane.b32.xlu0 %v1876_v41, %s6832_s28  ;;  %s4698_s28 = sld [smem:[#allocation2 + $0x84]] }
 0x27b   : > { %v1653_v1 = vpop.permute.xlu2 %1652 }
 0x27c   : > { %v1655_v32 = vsel %vm686_vm5, %v1653_v1, %v4268_v4 }
 0x27d   : > { %1660 = vrot.lane.b32.xlu1 %v1655_v32, %s6840_s20 }
 0x283   : > { %v1471_v27 = vpop.permute.xlu2 %1470 }
 0x284   : > { %v1473_v60 = vsel %vm686_vm5, %v1471_v27, %v4278_v47 }
 0x285   : > { %1478 = vrot.lane.b32.xlu1 %v1473_v60, %s6840_s20 }
 0x28b   : > { %v1423_v27 = vpop.permute.xlu2 %1422 }
 0x290   : > { %v1469_v57 = vpop.permute.xlu1 %1468 }
 0x291   : > { %v1472_v2 = vsel %vm686_vm5, %v1469_v57, %v4265_v40  ;;  %v1426_v57 = vsel %vm686_vm5, %v1423_v27, %v4296_v54 }
 0x292   : > { %1484 = vrot.lane.b32.xlu2 %v1472_v2, %s6834_s7  ;;  %1476 = vrot.lane.b32.xlu0 %v1472_v2, %s6840_s20 }
 0x298   : > { %v2015_v53 = vpop.permute.xlu1 %2014 }
 0x299   : > { %v2018_v14 = vsel %vm686_vm5, %v2015_v53, %v4291_v44 }
 0x29a   : > { %1668 = vrot.lane.b32.xlu0 %v1655_v32, %s6834_s7  ;;  %2030 = vrot.lane.b32.xlu2 %v2018_v14, %s6834_s7 }
 0x2a0   : > { %v1519_v32 = vpop.permute.xlu1 %1518 }
 0x2a2   : > { %2022 = vrot.lane.b32.xlu0 %v2018_v14, %s6840_s20 }
 0x2a8   : > { %v1833_v14 = vpop.permute.xlu1 %1832 }
 0x2aa   : > { %1486 = vrot.lane.b32.xlu0 %v1473_v60, %s6834_s7  ;;  %v1521_v60 = vsel %vm686_vm5, %v1519_v32, %v4361_v26 }
 0x2ab   : > { %v1425_v41 = vpop.permute.xlu0 %1424 }
 0x2ac   : > { %v1427_v1 = vsel %vm686_vm5, %v1425_v41, %v4317_v58  ;;  %v1836_v41 = vsel %vm686_vm5, %v1833_v14, %v4357_v24 }
 0x2ad   : > { %1440 = vrot.lane.b32.xlu1 %v1427_v1, %s6834_s7  ;;  %1432 = vrot.lane.b32.xlu2 %v1427_v1, %s6840_s20  ;;  %v2017_v1 = vpop.permute.xlu2 %2016 }
 0x2ae   : > { %v2019_v27 = vsel %vm686_vm5, %v2017_v1, %v4309_v59  ;;  %v3442_v59 = vld [vmem:[%s3867_s15 + $0x8] sm:$0xff] }
 0x2af   : > { %v770_v5 = vmul.f32 %v3442_v59, %v768_v61 }
 0x2b2   : > { %1438 = vrot.lane.b32.xlu0 %v1426_v57, %s6834_s7 }
 0x2b3   : > { %v1517_v2 = vpop.permute.xlu0 %1516 }
 0x2b4   : > { %v1520_v53 = vsel %vm686_vm5, %v1517_v2, %v4343_v17  ;;  %v1651_v2 = vpop.permute.xlu1 %1650 }
 0x2b5   : > { %1532 = vrot.lane.b32.xlu1 %v1520_v53, %s6834_s7  ;;  %1524 = vrot.lane.b32.xlu2 %v1520_v53, %s6840_s20 }
 0x2ba   : > { %1526 = vrot.lane.b32.xlu0 %v1521_v60, %s6840_s20 }
 0x2bb   : > { %v1971_v32 = vpop.permute.xlu0 %1970 }
 0x2bc   : > { %v1973_v53 = vsel %vm686_vm5, %v1971_v32, %v4369_v3  ;;  %v2065_v32 = vpop.permute.xlu1 %2064 }
 0x2bd   : > { %1430 = vrot.lane.b32.xlu1 %v1426_v57, %s6840_s20  ;;  %1534 = vrot.lane.b32.xlu2 %v1521_v60, %s6834_s7  ;;  %v1654_v57 = vsel %vm686_vm5, %v1651_v2, %v4333_v8  ;;  %v1969_v60 = vpop.permute.xlu2 %1968 }
 0x2be   : > { %v1972_v1 = vsel %vm686_vm5, %v1969_v60, %v4337_v10 }
 0x2c2   : > { %1840 = vrot.lane.b32.xlu0 %v1836_v41, %s6840_s20 }
 0x2c3   : > { %v2063_v14 = vpop.permute.xlu0 %2062 }
 0x2c5   : > { %2024 = vrot.lane.b32.xlu1 %v2019_v27, %s6840_s20  ;;  %1848 = vrot.lane.b32.xlu2 %v1836_v41, %s6834_s7  ;;  %v2066_v41 = vsel %vm686_vm5, %v2063_v14, %v4393_v6 }
 0x2ca   : > { %2032 = vrot.lane.b32.xlu0 %v2019_v27, %s6834_s7  ;;  %v1605_v27 = vpop.permute.xlu2 %1604 }
 0x2cb   : > { %v1607_v2 = vpop.permute.xlu0 %1606 }
 0x2cc   : > { %v1609_v60 = vsel %vm686_vm5, %v1607_v2, %v4419_v29 }
 0x2cd   : > { %1986 = vrot.lane.b32.xlu1 %v1973_v53, %s6834_s7  ;;  %1666 = vrot.lane.b32.xlu2 %v1654_v57, %s6834_s7 }
 0x2d2   : > { %1658 = vrot.lane.b32.xlu0 %v1654_v57, %s6840_s20  ;;  %v2067_v57 = vsel %vm686_vm5, %v2065_v32, %v4435_v18 }
 0x2d3   : > { %v1699_v14 = vpop.permute.xlu0 %1698 }
 0x2d4   : > { %v1702_v2 = vsel %vm686_vm5, %v1699_v14, %v4443_v30 }
 0x2d5   : > { %2078 = vrot.lane.b32.xlu1 %v2066_v41, %s6834_s7  ;;  %1978 = vrot.lane.b32.xlu2 %v1973_v53, %s6840_s20  ;;  %v4652_v53 = vpop.permute.xlu2 %1834 }
 0x2da   : > { %1984 = vrot.lane.b32.xlu0 %v1972_v1, %s6834_s7 }
 0x2dd   : > { %1976 = vrot.lane.b32.xlu1 %v1972_v1, %s6840_s20  ;;  %2070 = vrot.lane.b32.xlu2 %v2066_v41, %s6840_s20  ;;  %v1608_v41 = vsel %vm686_vm5, %v1605_v27, %v4375_v15  ;;  %v6991_v1 = vlaneseq  ;;  %v4687_v27 = vpop.permute.xlu2 %1786 }
 0x2df   : > { %v4674_v32 = vand.u32 127, %v6991_v1  ;;  %v764_v1 = vstv %s4650_s18  ;;  %s4714_s18 = sld [smem:[#allocation2 + $0x384]] }
 0x2e1   : > { %vm668_vm7 = vcmp.ge.s32.totalorder %v4674_v32, 1  ;;  %vm669_vm8 = vcmp.le.s32.totalorder %v4674_v32, 14 }
 0x2e2   : > { %2072 = vrot.lane.b32.xlu0 %v2067_v57, %s6840_s20  ;;  %v753_v14 = vsel %vm668_vm7, %v4254_v35, 0.0  ;;  %v3441_v35 = vld [vmem:[%s3867_s15] sm:$0xff]  ;;  %v761_v51 = vsel %vm669_vm8, %v4240_v28, 0.0  ;;  %v754_v12 = vsel %vm668_vm7, %v4303_v55, 0.0  ;;  %v3443_v55 = vld [vmem:[%s3867_s15 + $0x10] sm:$0xff]  ;;  %v1123_v59 = vsel %vm669_vm8, %v4257_v37, 0.0 }
 0x2e3   : > { %v769_v24 = vmul.f32 %v3441_v35, %v768_v61  ;;  %v765_v8 = vmul.f32 %v764_v1, %v753_v14  ;;  %v938_v14 = vsel %vm669_vm8, %v4247_v33, 0.0  ;;  %v945_v35 = vstv %s4666_s29  ;;  %s4746_s29 = sld [smem:[#allocation2 + $0x381]] }
 0x2e4   : > { %v6995_v33 = vstv %s4648_s17  ;;  %v766_v61 = vmul.f32 %v764_v1, %v754_v12  ;;  %v1497_v12 = vstv %s4683_s19  ;;  %v1130_v1 = vstv %s4691_s5  ;;  %s4805_s19 = sld [smem:[#allocation2 + $0x184]] }
 0x2e5   : > { %1622 = vrot.lane.b32.xlu1 %v1609_v60, %s6834_s7  ;;  %2080 = vrot.lane.b32.xlu2 %v2067_v57, %s6834_s7  ;;  %v1701_v57 = vpop.permute.xlu1 %1700  ;;  %v771_v28 = vadd.f32 %v769_v24, %v765_v8  ;;  %v775_v13 = vmul.f32 %v6995_v33, %v761_v51  ;;  %v6996_v8 = vstv %s4658_s6  ;;  %v1837_v51 = vsel %vm686_vm5, %v4652_v53, %v4389_v43  ;;  %s4818_s5 = sld [smem:[#allocation2 + $0x185]]  ;;  %v7059_v43 = vld [vmem:[#allocation38_spill] sm:$0xff] }
 0x2e6   : > { %v4704_v0 = vsel %vm686_vm5, %v1701_v57, %v4457_v20  ;;  %v4750_v24 = vmul.f32 %v6996_v8, %v938_v14  ;;  %v4772_v53 = vmul.f32 %v6846_v52, %v3888_v9  ;;  %v1545_v9 = vstv %s4714_s18  ;;  %s4837_s18 = sld [smem:[#allocation2 + $0x82]] }
 0x2e7   : > { %v4767_v8 = vadd.f32 %v775_v13, %v771_v28  ;;  %v1451_v13 = vstv %s4698_s28  ;;  %v4792_v28 = vmul.f32 %v6847_v36, %v1123_v59  ;;  %v772_v37 = vadd.f32 %v770_v5, %v766_v61  ;;  %s4813_s28 = sld [smem:[#allocation2 + $0x385]] }
 0x2e8   : > { %v4821_v5 = vmul.f32 %v1451_v13, %v4317_v58  ;;  %v6999_v61 = vstv %s4648_s17  ;;  %s4847_s17 = sld [smem:[#allocation2 + $0x2]] }
 0x2e9   : > { %v6853_v36 = vstv %s4746_s29 }
 0x2ea   : > { %1620 = vrot.lane.b32.xlu0 %v1608_v41, %s6834_s7 }
 0x2eb   : > { %6998 = sst [smem:[#allocation85_spill]] %s4818_s5 }
 0x2ec   : > { %v4731_v57 = vpop.permute.xlu2 %1484  ;;  %7001 = sst [smem:[#allocation86_spill]] %s4837_s18 }
 0x2ed   : > { %1714 = vrot.lane.b32.xlu1 %v1702_v2, %s6834_s7  ;;  %1614 = vrot.lane.b32.xlu2 %v1609_v60, %s6840_s20  ;;  %s4707_s7 = sld [smem:[#allocation2 + $0x380]]  ;;  %v4709_v60 = vpop.permute.xlu0 %1788  ;;  %v4782_v14 = vpop.permute.xlu1 %1882 }
 0x2ee   : > { %7003 = sst [smem:[#allocation87_spill]] %s4847_s17 }
 0x2f2   : > { %1708 = vrot.lane.b32.xlu0 %v4704_v0, %s6840_s20  ;;  %s4729_s20 = sld [smem:[#allocation2 + $0x183]] }
 0x2f3   : > { %v6848_v33 = vstv %s4707_s7 }
 0x2f4   : > { %v4803_v52 = vmul.f32 %v6848_v33, %v3897_v11  ;;  %v3445_v11 = vld [vmem:[%s3867_s15 + $0x20] sm:$0xff]  ;;  %v7000_v33 = vstv %s4664_s27  ;;  %v4839_v58 = vpop.permute.xlu2 %2030 }
 0x2f5   : > { %1612 = vrot.lane.b32.xlu1 %v1608_v41, %s6994_s2  ;;  %1706 = vrot.lane.b32.xlu2 %v1702_v2, %s6994_s2  ;;  %v946_v2 = vmul.f32 %v3443_v55, %v945_v35  ;;  %v3444_v55 = vld [vmem:[%s3867_s15 + $0x18] sm:$0xff]  ;;  %v4784_v41 = vpop.permute.xlu0 %1880 }
 0x2f6   : > { %v4775_v48 = vmul.f32 %v3444_v55, %v945_v35  ;;  %v762_v35 = vsel %vm669_vm8, %v4263_v38, 0.0  ;;  %v930_v55 = vsel %vm668_vm7, %v4275_v46, 0.0  ;;  %v1498_v38 = vmul.f32 %v1497_v12, %v4265_v40 }
 0x2f7   : > { %v4816_v46 = vmul.f32 %v3445_v11, %v1130_v1  ;;  %v776_v40 = vmul.f32 %v6999_v61, %v762_v35  ;;  %v1308_v11 = vsel %vm669_vm8, %v4270_v42, 0.0  ;;  %v942_v59 = vmul.f32 %v7000_v33, %v930_v55  ;;  %v3446_v55 = vld [vmem:[%s3867_s15 + $0x28] sm:$0xff] }
 0x2f8   : > { %v4852_v42 = vsel %vm686_vm5, %v4687_v27, %v4413_v45  ;;  %v4855_v33 = vmul.f32 %v1451_v13, %v4296_v54  ;;  %v4860_v61 = vmul.f32 %v3446_v55, %v1130_v1  ;;  %v4875_v54 = vmul.f32 %v6853_v36, %v3951_v25 }
 0x2f9   : > { %v4857_v35 = vadd.f32 %v776_v40, %v772_v37  ;;  %v6859_v37 = vstv %s4739_s3  ;;  %v6857_v1 = vstv %s4757_s8  ;;  %v6863_v40 = vstv %s4786_s21 }
 0x2fa   : > { %1850 = vrot.lane.b32.xlu0 %v1837_v51, %s6997_s11  ;;  %v1791_v25 = vsel %vm686_vm5, %v4709_v60, %v4463_v21  ;;  %v1681_v60 = vmul.f32 %v6857_v1, %v4268_v4  ;;  %v1727_v4 = vstv %s4813_s28  ;;  %s4951_s28 = sld [smem:[#allocation2 + $0x83]] }
 0x2fd   : > { %1842 = vrot.lane.b32.xlu1 %v1837_v51, %s6994_s2  ;;  %1716 = vrot.lane.b32.xlu2 %v4704_v0, %s6997_s11  ;;  %v4824_v51 = vmul.f32 %v1545_v9, %v4343_v17  ;;  %v4827_v0 = vmul.f32 %v1545_v9, %v4361_v26  ;;  %v7002_v26 = vstv %s4722_s1  ;;  %s4968_s1 = sld [smem:[#allocation2 + $0x187]] }
 0x2fe   : > { %v4845_v9 = vmul.f32 %v7002_v26, %v3932_v19  ;;  %v4864_v19 = vmul.f32 %v1497_v12, %v4278_v47  ;;  %v7004_v26 = vstv %s4670_s26  ;;  %v948_v47 = vadd.f32 %v946_v2, %v942_v59 }
 0x2ff   : > { %v4870_v27 = vmul.f32 %v7004_v26, %v1308_v11  ;;  %v931_v12 = vsel %vm668_vm7, %v4323_v63, 0.0  ;;  %v1661_v11 = vpop.permute.xlu1 %1660  ;;  %v1490_v2 = vsel %vm669_vm8, %v4731_v57, 0.0  ;;  %v6858_v63 = vstv %s4805_s19  ;;  %v3447_v26 = vld [vmem:[%s3867_s15 + $0x30] sm:$0xff] }
 0x300   : > { %v4902_v36 = vmul.f32 %v3447_v26, %v6859_v37  ;;  %v1633_v57 = vstv %s4778_s14  ;;  %v1665_v13 = vsel %vm668_vm7, %v1661_v11, 0.0  ;;  %v1504_v37 = vmul.f32 %v6863_v40, %v1490_v2  ;;  %s4930_s14 = sld [smem:[#allocation2 + $0x387]] }
 0x301   : > { %v1115_v11 = vsel %vm668_vm7, %v4305_v56, 0.0  ;;  %v6875_v26 = vstv %s4847_s17  ;;  %7009 = sst [smem:[#allocation90_spill]] %s4951_s28  ;;  %v7010_v56 = vstv %s4818_s5  ;;  %v6874_v40 = vstv %s4888_s12 }
 0x302   : > { %1802 = vrot.lane.b32.xlu0 %v4852_v42, %s6997_s11  ;;  %s4988_s5 = sld [smem:[#allocation2 + $0x287]] }
 0x303   : > { %s5191_s17 = sld [smem:[#allocation2 + $0x86]] }
 0x304   : > { %v1477_v55 = vpop.permute.xlu0 %1476 }
 0x305   : > { %v1482_v59 = vsel %vm668_vm7, %v1477_v55, 0.0  ;;  %1804 = vrot.lane.b32.xlu1 %v1791_v25, %s6997_s11  ;;  %1796 = vrot.lane.b32.xlu2 %v1791_v25, %s6994_s2  ;;  %v708_v55 = vsel %vm668_vm7, %v4282_v16, 0.0  ;;  %v4933_v16 = vadd.f32 %v4750_v24, %v948_v47  ;;  %v939_v24 = vsel %vm669_vm8, %v4287_v50, 0.0 }
 0x306   : > { %v1494_v17 = vmul.f32 %v6858_v63, %v1482_v59  ;;  %v7006_v59 = vstv %s4664_s27  ;;  %v6862_v63 = vstv %s4837_s18  ;;  %s4939_s27 = sld [smem:[#allocation2 + $0x302]]  ;;  %v1677_v47 = vmul.f32 %v7010_v56, %v1665_v13 }
 0x307   : > { %v943_v1 = vmul.f32 %v7006_v59, %v931_v12  ;;  %v4928_v45 = vpop.permute.xlu2 %1432  ;;  %v6868_v50 = vstv %s4879_s24  ;;  %v4971_v13 = vmul.f32 %v1633_v57, %v4419_v29  ;;  %v7011_v59 = vstv %s4685_s30  ;;  %s4994_s18 = sld [smem:[#allocation2 + $0x3]] }
 0x308   : > { %v1500_v25 = vadd.f32 %v1498_v38, %v1494_v17  ;;  %v4944_v38 = vsel %vm686_vm5, %v4782_v14, %v4477_v49  ;;  %v7008_v17 = vstv %s4676_s23  ;;  %v801_v14 = vsel %vm668_vm7, %v4298_v31, 0.0  ;;  %s5133_s24 = sld [smem:[#allocation7 + $0x1]] }
 0x309   : > { %v720_v12 = vmul.f32 %v7008_v17, %v708_v55  ;;  %v4965_v55 = vmul.f32 %v6862_v63, %v3981_v34  ;;  %v4977_v31 = vmul.f32 %v1727_v4, %v4443_v30  ;;  %v4980_v34 = vmul.f32 %v1727_v4, %v4457_v20  ;;  %7035 = sst [smem:[#allocation92_spill]] %s5191_s17 }
 0x30a   : > { %v4955_v2 = vadd.f32 %v1504_v37, %v1500_v25  ;;  %1890 = vrot.lane.b32.xlu0 %v4944_v38, %s6994_s2  ;;  %v949_v37 = vadd.f32 %v4775_v48, %v943_v1  ;;  %v1127_v25 = vmul.f32 %v7011_v59, %v1115_v11  ;;  %v7012_v56 = vstv %s4658_s6  ;;  %s5016_s6 = sld [smem:[#allocation2 + $0x400]] }
 0x30b   : > { %v953_v63 = vmul.f32 %v7012_v56, %v939_v24  ;;  %v1884_v29 = vsel %vm686_vm5, %v4784_v41, %v4483_v7  ;;  %v7013_v1 = vstv %s4700_s0  ;;  %v1683_v20 = vadd.f32 %v1681_v60, %v1677_v47  ;;  %v3448_v24 = vld [vmem:[%s3867_s15 + $0x38] sm:$0xff]  ;;  %s5065_s15 = sld [smem:[#allocation2 + $0x303]] }
 0x30c   : > { %7007 = sst [smem:[#allocation89_spill]] %s4939_s27  ;;  %v1669_v17 = vpop.permute.xlu0 %1668  ;;  %v813_v30 = vmul.f32 %v7013_v1, %v801_v14  ;;  %v2043_v41 = vstv %s4886_s13  ;;  %v5002_v11 = vadd.f32 %v4772_v53, %v720_v12  ;;  %v7014_v59 = vstv %s4739_s3 }
 0x30d   : > { %v1673_v48 = vsel %vm669_vm8, %v1669_v17, 0.0  ;;  %1896 = vrot.lane.b32.xlu1 %v1884_v29, %s6997_s11  ;;  %1888 = vrot.lane.b32.xlu2 %v1884_v29, %s6994_s2  ;;  %v5007_v17 = vmul.f32 %v3448_v24, %v7014_v59  ;;  %v1997_v14 = vstv %s4920_s22  ;;  %v5011_v60 = vmul.f32 %v1633_v57, %v4375_v15  ;;  %s5032_s3 = sld [smem:[#allocation2 + $0x383]] }
 0x30e   : > { %v1687_v4 = vmul.f32 %v6868_v50, %v1673_v48  ;;  %v5013_v47 = vadd.f32 %v953_v63, %v949_v37  ;;  %v1133_v56 = vadd.f32 %v4816_v46, %v1127_v25  ;;  %v2091_v12 = vstv %s4930_s14  ;;  %s5042_s22 = sld [smem:[#allocation2 + $0x101]]  ;;  %v7022_v50 = vld [vmem:[#allocation47_spill] sm:$0xff] }
 0x30f   : > { %v5020_v53 = vpop.permute.xlu2 %1524  ;;  %v1116_v48 = vsel %vm668_vm7, %v4353_v22, 0.0  ;;  %v6879_v15 = vstv %s4939_s27  ;;  %v5030_v63 = vmul.f32 %v6874_v40, %v3997_v39  ;;  %v2044_v46 = vmul.f32 %v2043_v41, %v4291_v44  ;;  %s5048_s13 = sld [smem:[#allocation2 + $0x4]] }
 0x310   : > { %v5018_v29 = vadd.f32 %v1687_v4, %v1683_v20  ;;  %v5036_v57 = vadd.f32 %v4803_v52, %v813_v30  ;;  %v885_v37 = vsel %vm668_vm7, %v4313_v62, 0.0  ;;  %v728_v25 = vstv %s4904_s25  ;;  %v1479_v4 = vpop.permute.xlu1 %1478  ;;  %s5072_s14 = sld [smem:[#allocation2 + $0x401]] }
 0x311   : > { %v5045_v22 = vmul.f32 %v1997_v14, %v4369_v3  ;;  %v6867_v39 = vstv %s4951_s28  ;;  %v6873_v1 = vstv %s4968_s1  ;;  %v5052_v44 = vmul.f32 %v2091_v12, %v4393_v6  ;;  %s5104_s28 = sld [smem:[#allocation2 + $0x104]] }
 0x312   : > { %v5055_v52 = vmul.f32 %v1997_v14, %v4337_v10  ;;  %v5058_v62 = vadd.f32 %v4792_v28, %v1133_v56  ;;  %v7015_v30 = vstv %s4685_s30  ;;  %v1300_v3 = vsel %vm668_vm7, %v4355_v23, 0.0  ;;  %v7017_v56 = vld [vmem:[#allocation50_spill] sm:$0xff]  ;;  %s5089_s30 = sld [smem:[#allocation5]] }
 0x313   : > { %v1128_v20 = vmul.f32 %v7015_v30, %v1116_v48  ;;  %v5068_v24 = vmul.f32 %v2091_v12, %v4435_v18  ;;  %v7016_v10 = vstv %s4716_s4  ;;  %v6871_v28 = vstv %s4988_s5  ;;  %v7018_v18 = vld [vmem:[#allocation40_spill] sm:$0xff]  ;;  %s5230_s4 = sld [smem:[#allocation7 + $0x81]] }
 0x314   : > { %v2023_v6 = vpop.permute.xlu0 %2022  ;;  %v897_v59 = vmul.f32 %v7016_v10, %v885_v37  ;;  %v2036_v14 = vsel %vm669_vm8, %v4839_v58, 0.0  ;;  %v1301_v48 = vsel %vm668_vm7, %v7017_v56, 0.0  ;;  %v6886_v30 = vstv %s4994_s18  ;;  %v7019_v58 = vld [vmem:[#allocation45_spill] sm:$0xff]  ;;  %s5271_s27 = sld [smem:[#allocation2 + $0x402]] }
 0x315   : > { %v2028_v23 = vsel %vm668_vm7, %v2023_v6, 0.0  ;;  %v5087_v12 = vmul.f32 %v6867_v39, %v7018_v18  ;;  %1794 = vrot.lane.b32.xlu1 %v4852_v42, %s6994_s2  ;;  %1898 = vrot.lane.b32.xlu2 %v4944_v38, %s6997_s11  ;;  %v1124_v6 = vsel %vm669_vm8, %v7019_v58, 0.0  ;;  %v7020_v10 = vstv %s4729_s20  ;;  %s5117_s2 = sld [smem:[#allocation2 + $0x206]] }
 0x316   : > { %v2040_v37 = vmul.f32 %v6873_v1, %v2028_v23  ;;  %v1312_v56 = vmul.f32 %v7020_v10, %v1300_v3  ;;  %v1483_v18 = vsel %vm668_vm7, %v1479_v4, 0.0  ;;  %v7021_v23 = vld [vmem:[#allocation44_spill] sm:$0xff]  ;;  %v1134_v42 = vadd.f32 %v4860_v61, %v1128_v20  ;;  %s5126_s11 = sld [smem:[#allocation7]] }
 0x317   : > { %v5107_v39 = vmul.f32 %v2043_v41, %v7021_v23  ;;  %v978_v38 = vsel %vm668_vm7, %v7022_v50, 0.0  ;;  %v2050_v58 = vmul.f32 %v6871_v28, %v2036_v14  ;;  %v5115_v10 = vpop.permute.xlu2 %1534  ;;  %v5120_v4 = vadd.f32 %v4845_v9, %v897_v59  ;;  %v7026_v28 = vld [vmem:[#allocation49_spill] sm:$0xff]  ;;  %s5293_s25 = sld [smem:[#allocation7 + $0x100]] }
 0x318   : > { %v2046_v3 = vadd.f32 %v2044_v46, %v2040_v37  ;;  %v7024_v41 = vstv %s4729_s20  ;;  %v6877_v20 = vstv %s5032_s3  ;;  %v7025_v50 = vstv %s4662_s9  ;;  %s5146_s20 = sld [smem:[#allocation2 + $0x304]] }
 0x319   : > { %v1313_v23 = vmul.f32 %v7024_v41, %v1301_v48  ;;  %v1138_v14 = vmul.f32 %v7025_v50, %v1124_v6  ;;  %v1070_v46 = vsel %vm668_vm7, %v7026_v28, 0.0  ;;  %v7027_v9 = vstv %s4805_s19  ;;  %v7029_v50 = vld [vmem:[#allocation34_spill] sm:$0xff]  ;;  %s5161_s9 = sld [smem:[#allocation7 + $0x2]] }
 0x31a   : > { %v1495_v59 = vmul.f32 %v7027_v9, %v1483_v18  ;;  %v5137_v37 = vadd.f32 %v2050_v58, %v2046_v3  ;;  %v7028_v48 = vstv %s4764_s10  ;;  %v1318_v1 = vadd.f32 %v4902_v36, %v1312_v56  ;;  %v7031_v3 = vld [vmem:[#allocation41_spill] sm:$0xff]  ;;  %v7033_v9 = vld [vmem:[#allocation54_spill] sm:$0xff]  ;;  %s5176_s19 = sld [smem:[#allocation2 + $0x102]] }
 0x31b   : > { %7023 = sst [smem:[#allocation91_spill]] %s5117_s2  ;;  %v990_v41 = vmul.f32 %v7028_v48, %v978_v38  ;;  %v6881_v40 = vstv %s5048_s13  ;;  %v1437_v6 = vsel %vm668_vm7, %v4928_v45, 0.0  ;;  %v5148_v28 = vadd.f32 %v1138_v14, %v1134_v42  ;;  %v7032_v38 = vld [vmem:[#allocation51_spill] sm:$0xff] }
 0x31c   : > { %v7030_v61 = vstv %s4707_s7  ;;  %v5159_v36 = vmul.f32 %v6877_v20, %v7031_v3  ;;  %v1487_v45 = vpop.permute.xlu0 %1486  ;;  %v1082_v56 = vmul.f32 %v6875_v26, %v1070_v46  ;;  %v1319_v42 = vadd.f32 %v5007_v17, %v1313_v23  ;;  %s5169_s7 = sld [smem:[#allocation7 + $0x3]] }
 0x31d   : > { %v5153_v18 = vmul.f32 %v7030_v61, %v7029_v50  ;;  %v1309_v61 = vsel %vm669_vm8, %v7032_v38, 0.0  ;;  %v1491_v14 = vsel %vm669_vm8, %v1487_v45, 0.0  ;;  %v716_v48 = vsel %vm669_vm8, %v7033_v9, 0.0  ;;  %s5325_s17 = sld [smem:[#allocation7 + $0x102]] }
 0x31e   : > { %v1501_v46 = vadd.f32 %v4864_v19, %v1495_v59  ;;  %v1449_v17 = vmul.f32 %v6881_v40, %v1437_v6  ;;  %v7034_v23 = vstv %s4786_s21  ;;  %v5184_v3 = vadd.f32 %v4875_v54, %v990_v41  ;;  %v7037_v19 = vld [vmem:[#allocation53_spill] sm:$0xff]  ;;  %v7038_v6 = vld [vmem:[#allocation35_spill] sm:$0xff]  ;;  %s5201_s21 = sld [smem:[#allocation5 + $0x1]] }
 0x31f   : > { %v1505_v50 = vmul.f32 %v7034_v23, %v1491_v14  ;;  %v5187_v38 = vadd.f32 %v4870_v27, %v1318_v1  ;;  %v6880_v26 = vstv %s5104_s28  ;;  %v7036_v9 = vstv %s4670_s26  ;;  %v5203_v1 = vpop.permute.xlu2 %1848  ;;  %v1441_v41 = vpop.permute.xlu1 %1440  ;;  %s5211_s26 = sld [smem:[#allocation2 + $0x404]] }
 0x320   : > { %v1323_v20 = vmul.f32 %v7036_v9, %v1309_v61  ;;  %v1163_v59 = vsel %vm668_vm7, %v7037_v19, 0.0  ;;  %v7039_v14 = vstv %s4678_s16  ;;  %v5206_v23 = vadd.f32 %v4965_v55, %v1082_v56  ;;  %s5222_s16 = sld [smem:[#allocation7 + $0x80]] }
 0x321   : > { %v723_v54 = vmul.f32 %v7039_v14, %v7038_v6  ;;  %v1507_v27 = vadd.f32 %v1505_v50, %v1501_v46  ;;  %v730_v61 = vmul.f32 %v728_v25, %v716_v48  ;;  %v1445_v19 = vsel %vm669_vm8, %v1441_v41, 0.0  ;;  %v7040_v14 = vld [vmem:[#allocation36_spill] sm:$0xff]  ;;  %v7042_v41 = vld [vmem:[#allocation55_spill] sm:$0xff] }
 0x322   : > { %v5215_v6 = vadd.f32 %v1323_v20, %v1319_v42  ;;  %v7041_v46 = vstv %s4746_s29  ;;  %v1455_v55 = vadd.f32 %v4821_v5, %v1449_v17  ;;  %v1459_v56 = vmul.f32 %v6880_v26, %v1445_v19  ;;  %v7043_v5 = vld [vmem:[#allocation63_spill] sm:$0xff]  ;;  %s5243_s29 = sld [smem:[#allocation7 + $0x82]]  ;;  %v7046_v19 = vld [vmem:[#allocation46_spill] sm:$0xff] }
 0x323   : > { %v5220_v50 = vmul.f32 %v7041_v46, %v7040_v14  ;;  %v1175_v48 = vmul.f32 %v6879_v15, %v1163_v59  ;;  %v1541_v20 = vstv %s5146_s20  ;;  %v1530_v42 = vsel %vm668_vm7, %v5020_v53, 0.0  ;;  %s5252_s20 = sld [smem:[#allocation7 + $0x83]] }
 0x324   : > { %v715_v14 = vsel %vm669_vm8, %v7042_v41, 0.0  ;;  %v707_v17 = vsel %vm668_vm7, %v7043_v5, 0.0  ;;  %v1461_v59 = vadd.f32 %v1459_v56, %v1455_v55  ;;  %v5245_v46 = vpop.permute.xlu0 %1438  ;;  %v732_v15 = vadd.f32 %v730_v61, %v5002_v11  ;;  %v7048_v61 = vld [vmem:[#allocation57_spill] sm:$0xff] }
 0x325   : > { %v6883_v26 = vstv %s5117_s2  ;;  %v1542_v40 = vmul.f32 %v1541_v20, %v1530_v42  ;;  %v7047_v45 = vstv %s4757_s8  ;;  %v5262_v55 = vadd.f32 %v5030_v63, %v1175_v48  ;;  %s5277_s8 = sld [smem:[#allocation5 + $0x2]]  ;;  %v7051_v48 = vld [vmem:[#allocation48_spill] sm:$0xff] }
 0x326   : > { %v5254_v5 = vadd.f32 %v1507_v27, %v1461_v59  ;;  %v5259_v58 = vmul.f32 %v7047_v45, %v7046_v19  ;;  %v729_v11 = vmul.f32 %v728_v25, %v715_v14  ;;  %v1255_v56 = vsel %vm668_vm7, %v7048_v61, 0.0  ;;  %v7050_v27 = vld [vmem:[#allocation58_spill] sm:$0xff]  ;;  %v7052_v59 = vld [vmem:[#allocation59_spill] sm:$0xff]  ;;  %s5316_s2 = sld [smem:[#allocation2 + $0x103]] }
 0x327   : > { %v7049_v41 = vstv %s4676_s23  ;;  %v809_v45 = vsel %vm669_vm8, %v7050_v27, 0.0  ;;  %v5279_v63 = vpop.permute.xlu2 %1666  ;;  %v1533_v25 = vpop.permute.xlu1 %1532  ;;  %v5284_v14 = vmul.f32 %v6883_v26, %v7051_v48  ;;  %v5288_v19 = vadd.f32 %v4857_v35, %v732_v15  ;;  %v7053_v26 = vld [vmem:[#allocation60_spill] sm:$0xff]  ;;  %s5303_s23 = sld [smem:[#allocation7 + $0x101]] }
 0x328   : > { %7044 = sst [smem:[#allocation93_spill]] %s5243_s29  ;;  %v719_v9 = vmul.f32 %v7049_v41, %v707_v17  ;;  %v802_v41 = vsel %vm668_vm7, %v7052_v59, 0.0  ;;  %v1551_v61 = vstv %s5211_s26  ;;  %v1538_v27 = vsel %vm669_vm8, %v1533_v25, 0.0 }
 0x329   : > { %7045 = sst [smem:[#allocation94_spill]] %s5252_s20  ;;  %v1267_v48 = vmul.f32 %v6886_v30, %v1255_v56  ;;  %v1348_v35 = vsel %vm668_vm7, %v7053_v26, 0.0  ;;  %v1548_v15 = vadd.f32 %v4824_v51, %v1542_v40  ;;  %v1552_v17 = vmul.f32 %v1551_v61, %v1538_v27 }
 0x32a   : > { %v7054_v59 = vstv %s5016_s6  ;;  %v725_v42 = vadd.f32 %v723_v54, %v719_v9  ;;  %s5310_s26 = sld [smem:[#allocation2 + $0x186]]  ;;  %v7055_v25 = vstv %s4700_s0  ;;  %v7056_v40 = vstv %s5065_s15 }
 0x32b   : > { %v823_v53 = vmul.f32 %v7054_v59, %v809_v45  ;;  %v814_v56 = vmul.f32 %v7055_v25, %v802_v41  ;;  %v5318_v26 = vadd.f32 %v1552_v17, %v1548_v15  ;;  %v1360_v27 = vmul.f32 %v7056_v40, %v1348_v35  ;;  %v7057_v45 = vld [vmem:[#allocation61_spill] sm:$0xff]  ;;  %v7058_v15 = vld [vmem:[#allocation62_spill] sm:$0xff]  ;;  %s5339_s0 = sld [smem:[#allocation2 + $0x286]] }
 0x32c   : > { %v1527_v51 = vpop.permute.xlu0 %1526  ;;  %v893_v54 = vsel %vm669_vm8, %v7057_v45, 0.0  ;;  %v1539_v9 = vsel %vm669_vm8, %v5115_v10, 0.0  ;;  %v5333_v17 = vadd.f32 %v5087_v12, %v1267_v48  ;;  %v892_v35 = vsel %vm669_vm8, %v7058_v15, 0.0  ;;  %s5348_s29 = sld [smem:[#allocation7 + $0x103]] }
 0x32d   : > { %v1531_v41 = vsel %vm668_vm7, %v1527_v51, 0.0  ;;  %v825_v40 = vadd.f32 %v823_v53, %v5036_v57  ;;  %v731_v45 = vadd.f32 %v729_v11, %v725_v42  ;;  %v1184_v10 = vstv %s5271_s27  ;;  %s5353_s20 = sld [smem:[#allocation2 + $0x403]] }
 0x32e   : > { %v1543_v25 = vmul.f32 %v1541_v20, %v1531_v41  ;;  %v7060_v30 = vstv %s4888_s12  ;;  %v820_v12 = vadd.f32 %v5153_v18, %v814_v56  ;;  %v7061_v48 = vstv %s5042_s22  ;;  %s7071_s12 = sld [smem:[#allocation84_spill]] }
 0x32f   : > { %v5346_v51 = vmul.f32 %v7060_v30, %v7059_v43  ;;  %v907_v15 = vmul.f32 %v7061_v48, %v893_v54  ;;  %v1553_v57 = vmul.f32 %v1551_v61, %v1539_v9  ;;  %v5356_v53 = vpop.permute.xlu2 %1978  ;;  %v1431_v43 = vpop.permute.xlu1 %1430  ;;  %v5359_v30 = vadd.f32 %v5159_v36, %v1360_v27  ;;  %v7063_v61 = vld [vmem:[#allocation68_spill] sm:$0xff]  ;;  %s5452_s6 = sld [smem:[#allocation7 + $0x180]] }
 0x330   : > { %v1549_v20 = vadd.f32 %v4827_v0, %v1543_v25  ;;  %v7062_v11 = vmov %v7061_v48  ;;  %v1444_v18 = vsel %vm669_vm8, %v5245_v46, 0.0  ;;  %v1436_v56 = vsel %vm668_vm7, %v1431_v43, 0.0  ;;  %s7092_s22 = sld [smem:[#allocation86_spill]]  ;;  %v7101_v25 = vld [vmem:[#allocation80_spill] sm:$0xff] }
 0x331   : > { %v5363_v42 = vmul.f32 %v7062_v11, %v892_v35  ;;  %v810_v0 = vsel %vm669_vm8, %v7063_v61, 0.0  ;;  %v7064_v36 = vstv %s5048_s13  ;;  %v779_v41 = vadd.f32 %v4767_v8, %v731_v45  ;;  %v7066_v8 = vld [vmem:[#allocation64_spill] sm:$0xff]  ;;  %s5512_s13 = sld [smem:[#allocation2 + $0x407]] }
 0x332   : > { %v1555_v9 = vadd.f32 %v1553_v57, %v1549_v20  ;;  %v1448_v27 = vmul.f32 %v7064_v36, %v1436_v56  ;;  %v6896_v46 = vstv %s5310_s26  ;;  %v909_v48 = vadd.f32 %v907_v15, %v5120_v4  ;;  %v7067_v56 = vld [vmem:[#allocation65_spill] sm:$0xff]  ;;  %s7123_s27 = sld [smem:[#allocation93_spill]] }
 0x333   : > { %v7065_v43 = vstv %s5104_s28  ;;  %v986_v45 = vsel %vm669_vm8, %v7066_v8, 0.0  ;;  %v979_v4 = vsel %vm668_vm7, %v7067_v56, 0.0  ;;  %v7068_v15 = vmov %v7054_v59  ;;  %s5438_s28 = sld [smem:[#allocation2 + $0x307]]  ;;  %v7102_v8 = vld [vmem:[#allocation39_spill] sm:$0xff] }
 0x334   : > { %v1458_v11 = vmul.f32 %v7065_v43, %v1444_v18  ;;  %v5384_v61 = vadd.f32 %v1555_v9, %v5254_v5  ;;  %v1454_v57 = vadd.f32 %v4855_v33, %v1448_v27  ;;  %v1841_v20 = vpop.permute.xlu0 %1840  ;;  %v824_v36 = vmul.f32 %v7068_v15, %v810_v0 }
 0x335   : > { %v1846_v5 = vsel %vm668_vm7, %v1841_v20, 0.0  ;;  %v6895_v18 = vstv %s5339_s0  ;;  %v1854_v33 = vsel %vm669_vm8, %v5203_v1, 0.0  ;;  %v827_v43 = vadd.f32 %v825_v40, %v779_v41 }
 0x336   : > { %v1460_v9 = vadd.f32 %v1458_v11, %v1454_v57  ;;  %v1858_v27 = vmul.f32 %v6896_v46, %v1846_v5  ;;  %v6897_v35 = vstv %s5316_s2  ;;  %v5407_v56 = vadd.f32 %v5013_v47, %v909_v48  ;;  %v7072_v11 = vld [vmem:[#allocation69_spill] sm:$0xff]  ;;  %v7073_v57 = vld [vmem:[#allocation70_spill] sm:$0xff] }
 0x337   : > { %v7069_v0 = vstv %s5072_s14  ;;  %v7070_v59 = vstv %s4764_s10  ;;  %v2071_v49 = vpop.permute.xlu2 %2070  ;;  %v2025_v7 = vpop.permute.xlu1 %2024  ;;  %v1868_v1 = vmul.f32 %v6895_v18, %v1854_v33  ;;  %v826_v48 = vadd.f32 %v824_v36, %v820_v12  ;;  %s5429_s10 = sld [smem:[#allocation5 + $0x3]] }
 0x338   : > { %v1000_v15 = vmul.f32 %v7069_v0, %v986_v45  ;;  %v991_v20 = vmul.f32 %v7070_v59, %v979_v4  ;;  %v1508_v40 = vadd.f32 %v4955_v2, %v1460_v9  ;;  %v1864_v41 = vadd.f32 %v5284_v14, %v1858_v27  ;;  %v7074_v4 = vld [vmem:[#allocation71_spill] sm:$0xff]  ;;  %v7078_v0 = vld [vmem:[#allocation37_spill] sm:$0xff] }
 0x339   : > { %v2029_v47 = vsel %vm668_vm7, %v2025_v7, 0.0  ;;  %v1078_v59 = vsel %vm669_vm8, %v7072_v11, 0.0  ;;  %v1077_v45 = vsel %vm669_vm8, %v7073_v57, 0.0  ;;  %v987_v2 = vsel %vm669_vm8, %v7074_v4, 0.0 }
 0x33a   : > { %v7075_v14 = vstv %s5089_s30  ;;  %v5434_v12 = vadd.f32 %v5318_v26, %v1508_v40  ;;  %v5436_v36 = vadd.f32 %v1868_v1, %v1864_v41  ;;  %v7077_v5 = vstv %s4968_s1  ;;  %v7080_v26 = vld [vmem:[#allocation43_spill] sm:$0xff]  ;;  %s7085_s1 = sld [smem:[#allocation89_spill]] }
 0x33b   : > { %v831_v7 = vadd.f32 %v7075_v14, %v827_v43  ;;  %v2041_v33 = vmul.f32 %v7077_v5, %v2029_v47  ;;  %v5443_v9 = vadd.f32 %v1000_v15, %v5184_v3  ;;  %v997_v27 = vadd.f32 %v5220_v50, %v991_v20  ;;  %v7086_v20 = vld [vmem:[#allocation73_spill] sm:$0xff] }
 0x33c   : > { %7076 = vst [vmem:[#allocation50_spill] sm:$0xff] %v5436_v36  ;;  %v7079_v11 = vstv %s7071_s12  ;;  %v7081_v40 = vstv %s5032_s3  ;;  %v2033_v41 = vpop.permute.xlu0 %2032  ;;  %v7082_v57 = vstv %s5176_s19  ;;  %v7084_v3 = vstv %s5072_s14  ;;  %s7087_s3 = sld [smem:[#allocation83_spill]] }
 0x33d   : > { %v900_v43 = vmul.f32 %v7079_v11, %v7078_v0  ;;  %v1365_v1 = vmul.f32 %v7081_v40, %v7080_v26  ;;  %v1092_v47 = vmul.f32 %v7082_v57, %v1078_v59  ;;  %v7083_v4 = vmov %v7082_v57  ;;  %v7088_v0 = vld [vmem:[#allocation78_spill] sm:$0xff]  ;;  %s5519_s14 = sld [smem:[#allocation7 + $0x181]] }
 0x33e   : > { %v5458_v14 = vmul.f32 %v7083_v4, %v1077_v45  ;;  %v1001_v15 = vmul.f32 %v7084_v3, %v987_v2  ;;  %v2037_v50 = vsel %vm669_vm8, %v2033_v41, 0.0  ;;  %v1164_v5 = vsel %vm668_vm7, %v7086_v20, 0.0  ;;  %s5525_s19 = sld [smem:[#allocation7 + $0x182]] }
 0x33f   : > { %v884_v11 = vsel %vm668_vm7, %v7088_v0, 0.0  ;;  %v2047_v59 = vadd.f32 %v5107_v39, %v2041_v33  ;;  %v7089_v26 = vstv %s4988_s5  ;;  %v828_v40 = vadd.f32 %v826_v48, %v5288_v19  ;;  %v7095_v0 = vld [vmem:[#allocation74_spill] sm:$0xff]  ;;  %v7096_v19 = vld [vmem:[#allocation75_spill] sm:$0xff]  ;;  %s7100_s5 = sld [smem:[#allocation87_spill]] }
 0x340   : > { %v2051_v45 = vmul.f32 %v7089_v26, %v2037_v50  ;;  %v7090_v2 = vstv %s5126_s11  ;;  %v7091_v4 = vstv %s5133_s24  ;;  %v7093_v3 = vstv %s5161_s9  ;;  %v5498_v50 = vpop.permute.xlu2 %2080  ;;  %v5500_v26 = vpop.permute.xlu1 %1986  ;;  %s7104_s12 = sld [smem:[#allocation85_spill]] }
 0x341   : > { %v5476_v57 = vmul.f32 %v7090_v2, %v831_v7  ;;  %v5480_v41 = vmul.f32 %v7091_v4, %v831_v7  ;;  %v5484_v20 = vmul.f32 %v7093_v3, %v831_v7  ;;  %v7094_v18 = vstv %s5169_s7  ;;  %v7099_v3 = vld [vmem:[#allocation79_spill] sm:$0xff] }
 0x342   : > { %v5488_v46 = vmul.f32 %v7094_v18, %v831_v7  ;;  %v1172_v39 = vsel %vm669_vm8, %v7095_v0, 0.0  ;;  %v1263_v48 = vsel %vm669_vm8, %v7096_v19, 0.0  ;;  %v5496_v33 = vadd.f32 %v2051_v45, %v2047_v59 }
 0x343   : > { %v7097_v2 = vstv %s7085_s1  ;;  %v7098_v7 = vstv %s7087_s3  ;;  %v1349_v0 = vsel %vm668_vm7, %v7099_v3, 0.0  ;;  %v1069_v59 = vsel %vm668_vm7, %v7101_v25, 0.0  ;;  %s7108_s1 = sld [smem:[#allocation88_spill]] }
 0x344   : > { %v1176_v18 = vmul.f32 %v7097_v2, %v1164_v5  ;;  %v896_v4 = vmul.f32 %v7098_v7, %v884_v11  ;;  %v1094_v45 = vadd.f32 %v1092_v47, %v5206_v23  ;;  %v1003_v19 = vadd.f32 %v1001_v15, %v997_v27  ;;  %v1659_v36 = vpop.permute.xlu0 %1658  ;;  %s5538_s3 = sld [smem:[#allocation7 + $0x183]] }
 0x345   : > { %v7103_v5 = vstv %s7092_s22  ;;  %v1186_v11 = vmul.f32 %v1184_v10, %v1172_v39  ;;  %v1277_v7 = vmul.f32 %v6897_v35, %v1263_v48  ;;  %v6899_v25 = vstv %s5438_s28  ;;  %s5585_s22 = sld [smem:[#allocation2 + $0x107]] }
 0x346   : > { %v1085_v2 = vmul.f32 %v7103_v5, %v7102_v8  ;;  %v2076_v3 = vsel %vm668_vm7, %v2071_v49, 0.0  ;;  %v7105_v23 = vstv %s5089_s30  ;;  %v7106_v47 = vstv %s5065_s15  ;;  %s5566_s15 = sld [smem:[#allocation2 + $0x7]] }
 0x347   : > { %v832_v27 = vadd.f32 %v7105_v23, %v828_v40  ;;  %v1361_v15 = vmul.f32 %v7106_v47, %v1349_v0  ;;  %v7107_v8 = vstv %s7100_s5  ;;  %v1381_v54 = vstv %s5452_s6  ;;  %v7109_v0 = vld [vmem:[#allocation77_spill] sm:$0xff]  ;;  %v7111_v23 = vld [vmem:[#allocation72_spill] sm:$0xff]  ;;  %s7115_s30 = sld [smem:[#allocation90_spill]] }
 0x348   : > { %v1081_v5 = vmul.f32 %v7107_v8, %v1069_v59  ;;  %v1182_v39 = vadd.f32 %v5346_v51, %v1176_v18  ;;  %v902_v48 = vadd.f32 %v900_v43, %v896_v4  ;;  %v1672_v35 = vsel %vm669_vm8, %v5279_v63, 0.0  ;;  %s5802_s6 = sld [smem:[#allocation2 + $0x386]] }
 0x349   : > { %v1664_v49 = vsel %vm668_vm7, %v1659_v36, 0.0  ;;  %v1142_v40 = vadd.f32 %v5148_v28, %v1094_v45  ;;  %v1357_v59 = vsel %vm669_vm8, %v7109_v0, 0.0  ;;  %v2088_v51 = vmul.f32 %v6899_v25, %v2076_v3  ;;  %s5813_s5 = sld [smem:[#allocation2 + $0x106]] }
 0x34a   : > { %v7110_v43 = vstv %s7104_s12  ;;  %v1005_v4 = vadd.f32 %v1003_v19, %v5407_v56  ;;  %v1171_v63 = vsel %vm669_vm8, %v7111_v23, 0.0  ;;  %v1188_v47 = vadd.f32 %v1186_v11, %v1182_v39  ;;  %v2079_v56 = vpop.permute.xlu1 %2078  ;;  %s5839_s12 = sld [smem:[#allocation7 + $0x380]] }
 0x34b   : > { %v1676_v18 = vmul.f32 %v7110_v43, %v1664_v49  ;;  %v1279_v36 = vadd.f32 %v1277_v7, %v5333_v17  ;;  %v1367_v28 = vadd.f32 %v1365_v1, %v1361_v15  ;;  %v1087_v45 = vadd.f32 %v1085_v2, %v1081_v5  ;;  %v5561_v49 = vpop.permute.xlu2 %1614  ;;  %v7114_v2 = vld [vmem:[#allocation81_spill] sm:$0xff] }
 0x34c   : > { %v7112_v8 = vstv %s7108_s1  ;;  %v7113_v19 = vstv %s5353_s20  ;;  %v908_v11 = vadd.f32 %v5363_v42, %v902_v48  ;;  %v6898_v17 = vstv %s5512_s13  ;;  %s5842_s1 = sld [smem:[#allocation7 + $0x381]] }
 0x34d   : > { %v1686_v0 = vmul.f32 %v7112_v8, %v1672_v35  ;;  %v1682_v3 = vadd.f32 %v5259_v58, %v1676_v18  ;;  %v1371_v43 = vmul.f32 %v7113_v19, %v1357_v59  ;;  %v2084_v1 = vsel %vm669_vm8, %v2079_v56, 0.0  ;;  %v1985_v8 = vpop.permute.xlu0 %1984  ;;  %v7118_v56 = vld [vmem:[#allocation42_spill] sm:$0xff] }
 0x34e   : > { %v1254_v35 = vsel %vm668_vm7, %v7114_v2, 0.0  ;;  %v2094_v58 = vadd.f32 %v5052_v44, %v2088_v51  ;;  %v2098_v42 = vmul.f32 %v6898_v17, %v2084_v1  ;;  %v7116_v15 = vstv %s5201_s21 }
 0x34f   : > { %v5575_v7 = vadd.f32 %v1686_v0, %v1682_v3  ;;  %v1009_v5 = vadd.f32 %v7116_v15, %v1005_v4  ;;  %v1185_v39 = vmul.f32 %v1184_v10, %v1171_v63  ;;  %v1387_v48 = vstv %s5519_s14  ;;  %s5825_s14 = sld [smem:[#allocation2 + $0x306]] }
 0x350   : > { %v1393_v59 = vstv %s5525_s19  ;;  %v1190_v18 = vadd.f32 %v1188_v47, %v1142_v40  ;;  %v1373_v23 = vadd.f32 %v1371_v43, %v1367_v28  ;;  %v1093_v44 = vadd.f32 %v5458_v14, %v1087_v45  ;;  %s5835_s19 = sld [smem:[#allocation2 + $0x406]] }
 0x351   : > { %v5588_v51 = vadd.f32 %v2098_v42, %v2094_v58  ;;  %v7117_v0 = vstv %s5126_s11  ;;  %v7119_v4 = vstv %s7115_s30  ;;  %v7120_v10 = vstv %s4994_s18  ;;  %s7127_s11 = sld [smem:[#allocation94_spill]] }
 0x352   : > { %v836_v3 = vmul.f32 %v7117_v0, %v832_v27  ;;  %v1270_v19 = vmul.f32 %v7119_v4, %v7118_v56  ;;  %v1266_v63 = vmul.f32 %v7120_v10, %v1254_v35  ;;  %v1399_v1 = vstv %s5538_s3  ;;  %v7126_v35 = vld [vmem:[#allocation76_spill] sm:$0xff]  ;;  %s5661_s18 = sld [smem:[#allocation2 + $0x105]] }
 0x353   : > { %v7121_v2 = vstv %s5133_s24  ;;  %v7122_v17 = vstv %s5161_s9  ;;  %v1327_v47 = vadd.f32 %v5215_v6, %v1279_v36  ;;  %v956_v14 = vadd.f32 %v4933_v16, %v908_v11  ;;  %v7129_v36 = vld [vmem:[#allocation82_spill] sm:$0xff]  ;;  %v1977_v11 = vpop.permute.xlu1 %1976  ;;  %s5641_s24 = sld [smem:[#allocation5 + $0x4]] }
 0x354   : > { %v840_v15 = vmul.f32 %v7121_v2, %v832_v27  ;;  %v844_v40 = vmul.f32 %v7122_v17, %v832_v27  ;;  %v7124_v28 = vstv %s5169_s7  ;;  %v7125_v43 = vstv %s5222_s16  ;;  %s5669_s9 = sld [smem:[#allocation7 + $0x200]] }
 0x355   : > { %v848_v45 = vmul.f32 %v7124_v28, %v832_v27  ;;  %v1013_v58 = vmul.f32 %v7125_v43, %v1009_v5  ;;  %v1187_v42 = vadd.f32 %v1185_v39, %v5262_v55  ;;  %v1262_v0 = vsel %vm669_vm8, %v7126_v35, 0.0  ;;  %s5673_s7 = sld [smem:[#allocation7 + $0x201]] }
 0x356   : > { %v7128_v56 = vstv %s5277_s8  ;;  %v1375_v6 = vadd.f32 %v1373_v23, %v1327_v47  ;;  %v1141_v16 = vadd.f32 %v5058_v62, %v1093_v44  ;;  %v1356_v27 = vsel %vm669_vm8, %v7129_v36, 0.0  ;;  %v5628_v47 = vpop.permute.xlu2 %1706  ;;  %s7154_s3 = sld [smem:[#allocation92_spill]] }
 0x357   : > { %v1194_v17 = vadd.f32 %v7128_v56, %v1190_v18  ;;  %v1272_v55 = vadd.f32 %v1270_v19, %v1266_v63  ;;  %v6901_v39 = vstv %s5566_s15  ;;  %v1990_v4 = vsel %vm669_vm8, %v1985_v8, 0.0  ;;  %s5846_s30 = sld [smem:[#allocation7 + $0x382]] }
 0x358   : > { %v1982_v18 = vsel %vm668_vm7, %v1977_v11, 0.0  ;;  %v7130_v10 = vstv %s5230_s4  ;;  %v7131_v2 = vstv %s7123_s27  ;;  %v1004_v44 = vadd.f32 %v5443_v9, %v956_v14 }
 0x359   : > { %v1019_v23 = vmul.f32 %v7130_v10, %v1009_v5  ;;  %v1025_v62 = vmul.f32 %v7131_v2, %v1009_v5  ;;  %v1994_v19 = vmul.f32 %v6901_v39, %v1982_v18  ;;  %v7132_v63 = vstv %s7127_s11  ;;  %v5646_v18 = vpop.permute.xlu0 %2072 }
 0x35a   : > { %v1031_v28 = vmul.f32 %v7132_v63, %v1009_v5  ;;  %v7133_v43 = vstv %s5316_s2  ;;  %v7134_v35 = vstv %s5353_s20  ;;  %v6900_v36 = vstv %s5585_s22  ;;  %s5654_s2 = sld [smem:[#allocation2 + $0x5]] }
 0x35b   : > { %v1276_v8 = vmul.f32 %v7133_v43, %v1262_v0  ;;  %v1370_v56 = vmul.f32 %v7134_v35, %v1356_v27  ;;  %v1189_v11 = vadd.f32 %v1187_v42, %v1141_v16  ;;  %v7135_v10 = vstv %s5429_s10  ;;  %s5696_s20 = sld [smem:[#allocation2 + $0x305]] }
 0x35c   : > { %v1379_v25 = vadd.f32 %v7135_v10, %v1375_v6  ;;  %v2004_v9 = vmul.f32 %v6900_v36, %v1990_v4  ;;  %v2000_v14 = vadd.f32 %v5055_v52, %v1994_v19  ;;  %v7136_v5 = vstv %s5293_s25 }
 0x35d   : > { %v1198_v2 = vmul.f32 %v7136_v5, %v1194_v17  ;;  %v7137_v0 = vstv %s5303_s23  ;;  %v7138_v27 = vstv %s5325_s17  ;;  %v1278_v42 = vadd.f32 %v1276_v8, %v1272_v55 }
 0x35e   : > { %v1204_v63 = vmul.f32 %v7137_v0, %v1194_v17  ;;  %v1210_v43 = vmul.f32 %v7138_v27, %v1194_v17  ;;  %v1015_v6 = vadd.f32 %v1013_v58, %v836_v3  ;;  %v7139_v16 = vstv %s5348_s29 }
 0x35f   : > { %v1216_v35 = vmul.f32 %v7139_v16, %v1194_v17  ;;  %v7140_v4 = vstv %s5201_s21  ;;  %v2006_v52 = vadd.f32 %v2004_v9, %v2000_v14  ;;  %v1021_v19 = vadd.f32 %v1019_v23, %v840_v15  ;;  %s5679_s21 = sld [smem:[#allocation7 + $0x202]] }
 0x360   : > { %v1008_v10 = vadd.f32 %v7140_v4, %v1004_v44  ;;  %v1027_v36 = vadd.f32 %v1025_v62, %v844_v40  ;;  %v1033_v39 = vadd.f32 %v1031_v28, %v848_v45  ;;  %v1372_v5 = vadd.f32 %v1370_v56, %v5359_v30  ;;  %v1623_v40 = vpop.permute.xlu1 %1622 }
 0x361   : > { %v7141_v0 = vstv %s5277_s8  ;;  %v1383_v55 = vmul.f32 %v1381_v54, %v1379_v25  ;;  %v1389_v3 = vmul.f32 %v1387_v48, %v1379_v25  ;;  %v2054_v15 = vadd.f32 %v5137_v37, %v2006_v52  ;;  %s5743_s8 = sld [smem:[#allocation7 + $0x281]] }
 0x362   : > { %v1193_v27 = vadd.f32 %v7141_v0, %v1189_v11  ;;  %v1200_v45 = vadd.f32 %v1198_v2, %v1015_v6  ;;  %v1206_v30 = vadd.f32 %v1204_v63, %v1021_v19  ;;  %v1212_v58 = vadd.f32 %v1210_v43, %v1027_v36  ;;  %v1621_v6 = vpop.permute.xlu0 %1620 }
 0x363   : > { %v1326_v17 = vadd.f32 %v5187_v38, %v1278_v42  ;;  %v1218_v23 = vadd.f32 %v1216_v35, %v1033_v39  ;;  %v7142_v62 = vstv %s5222_s16  ;;  %v1395_v28 = vmul.f32 %v1393_v59, %v1379_v25  ;;  %s5690_s16 = sld [smem:[#allocation7 + $0x203]]  ;;  %v1717_v42 = vpop.permute.xlu2 %1716 }
 0x364   : > { %v1012_v44 = vmul.f32 %v7142_v62, %v1008_v10  ;;  %v5682_v37 = vadd.f32 %v5588_v51, %v2054_v15  ;;  %v7143_v8 = vstv %s5230_s4  ;;  %v7144_v36 = vstv %s7123_s27  ;;  %s5705_s4 = sld [smem:[#allocation2 + $0x405]] }
 0x365   : > { %v1018_v56 = vmul.f32 %v7143_v8, %v1008_v10  ;;  %v1024_v11 = vmul.f32 %v7144_v36, %v1008_v10  ;;  %v1374_v38 = vadd.f32 %v1372_v5, %v1326_v17  ;;  %v1401_v39 = vmul.f32 %v1399_v1, %v1379_v25  ;;  %s5882_s27 = sld [smem:[#allocation7 + $0x302]] }
 0x366   : > { %v7145_v9 = vstv %s7127_s11  ;;  %v7146_v2 = vstv %s5293_s25  ;;  %v1385_v43 = vadd.f32 %v1383_v55, %v1200_v45  ;;  %v1391_v51 = vadd.f32 %v1389_v3, %v1206_v30  ;;  %s5750_s25 = sld [smem:[#allocation7 + $0x282]] }
 0x367   : > { %v1030_v14 = vmul.f32 %v7145_v9, %v1008_v10  ;;  %v1197_v63 = vmul.f32 %v7146_v2, %v1193_v27  ;;  %v7147_v16 = vstv %s5303_s23  ;;  %v1559_v4 = vstv %s5641_s24  ;;  %s5755_s23 = sld [smem:[#allocation7 + $0x283]] }
 0x368   : > { %v1203_v35 = vmul.f32 %v7147_v16, %v1193_v27  ;;  %v1629_v52 = vstv %s5654_s2  ;;  %v1619_v25 = vsel %vm668_vm7, %v5561_v49, 0.0  ;;  %v7148_v10 = vstv %s5325_s17  ;;  %s5726_s17 = sld [smem:[#allocation5 + $0x5]] }
 0x369   : > { %v1209_v19 = vmul.f32 %v7148_v10, %v1193_v27  ;;  %v7149_v5 = vstv %s5348_s29  ;;  %v1014_v55 = vadd.f32 %v1012_v44, %v5476_v57  ;;  %v1397_v3 = vadd.f32 %v1395_v28, %v1212_v58  ;;  %s5733_s29 = sld [smem:[#allocation7 + $0x280]] }
 0x36a   : > { %v1215_v0 = vmul.f32 %v7149_v5, %v1193_v27  ;;  %v1020_v15 = vadd.f32 %v1018_v56, %v5480_v41  ;;  %v7150_v45 = vstv %s5429_s10  ;;  %v1639_v17 = vstv %s5661_s18  ;;  %v1715_v41 = vpop.permute.xlu1 %1714  ;;  %s5782_s10 = sld [smem:[#allocation2 + $0x6]] }
 0x36b   : > { %v1378_v30 = vadd.f32 %v7150_v45, %v1374_v38  ;;  %v1627_v62 = vsel %vm669_vm8, %v1623_v40, 0.0  ;;  %v1026_v49 = vadd.f32 %v1024_v11, %v5484_v20  ;;  %v1032_v8 = vadd.f32 %v1030_v14, %v5488_v46  ;;  %v5763_v10 = vpop.permute.xlu2 %1796  ;;  %s5888_s11 = sld [smem:[#allocation7 + $0x303]] }
 0x36c   : > { %v1561_v27 = vadd.f32 %v1559_v4, %v5384_v61  ;;  %v1631_v57 = vmul.f32 %v1629_v52, %v1619_v25  ;;  %v1199_v58 = vadd.f32 %v1197_v63, %v1014_v55  ;;  %v5723_v44 = vadd.f32 %v1203_v35, %v1020_v15  ;;  %s5892_s24 = sld [smem:[#allocation7 + $0x383]] }
 0x36d   : > { %v1403_v28 = vadd.f32 %v1401_v39, %v1218_v23  ;;  %v1563_v56 = vstv %s5669_s9  ;;  %v5728_v40 = vadd.f32 %v1209_v19, %v1026_v49  ;;  %v5730_v20 = vadd.f32 %v1215_v0, %v1032_v8  ;;  %s5921_s2 = sld [smem:[#allocation8 + $0x1]]  ;;  %s7167_s9 = smov 16  }
 0x36e   : > { %v1569_v46 = vstv %s5673_s7  ;;  %v1641_v36 = vmul.f32 %v1639_v17, %v1627_v62  ;;  %v1382_v61 = vmul.f32 %v1381_v54, %v1378_v30  ;;  %v5739_v11 = vmul.f32 %v1387_v48, %v1378_v30  ;;  %v1709_v54 = vpop.permute.xlu0 %1708  ;;  %s5940_s18 = sld [smem:[#allocation8 + $0x2]] }
 0x36f   : > { %v1575_v23 = vstv %s5679_s21  ;;  %v1581_v38 = vstv %s5690_s16  ;;  %v1565_v39 = vmul.f32 %v1563_v56, %v1561_v27  ;;  %v1983_v9 = vsel %vm668_vm7, %v5356_v53, 0.0  ;;  %s5954_s7 = sld [smem:[#allocation8 + $0x3]]  ;;  %s7170_s21 = smov 127  }
 0x370   : > { %v1637_v14 = vadd.f32 %v4971_v13, %v1631_v57  ;;  %v1723_v2 = vstv %s5696_s20  ;;  %v1571_v63 = vmul.f32 %v1569_v46, %v1561_v27  ;;  %v1733_v48 = vstv %s5705_s4  ;;  %s7171_s16 = smov 113   ;;  %s6247_s20 = sld [smem:[#allocation10 + $0x200]] }
 0x371   : > { %v1721_v16 = vsel %vm669_vm8, %v1717_v42, 0.0  ;;  %v1713_v35 = vsel %vm668_vm7, %v1709_v54, 0.0  ;;  %v1394_v25 = vmul.f32 %v1393_v59, %v1378_v30  ;;  %v1400_v53 = vmul.f32 %v1399_v1, %v1378_v30  ;;  %s6249_s4 = sld [smem:[#allocation10 + $0x180]] }
 0x372   : > { %v1643_v13 = vadd.f32 %v1641_v36, %v1637_v14  ;;  %v1725_v19 = vmul.f32 %v1723_v2, %v1713_v35  ;;  %v1384_v5 = vadd.f32 %v1382_v61, %v1199_v58  ;;  %v1577_v0 = vmul.f32 %v1575_v23, %v1561_v27  ;;  %v1613_v1 = vpop.permute.xlu1 %1612 }
 0x373   : > { %v1583_v55 = vmul.f32 %v1581_v38, %v1561_v27  ;;  %v7151_v15 = vstv %s5566_s15  ;;  %v1567_v42 = vadd.f32 %v1565_v39, %v1385_v43  ;;  %v1712_v62 = vsel %vm668_vm7, %v5628_v47, 0.0  ;;  %s7155_s15 = sld [smem:[#allocation91_spill]] }
 0x374   : > { %v1995_v45 = vmul.f32 %v7151_v15, %v1983_v9  ;;  %v1735_v49 = vmul.f32 %v1733_v48, %v1721_v16  ;;  %v1731_v59 = vadd.f32 %v4980_v34, %v1725_v19  ;;  %v1573_v30 = vadd.f32 %v1571_v63, %v1391_v51 }
 0x375   : > { %v1560_v8 = vadd.f32 %v1559_v4, %v5434_v12  ;;  %v1626_v57 = vsel %vm669_vm8, %v1621_v6, 0.0  ;;  %v1618_v27 = vsel %vm668_vm7, %v1613_v1, 0.0  ;;  %v1691_v43 = vadd.f32 %v5018_v29, %v1643_v13 }
 0x376   : > { %v1720_v47 = vsel %vm669_vm8, %v1715_v41, 0.0  ;;  %v1737_v34 = vadd.f32 %v1735_v49, %v1731_v59  ;;  %v1630_v58 = vmul.f32 %v1629_v52, %v1618_v27  ;;  %v1579_v51 = vadd.f32 %v1577_v0, %v1397_v3  ;;  %v5786_v29 = vpop.permute.xlu0 %1850 }
 0x377   : > { %v1585_v36 = vadd.f32 %v1583_v55, %v1403_v28  ;;  %v1724_v12 = vmul.f32 %v1723_v2, %v1712_v62  ;;  %v1741_v4 = vstv %s5726_s17  ;;  %v1640_v61 = vmul.f32 %v1639_v17, %v1626_v57  ;;  %v5795_v55 = vpop.permute.xlu2 %1888  ;;  %s6256_s17 = sld [smem:[#allocation10 + $0x280]] }
 0x378   : > { %v1745_v6 = vstv %s5733_s29  ;;  %v1739_v39 = vadd.f32 %v1737_v34, %v1691_v43  ;;  %v1636_v9 = vadd.f32 %v5011_v60, %v1630_v58  ;;  %v1734_v14 = vmul.f32 %v1733_v48, %v1720_v47  ;;  %s6260_s29 = sld [smem:[#allocation10 + $0x201]] }
 0x379   : > { %v1751_v54 = vstv %s5743_s8  ;;  %v1757_v41 = vstv %s5750_s25  ;;  %v1763_v63 = vstv %s5755_s23  ;;  %v1564_v16 = vmul.f32 %v1563_v56, %v1560_v8  ;;  %s6264_s8 = sld [smem:[#allocation10 + $0x181]] }
 0x37a   : > { %v2077_v52 = vsel %vm668_vm7, %v5646_v18, 0.0  ;;  %v1743_v3 = vadd.f32 %v1741_v4, %v1739_v39  ;;  %v1642_v17 = vadd.f32 %v1640_v61, %v1636_v9  ;;  %v1570_v28 = vmul.f32 %v1569_v46, %v1560_v8  ;;  %v1843_v15 = vpop.permute.xlu1 %1842  ;;  %s6277_s25 = sld [smem:[#allocation10 + $0x281]] }
 0x37b   : > { %v1576_v2 = vmul.f32 %v1575_v23, %v1560_v8  ;;  %v1582_v35 = vmul.f32 %v1581_v38, %v1560_v8  ;;  %v1730_v13 = vadd.f32 %v4977_v31, %v1724_v12  ;;  %v1991_v56 = vsel %vm669_vm8, %v5500_v26, 0.0  ;;  %s3264_s23 = sld [smem:[#allocation10 + $0x182]] }
 0x37c   : > { %v1747_v60 = vmul.f32 %v1745_v6, %v1743_v3  ;;  %v1753_v19 = vmul.f32 %v1751_v54, %v1743_v3  ;;  %v1759_v0 = vmul.f32 %v1757_v41, %v1743_v3  ;;  %v1765_v48 = vmul.f32 %v1763_v63, %v1743_v3 }
 0x37d   : > { %v7152_v62 = vstv %s5438_s28  ;;  %v1736_v49 = vadd.f32 %v1734_v14, %v1730_v13  ;;  %v1690_v31 = vadd.f32 %v5575_v7, %v1642_v17  ;;  %v1390_v26 = vadd.f32 %v5739_v11, %v5723_v44  ;;  %s5819_s28 = sld [smem:[#allocation5 + $0x7]] }
 0x37e   : > { %v2089_v18 = vmul.f32 %v7152_v62, %v2077_v52  ;;  %v5805_v46 = vadd.f32 %v1747_v60, %v1567_v42  ;;  %v5807_v23 = vadd.f32 %v1753_v19, %v1573_v30  ;;  %v5809_v38 = vadd.f32 %v1759_v0, %v1579_v51  ;;  %v5827_v47 = vpop.permute.xlu0 %1802 }
 0x37f   : > { %v5811_v59 = vadd.f32 %v1765_v48, %v1585_v36  ;;  %v1396_v1 = vadd.f32 %v1394_v25, %v5728_v40  ;;  %v1402_v8 = vadd.f32 %v1400_v53, %v5730_v20  ;;  %v1738_v7 = vadd.f32 %v1736_v49, %v1690_v31  ;;  %v7162_v31 = vld [vmem:[#allocation66_spill] sm:$0xff] }
 0x380   : > { %v2001_v42 = vadd.f32 %v5045_v22, %v1995_v45  ;;  %v1566_v30 = vadd.f32 %v1564_v16, %v1384_v5  ;;  %v7153_v57 = vstv %s5585_s22  ;;  %v1811_v43 = vstv %s5782_s10  ;;  %v7159_v16 = vld [vmem:[#allocation52_spill] sm:$0xff]  ;;  %s5879_s22 = sld [smem:[#allocation7 + $0x301]] }
 0x381   : > { %v2005_v27 = vmul.f32 %v7153_v57, %v1991_v56  ;;  %v2085_v44 = vsel %vm669_vm8, %v5498_v50, 0.0  ;;  %v1801_v40 = vsel %vm668_vm7, %v5763_v10, 0.0  ;;  %v1742_v20 = vadd.f32 %v1741_v4, %v1738_v7  ;;  %s3265_s10 = sld [smem:[#allocation10 + $0x202]] }
 0x382   : > { %v1847_v22 = vsel %vm668_vm7, %v1843_v15, 0.0  ;;  %v1572_v11 = vadd.f32 %v1570_v28, %v1390_v26  ;;  %v1578_v25 = vadd.f32 %v1576_v2, %v1396_v1  ;;  %v1584_v53 = vadd.f32 %v1582_v35, %v1402_v8 }
 0x383   : > { %v2095_v5 = vadd.f32 %v5068_v24, %v2089_v18  ;;  %v1746_v50 = vmul.f32 %v1745_v6, %v1742_v20  ;;  %v1752_v10 = vmul.f32 %v1751_v54, %v1742_v20  ;;  %v1758_v45 = vmul.f32 %v1757_v41, %v1742_v20  ;;  %v1805_v24 = vpop.permute.xlu1 %1804 }
 0x384   : > { %v1764_v34 = vmul.f32 %v1763_v63, %v1742_v20  ;;  %v7156_v58 = vstv %s5512_s13  ;;  %v2007_v36 = vadd.f32 %v2005_v27, %v2001_v42  ;;  %v1813_v12 = vmul.f32 %v1811_v43, %v1801_v40  ;;  %s5860_s13 = sld [smem:[#allocation5 + $0x6]]  ;;  %v1899_v63 = vpop.permute.xlu2 %1898 }
 0x385   : > { %v2099_v51 = vmul.f32 %v7156_v58, %v2085_v44  ;;  %v7157_v4 = vstv %s5310_s26  ;;  %v5852_v39 = vadd.f32 %v1746_v50, %v1566_v30  ;;  %v5854_v6 = vadd.f32 %v1752_v10, %v1572_v11  ;;  %s5871_s26 = sld [smem:[#allocation7 + $0x300]] }
 0x386   : > { %v1859_v61 = vmul.f32 %v7157_v4, %v1847_v22  ;;  %v5856_v9 = vadd.f32 %v1758_v45, %v1578_v25  ;;  %v5858_v14 = vadd.f32 %v1764_v34, %v1584_v53  ;;  %v7158_v54 = vstv %s7154_s3  ;;  %v1891_v48 = vpop.permute.xlu0 %1890 }
 0x387   : > { %v1817_v41 = vmul.f32 %v7158_v54, %v4463_v21  ;;  %v7160_v52 = vstv %s7155_s15  ;;  %v1821_v17 = vstv %s5813_s5  ;;  %v1809_v28 = vsel %vm669_vm8, %v1805_v24, 0.0  ;;  %s6342_s5 = sld [smem:[#allocation10 + $0x203]] }
 0x388   : > { %v1863_v3 = vmul.f32 %v7160_v52, %v7159_v16  ;;  %v2101_v2 = vadd.f32 %v2099_v51, %v2095_v5  ;;  %v1909_v35 = vstv %s5802_s6  ;;  %v1855_v13 = vsel %vm669_vm8, %v5786_v29, 0.0  ;;  %s3266_s6 = sld [smem:[#allocation10 + $0x282]] }
 0x389   : > { %v1823_v21 = vmul.f32 %v1821_v17, %v1809_v28  ;;  %v2055_v60 = vadd.f32 %v5496_v33, %v2007_v36  ;;  %v1819_v19 = vadd.f32 %v1817_v41, %v1813_v12  ;;  %v1905_v15 = vstv %s5825_s14  ;;  %s6350_s14 = sld [smem:[#allocation10 + $0x283]] }
 0x38a   : > { %v1865_v0 = vadd.f32 %v1863_v3, %v1859_v61  ;;  %v1915_v56 = vstv %s5835_s19  ;;  %v1903_v62 = vsel %vm669_vm8, %v1899_v63, 0.0  ;;  %v1895_v29 = vsel %vm668_vm7, %v1891_v48, 0.0  ;;  %s6352_s19 = sld [smem:[#allocation10]] }
 0x38b   : > { %v7161_v33 = vstv %s5339_s0  ;;  %v1825_v49 = vadd.f32 %v1823_v21, %v1819_v19  ;;  %v1911_v26 = vmul.f32 %v1909_v35, %v7162_v31  ;;  %v1907_v1 = vmul.f32 %v1905_v15, %v1895_v29  ;;  %v1897_v57 = vpop.permute.xlu1 %1896  ;;  %s5901_s0 = sld [smem:[#allocation8]] }
 0x38c   : > { %v1869_v18 = vmul.f32 %v7161_v33, %v1855_v13  ;;  %v2103_v8 = vadd.f32 %v2101_v2, %v2055_v60  ;;  %v1917_v7 = vmul.f32 %v1915_v56, %v1903_v62  ;;  %v2105_v27 = vstv %s5819_s28  ;;  %s6346_s28 = sld [smem:[#allocation10 + $0x183]] }
 0x38d   : > { %v1913_v30 = vadd.f32 %v1911_v26, %v1907_v1  ;;  %v1923_v22 = vstv %s5860_s13  ;;  %v2109_v11 = vstv %s5839_s12  ;;  %v1927_v53 = vstv %s5871_s26  ;;  %v7165_v26 = vld [vmem:[#allocation67_spill] sm:$0xff]  ;;  %s6356_s12 = sld [smem:[#allocation10 + $0x80]] }
 0x38e   : > { %v1871_v42 = vadd.f32 %v1869_v18, %v1865_v0  ;;  %v2107_v20 = vadd.f32 %v2105_v27, %v2103_v8  ;;  %v1933_v5 = vstv %s5879_s22  ;;  %v1939_v50 = vstv %s5882_s27  ;;  %s6392_s15 = sld [smem:[#allocation10 + $0x81]] }
 0x38f   : > { %v1919_v40 = vadd.f32 %v1917_v7, %v1913_v30  ;;  %v1945_v10 = vstv %s5888_s11  ;;  %v2115_v45 = vstv %s5842_s1  ;;  %v2121_v34 = vstv %s5846_s30  ;;  %s6366_s1 = sld [smem:[#allocation10 + $0x100]] }
 0x390   : > { %v1873_v44 = vadd.f32 %v1871_v42, %v1825_v49  ;;  %v2127_v58 = vstv %s5892_s24  ;;  %v2111_v36 = vmul.f32 %v2109_v11, %v2107_v20  ;;  %v2117_v12 = vmul.f32 %v2115_v45, %v2107_v20  ;;  %v7166_v42 = vld [vmem:[#allocation50_spill] sm:$0xff]  ;;  %s6401_s30 = sld [smem:[#allocation10 + $0x101]] }
 0x391   : > { %v2123_v4 = vmul.f32 %v2121_v34, %v2107_v20  ;;  %v1894_v61 = vsel %vm668_vm7, %v5795_v55, 0.0  ;;  %v2129_v52 = vmul.f32 %v2127_v58, %v2107_v20  ;;  %v1808_v3 = vsel %vm669_vm8, %v5827_v47, 0.0  ;;  %v7163_v47 = vld [vmem:[#allocation56_spill] sm:$0xff]  ;;  %s6423_s13 = sld [smem:[#allocation10 + $0x380]] }
 0x392   : > { %v1921_v25 = vadd.f32 %v1919_v40, %v1873_v44  ;;  %v1902_v28 = vsel %vm669_vm8, %v1897_v57, 0.0  ;;  %v1906_v19 = vmul.f32 %v1905_v15, %v1894_v61  ;;  %v7164_v0 = vstv %s7154_s3  ;;  %s6390_s3 = sld [smem:[#allocation10 + $0x1]] }
 0x393   : > { %v1795_v16 = vpop.permute.xlu1 %1794  ;;  %v1816_v48 = vmul.f32 %v7164_v0, %v7163_v47  ;;  %v2133_v29 = vstv %s5901_s0  ;;  %v2139_v57 = vstv %s5921_s2  ;;  %v2106_v44 = vadd.f32 %v2105_v27, %v5682_v37  ;;  %s6428_s26 = sld [smem:[#allocation10 + $0x82]] }
 0x394   : > { %v1925_v51 = vadd.f32 %v1923_v22, %v1921_v25  ;;  %v1800_v55 = vsel %vm668_vm7, %v1795_v16, 0.0  ;;  %s6432_s22 = sld [smem:[#allocation10 + $0x2]] }
 0x395   : > { %v1812_v62 = vmul.f32 %v1811_v43, %v1800_v55  ;;  %v2110_v40 = vmul.f32 %v2109_v11, %v2106_v44  ;;  %v2116_v20 = vmul.f32 %v2115_v45, %v2106_v44  ;;  %v2128_v61 = vmul.f32 %v2127_v58, %v2106_v44  ;;  %s6434_s27 = sld [smem:[#allocation10 + $0x381]] }
 0x396   : > { %v1929_v24 = vmul.f32 %v1927_v53, %v1925_v51  ;;  %v1935_v54 = vmul.f32 %v1933_v5, %v1925_v51  ;;  %v1941_v41 = vmul.f32 %v1939_v50, %v1925_v51  ;;  %v1947_v63 = vmul.f32 %v1945_v10, %v1925_v51  ;;  %s6438_s11 = sld [smem:[#allocation10 + $0x102]] }
 0x397   : > { %v1818_v1 = vadd.f32 %v1816_v48, %v1812_v62  ;;  %s6440_s24 = sld [smem:[#allocation10 + $0x382]] }
 0x398   : > { %v1931_v2 = vadd.f32 %v1929_v24, %v5805_v46  ;;  %v1937_v13 = vadd.f32 %v1935_v54, %v5807_v23  ;;  %v1943_v21 = vadd.f32 %v1941_v41, %v5809_v38  ;;  %v1949_v60 = vadd.f32 %v1947_v63, %v5811_v59  ;;  %s6442_s0 = sld [smem:[#allocation10 + $0x83]] }
 0x399   : > { %v1910_v46 = vmul.f32 %v1909_v35, %v7165_v26  ;;  %v1822_v23 = vmul.f32 %v1821_v17, %v1808_v3  ;;  %v1916_v38 = vmul.f32 %v1915_v56, %v1902_v28  ;;  %v2145_v54 = vstv %s5940_s18  ;;  %s6444_s2 = sld [smem:[#allocation10 + $0x383]] }
 0x39a   : > { %v2113_v33 = vadd.f32 %v2111_v36, %v1931_v2  ;;  %v2119_v18 = vadd.f32 %v2117_v12, %v1937_v13  ;;  %v2125_v49 = vadd.f32 %v2123_v4, %v1943_v21  ;;  %v2131_v31 = vadd.f32 %v2129_v52, %v1949_v60  ;;  %s6446_s18 = sld [smem:[#allocation10 + $0x300]] }
 0x39b   : > { %v1912_v15 = vadd.f32 %v1910_v46, %v1906_v19  ;;  %v1824_v8 = vadd.f32 %v1822_v23, %v1818_v1  ;;  %v2122_v4 = vmul.f32 %v2121_v34, %v2106_v44 }
 0x39c   : > { %v2135_v59 = vadd.f32 %v2133_v29, %v2113_v33  ;;  %v2141_v35 = vadd.f32 %v2139_v57, %v2119_v18 }
 0x39d   : > { %v1918_v43 = vadd.f32 %v1916_v38, %v1912_v15  ;;  %v1872_v30 = vadd.f32 %v7166_v42, %v1824_v8 }
 0x39e   : > { %v5938_v7 = vmax.f32 %v2135_v59, 0.0  ;;  %v5947_v24 = vmax.f32 %v2141_v35, 0.0 }
 0x39f   : > { %v1920_v17 = vadd.f32 %v1918_v43, %v1872_v30 }
 0x3a0   : > { %2217 = vrot.lane.b32.xlu0 %v5938_v7, %s7167_s9  ;;  %v2163_v2 = vrot.slane %v5938_v7, 1  ;;  %v2331_v48 = vrot.slane %v5947_v24, 7  ;;  %v2337_v26 = vrot.slane %v5947_v24, 1 }
 0x3a1   : > { %v1924_v56 = vadd.f32 %v1923_v22, %v1920_v17 }
 0x3a3   : > { %v1928_v25 = vmul.f32 %v1927_v53, %v1924_v56  ;;  %v1934_v51 = vmul.f32 %v1933_v5, %v1924_v56  ;;  %v1940_v36 = vmul.f32 %v1939_v50, %v1924_v56  ;;  %v1946_v12 = vmul.f32 %v1945_v10, %v1924_v56 }
 0x3a4   : > { %v2147_v50 = vadd.f32 %v2145_v54, %v2125_v49 }
 0x3a5   : > { %v1930_v41 = vadd.f32 %v1928_v25, %v5852_v39  ;;  %v1936_v37 = vadd.f32 %v1934_v51, %v5854_v6  ;;  %v1942_v27 = vadd.f32 %v1940_v36, %v5856_v9  ;;  %v1948_v63 = vadd.f32 %v1946_v12, %v5858_v14 }
 0x3a6   : > { %v5960_v39 = vmax.f32 %v2147_v50, 0.0  ;;  %v2157_v9 = vrot.slane %v5938_v7, 7  ;;  %v2151_v14 = vstv %s5954_s7  ;;  %s6460_s7 = sld [smem:[#allocation10 + $0x301]] }
 0x3a7   : > { %v2112_v22 = vadd.f32 %v2110_v40, %v1930_v41  ;;  %v2118_v11 = vadd.f32 %v2116_v20, %v1936_v37  ;;  %v2124_v53 = vadd.f32 %v2122_v4, %v1942_v27  ;;  %v2130_v5 = vadd.f32 %v2128_v61, %v1948_v63 }
 0x3a8   : > { %2391 = vrot.lane.b32.xlu0 %v5947_v24, %s7167_s9  ;;  %v2153_v52 = vadd.f32 %v2151_v14, %v2131_v31  ;;  %v2513_v38 = vrot.slane %v5960_v39, 7  ;;  %v2519_v20 = vrot.slane %v5960_v39, 1 }
 0x3a9   : > { %v2134_v10 = vadd.f32 %v2133_v29, %v2112_v22  ;;  %v2140_v16 = vadd.f32 %v2139_v57, %v2118_v11  ;;  %v2146_v21 = vadd.f32 %v2145_v54, %v2124_v53  ;;  %v2152_v29 = vadd.f32 %v2151_v14, %v2130_v5 }
 0x3aa   : > { %v5978_v55 = vmax.f32 %v2153_v52, 0.0 }
 0x3ab   : > { %v5958_v45 = vmax.f32 %v2134_v10, 0.0  ;;  %v5975_v3 = vmax.f32 %v2140_v16, 0.0  ;;  %v5993_v19 = vmax.f32 %v2146_v21, 0.0  ;;  %v6013_v18 = vmax.f32 %v2152_v29, 0.0 }
 0x3ac   : > { %v2695_v57 = vrot.slane %v5978_v55, 7  ;;  %v2701_v61 = vrot.slane %v5978_v55, 1 }
 0x3ad   : > { %2214 = vrot.lane.b32.xlu2 %v5958_v45, %s7167_s9  ;;  %v2156_v6 = vrot.slane %v5958_v45, 7  ;;  %v2162_v28 = vrot.slane %v5958_v45, 1  ;;  %v2330_v47 = vrot.slane %v5975_v3, 7  ;;  %v2336_v49 = vrot.slane %v5975_v3, 1 }
 0x3ae   : > { %v2512_v46 = vrot.slane %v5993_v19, 7  ;;  %v2694_v42 = vrot.slane %v6013_v18, 7  ;;  %v2518_v35 = vrot.slane %v5993_v19, 1  ;;  %v2700_v12 = vrot.slane %v6013_v18, 1 }
 0x3af   : > { %v5971_v58 = vsel %vm674_vm0, %v2156_v6, %v2157_v9  ;;  %v5987_v13 = vsel %vm681_vm1, %v2162_v28, %v2163_v2  ;;  %v2159_v60 = vsel %vm674_vm0, %v2157_v9, %v2156_v6  ;;  %v6007_v62 = vsel %vm674_vm0, %v2330_v47, %v2331_v48 }
 0x3b0   : > { %2573 = vrot.lane.b32.xlu0 %v5960_v39, %s7167_s9  ;;  %2171 = vrot.lane.b32.xlu1 %v5971_v58, %s7167_s9  ;;  %v6000_v0 = vsel %vm664_vm3, %v2159_v60, 0.0  ;;  %v2333_v33 = vsel %vm674_vm0, %v2331_v48, %v2330_v47  ;;  %v6028_v23 = vsel %vm681_vm1, %v2336_v49, %v2337_v26  ;;  %v2165_v1 = vsel %vm681_vm1, %v2163_v2, %v2162_v28 }
 0x3b1   : > { %v6020_v31 = vsel %vm664_vm3, %v2333_v33, 0.0  ;;  %v2515_v59 = vsel %vm674_vm0, %v2513_v38, %v2512_v46  ;;  %v6039_v8 = vsel %vm667_vm2, %v2165_v1, 0.0  ;;  %v6052_v30 = vsel %vm674_vm0, %v2512_v46, %v2513_v38 }
 0x3b2   : > { %v6045_v43 = vsel %vm664_vm3, %v2515_v59, 0.0  ;;  %v2339_v44 = vsel %vm681_vm1, %v2337_v26, %v2336_v49  ;;  %v2697_v17 = vsel %vm674_vm0, %v2695_v57, %v2694_v42  ;;  %v6077_v25 = vsel %vm681_vm1, %v2518_v35, %v2519_v20 }
 0x3b3   : > { %v6064_v56 = vsel %vm667_vm2, %v2339_v44, 0.0  ;;  %v6070_v40 = vsel %vm664_vm3, %v2697_v17, 0.0  ;;  %v2521_v51 = vsel %vm681_vm1, %v2519_v20, %v2518_v35  ;;  %v6092_v4 = vsel %vm674_vm0, %v2694_v42, %v2695_v57 }
 0x3b4   : > { %v6085_v36 = vsel %vm667_vm2, %v2521_v51, 0.0  ;;  %v2703_v54 = vsel %vm681_vm1, %v2701_v61, %v2700_v12  ;;  %v6107_v37 = vsel %vm681_vm1, %v2700_v12, %v2701_v61 }
 0x3b5   : > { %2388 = vrot.lane.b32.xlu2 %v5975_v3, %s7167_s9  ;;  %v6101_v41 = vsel %vm667_vm2, %v2703_v54, 0.0 }
 0x3b8   : > { %2755 = vrot.lane.b32.xlu0 %v5978_v55, %s7167_s9  ;;  %2262 = vrot.lane.b32.xlu1 %v5987_v13, %s7167_s9 }
 0x3bd   : > { %2570 = vrot.lane.b32.xlu2 %v5993_v19, %s7167_s9 }
 0x3c0   : > { %2168 = vrot.lane.b32.xlu0 %v6000_v0, %s7167_s9  ;;  %2345 = vrot.lane.b32.xlu1 %v6007_v62, %s7167_s9 }
 0x3c5   : > { %2752 = vrot.lane.b32.xlu2 %v6013_v18, %s7167_s9 }
 0x3c8   : > { %2342 = vrot.lane.b32.xlu0 %v6020_v31, %s7167_s9  ;;  %2436 = vrot.lane.b32.xlu1 %v6028_v23, %s7167_s9 }
 0x3cd   : > { %2265 = vrot.lane.b32.xlu2 %v6039_v8, %s7167_s9 }
 0x3d0   : > { %2524 = vrot.lane.b32.xlu0 %v6045_v43, %s7167_s9  ;;  %2527 = vrot.lane.b32.xlu1 %v6052_v30, %s7167_s9 }
 0x3d5   : > { %2439 = vrot.lane.b32.xlu2 %v6064_v56, %s7167_s9 }
 0x3d8   : > { %2706 = vrot.lane.b32.xlu0 %v6070_v40, %s7167_s9  ;;  %2618 = vrot.lane.b32.xlu1 %v6077_v25, %s7167_s9 }
 0x3dd   : > { %2621 = vrot.lane.b32.xlu2 %v6085_v36, %s7167_s9 }
 0x3e0   : > { %2709 = vrot.lane.b32.xlu1 %v6092_v4, %s7167_s9 }
 0x3e5   : > { %2803 = vrot.lane.b32.xlu2 %v6101_v41, %s7167_s9 }
 0x3e8   : > { %2800 = vrot.lane.b32.xlu1 %v6107_v37, %s7167_s9 }
 0x407   : > { %v2215_v27 = vpop.permute.xlu2 %2214 }
 0x408   : > { %v2216_v63 = vsel %vm686_vm5, %v2215_v27, %v5958_v45 }
 0x409   : > { %2220 = vrot.lane.b32.xlu1 %v2216_v63, %s7167_s9 }
 0x40f   : > { %v2389_v22 = vpop.permute.xlu2 %2388 }
 0x410   : > { %v2390_v11 = vsel %vm686_vm5, %v2389_v22, %v5975_v3 }
 0x411   : > { %2394 = vrot.lane.b32.xlu1 %v2390_v11, %s7167_s9 }
 0x412   : > { %v2218_v53 = vpop.permute.xlu0 %2217 }
 0x413   : > { %v2219_v5 = vsel %vm686_vm5, %v2218_v53, %v5938_v7 }
 0x414   : > { %2222 = vrot.lane.b32.xlu2 %v2219_v5, %s7167_s9 }
 0x417   : > { %v2571_v50 = vpop.permute.xlu2 %2570 }
 0x418   : > { %v2572_v34 = vsel %vm686_vm5, %v2571_v50, %v5993_v19 }
 0x41a   : > { %v2392_v10 = vpop.permute.xlu0 %2391 }
 0x41b   : > { %v2393_v6 = vsel %vm686_vm5, %v2392_v10, %v5947_v24 }
 0x41c   : > { %2396 = vrot.lane.b32.xlu2 %v2393_v6, %s7167_s9 }
 0x41f   : > { %v2753_v9 = vpop.permute.xlu2 %2752 }
 0x420   : > { %v2754_v21 = vsel %vm686_vm5, %v2753_v9, %v6013_v18 }
 0x422   : > { %v2574_v14 = vpop.permute.xlu0 %2573  ;;  %v2172_v52 = vpop.permute.xlu1 %2171 }
 0x423   : > { %v2575_v16 = vsel %vm686_vm5, %v2574_v14, %v5960_v39  ;;  %v2173_v29 = vsel %vm686_vm5, %v2172_v52, %v5971_v58 }
 0x424   : > { %2576 = vrot.lane.b32.xlu2 %v2572_v34, %s7167_s9  ;;  %2578 = vrot.lane.b32.xlu0 %v2575_v16, %s7167_s9 }
 0x427   : > { %v2266_v28 = vpop.permute.xlu2 %2265 }
 0x428   : > { %v2267_v10 = vsel %vm686_vm5, %v2266_v28, %v6039_v8 }
 0x42a   : > { %v2756_v2 = vpop.permute.xlu0 %2755  ;;  %v2263_v47 = vpop.permute.xlu1 %2262 }
 0x42b   : > { %v2757_v60 = vsel %vm686_vm5, %v2756_v2, %v5978_v55  ;;  %v2264_v38 = vsel %vm686_vm5, %v2263_v47, %v5987_v13 }
 0x42c   : > { %2758 = vrot.lane.b32.xlu2 %v2754_v21, %s7167_s9  ;;  %2760 = vrot.lane.b32.xlu0 %v2757_v60, %s7167_s9 }
 0x42f   : > { %v2440_v49 = vpop.permute.xlu2 %2439 }
 0x430   : > { %v2441_v6 = vsel %vm686_vm5, %v2440_v49, %v6064_v56 }
 0x432   : > { %v2169_v48 = vpop.permute.xlu0 %2168  ;;  %v2346_v26 = vpop.permute.xlu1 %2345 }
 0x433   : > { %v2170_v33 = vsel %vm686_vm5, %v2169_v48, %v6000_v0  ;;  %v2347_v42 = vsel %vm686_vm5, %v2346_v26, %v6007_v62 }
 0x434   : > { %2174 = vrot.lane.b32.xlu2 %v2170_v33, %s7167_s9  ;;  %2176 = vrot.lane.b32.xlu0 %v2173_v29, %s7167_s9 }
 0x437   : > { %v2622_v15 = vpop.permute.xlu2 %2621 }
 0x438   : > { %v2623_v57 = vsel %vm686_vm5, %v2622_v15, %v6085_v36 }
 0x43a   : > { %v2343_v46 = vpop.permute.xlu0 %2342  ;;  %v2437_v59 = vpop.permute.xlu1 %2436 }
 0x43b   : > { %v2344_v1 = vsel %vm686_vm5, %v2343_v46, %v6020_v31  ;;  %v2438_v20 = vsel %vm686_vm5, %v2437_v59, %v6028_v23 }
 0x43c   : > { %2348 = vrot.lane.b32.xlu2 %v2344_v1, %s7167_s9  ;;  %2268 = vrot.lane.b32.xlu0 %v2264_v38, %s7167_s9 }
 0x43f   : > { %v2804_v35 = vpop.permute.xlu2 %2803 }
 0x440   : > { %v2805_v51 = vsel %vm686_vm5, %v2804_v35, %v6101_v41 }
 0x442   : > { %v2528_v44 = vpop.permute.xlu1 %2527  ;;  %v2525_v54 = vpop.permute.xlu0 %2524 }
 0x443   : > { %v2529_v17 = vsel %vm686_vm5, %v2528_v44, %v6052_v30  ;;  %v2526_v27 = vsel %vm686_vm5, %v2525_v54, %v6045_v43 }
 0x444   : > { %2626 = vrot.lane.b32.xlu2 %v2623_v57, %s7167_s9  ;;  %2350 = vrot.lane.b32.xlu0 %v2347_v42, %s7167_s9 }
 0x445   : > { %2532 = vrot.lane.b32.xlu1 %v2529_v17, %s7167_s9 }
 0x44a   : > { %v2619_v12 = vpop.permute.xlu1 %2618  ;;  %v2707_v11 = vpop.permute.xlu0 %2706 }
 0x44b   : > { %v2620_v61 = vsel %vm686_vm5, %v2619_v12, %v6077_v25  ;;  %v2708_v53 = vsel %vm686_vm5, %v2707_v11, %v6070_v40 }
 0x44c   : > { %2808 = vrot.lane.b32.xlu2 %v2805_v51, %s7167_s9  ;;  %2442 = vrot.lane.b32.xlu0 %v2438_v20, %s7167_s9 }
 0x44d   : > { %2624 = vrot.lane.b32.xlu1 %v2620_v61, %s7167_s9 }
 0x452   : > { %v2710_v63 = vpop.permute.xlu1 %2709 }
 0x453   : > { %v2711_v22 = vsel %vm686_vm5, %v2710_v63, %v6092_v4 }
 0x454   : > { %2530 = vrot.lane.b32.xlu0 %v2526_v27, %s7167_s9 }
 0x455   : > { %2714 = vrot.lane.b32.xlu1 %v2711_v22, %s7167_s9 }
 0x45a   : > { %v2801_v5 = vpop.permute.xlu1 %2800 }
 0x45b   : > { %v2802_v50 = vsel %vm686_vm5, %v2801_v5, %v6107_v37 }
 0x45c   : > { %2712 = vrot.lane.b32.xlu0 %v2708_v53, %s7167_s9 }
 0x45d   : > { %2806 = vrot.lane.b32.xlu1 %v2802_v50, %s7167_s9 }
 0x465   : > { %2270 = vrot.lane.b32.xlu1 %v2267_v10, %s7167_s9 }
 0x46d   : > { %2444 = vrot.lane.b32.xlu1 %v2441_v6, %s7167_s9  ;;  %s6452_s9 = sld [smem:[#allocation10 + $0x400]] }
 0x46e   : > { %v2223_v9 = vpop.permute.xlu2 %2222 }
 0x46f   : > { %v2225_v14 = vsel %vm686_vm5, %v2223_v9, %v5938_v7 }
 0x470   : > { %2238 = vrot.lane.b32.xlu0 %v2225_v14, %s7170_s21 }
 0x475   : > { %2230 = vrot.lane.b32.xlu1 %v2225_v14, %s7171_s16 }
 0x476   : > { %v2397_v34 = vpop.permute.xlu2 %2396 }
 0x477   : > { %v2399_v16 = vsel %vm686_vm5, %v2397_v34, %v5947_v24 }
 0x478   : > { %2412 = vrot.lane.b32.xlu0 %v2399_v16, %s7170_s21 }
 0x47b   : > { %v2221_v52 = vpop.permute.xlu1 %2220 }
 0x47c   : > { %v2224_v28 = vsel %vm686_vm5, %v2221_v52, %v5958_v45  ;;  %v2245_v52 = vstv %s6249_s4  ;;  %s6494_s4 = sld [smem:[#allocation10 + $0x103]] }
 0x47d   : > { %2404 = vrot.lane.b32.xlu1 %v2399_v16, %s7171_s16  ;;  %2236 = vrot.lane.b32.xlu2 %v2224_v28, %s7170_s21 }
 0x47e   : > { %v2577_v60 = vpop.permute.xlu2 %2576 }
 0x47f   : > { %v2580_v47 = vsel %vm686_vm5, %v2577_v60, %v5993_v19 }
 0x480   : > { %2228 = vrot.lane.b32.xlu0 %v2224_v28, %s7171_s16  ;;  %v2249_v28 = vstv %s6247_s20  ;;  %s6480_s20 = sld [smem:[#allocation10 + $0x402]] }
 0x483   : > { %v2395_v2 = vpop.permute.xlu1 %2394 }
 0x484   : > { %v2398_v21 = vsel %vm686_vm5, %v2395_v2, %v5975_v3 }
 0x485   : > { %2410 = vrot.lane.b32.xlu2 %v2398_v21, %s7170_s21 }
 0x486   : > { %v2759_v33 = vpop.permute.xlu2 %2758 }
 0x487   : > { %v2762_v26 = vsel %vm686_vm5, %v2759_v33, %v6013_v18 }
 0x488   : > { %2402 = vrot.lane.b32.xlu0 %v2398_v21, %s7171_s16 }
 0x48e   : > { %v2175_v59 = vpop.permute.xlu2 %2174 }
 0x48f   : > { %v2178_v57 = vsel %vm686_vm5, %v2175_v59, %v6000_v0 }
 0x490   : > { %2584 = vrot.lane.b32.xlu0 %v2580_v47, %s7171_s16 }
 0x496   : > { %v2579_v48 = vpop.permute.xlu0 %2578  ;;  %v2349_v11 = vpop.permute.xlu2 %2348 }
 0x497   : > { %v2581_v29 = vsel %vm686_vm5, %v2579_v48, %v5960_v39  ;;  %v2352_v14 = vsel %vm686_vm5, %v2349_v11, %v6020_v31  ;;  %v2251_v48 = vmul.f32 %v2249_v28, %v5938_v7  ;;  %v2419_v7 = vstv %s6264_s8  ;;  %s6522_s8 = sld [smem:[#allocation11]] }
 0x498   : > { %2586 = vrot.lane.b32.xlu1 %v2581_v29, %s7171_s16  ;;  %2592 = vrot.lane.b32.xlu0 %v2580_v47, %s7170_s21  ;;  %v2250_v11 = vmul.f32 %v2249_v28, %v5958_v45 }
 0x49e   : > { %v2761_v49 = vpop.permute.xlu0 %2760  ;;  %v2627_v6 = vpop.permute.xlu2 %2626 }
 0x49f   : > { %v2763_v38 = vsel %vm686_vm5, %v2761_v49, %v5978_v55  ;;  %v2255_v49 = vstv %s6256_s17  ;;  %s6500_s17 = sld [smem:[#allocation10 + $0x401]] }
 0x4a0   : > { %2594 = vrot.lane.b32.xlu1 %v2581_v29, %s7170_s21  ;;  %2766 = vrot.lane.b32.xlu0 %v2762_v26, %s7171_s16 }
 0x4a6   : > { %v2177_v46 = vpop.permute.xlu0 %2176  ;;  %v6258_v16 = vpop.permute.xlu2 %2808 }
 0x4a7   : > { %v2179_v1 = vsel %vm686_vm5, %v2177_v46, %v5971_v58 }
 0x4a8   : > { %2768 = vrot.lane.b32.xlu1 %v2763_v38, %s7171_s16  ;;  %2184 = vrot.lane.b32.xlu2 %v2179_v1, %s7171_s16 }
 0x4a9   : > { %2774 = vrot.lane.b32.xlu0 %v2762_v26, %s7170_s21 }
 0x4ae   : > { %v2269_v15 = vpop.permute.xlu0 %2268 }
 0x4af   : > { %v2272_v42 = vsel %vm686_vm5, %v2269_v15, %v5987_v13 }
 0x4b0   : > { %2776 = vrot.lane.b32.xlu1 %v2763_v38, %s7170_s21  ;;  %2276 = vrot.lane.b32.xlu2 %v2272_v42, %s7171_s16 }
 0x4b1   : > { %2190 = vrot.lane.b32.xlu0 %v2178_v57, %s7170_s21 }
 0x4b6   : > { %v2351_v44 = vpop.permute.xlu0 %2350 }
 0x4b7   : > { %v2353_v17 = vsel %vm686_vm5, %v2351_v44, %v6007_v62  ;;  %v2533_v35 = vpop.permute.xlu1 %2532 }
 0x4b8   : > { %2192 = vrot.lane.b32.xlu1 %v2179_v1, %s7170_s21  ;;  %2358 = vrot.lane.b32.xlu2 %v2353_v17, %s7171_s16  ;;  %v2535_v61 = vsel %vm686_vm5, %v2533_v35, %v6052_v30 }
 0x4be   : > { %v2443_v20 = vpop.permute.xlu0 %2442 }
 0x4bf   : > { %v2446_v51 = vsel %vm686_vm5, %v2443_v20, %v6028_v23  ;;  %v2625_v12 = vpop.permute.xlu1 %2624 }
 0x4c0   : > { %2284 = vrot.lane.b32.xlu1 %v2272_v42, %s7170_s21  ;;  %2450 = vrot.lane.b32.xlu2 %v2446_v51, %s7171_s16  ;;  %v2628_v27 = vsel %vm686_vm5, %v2625_v12, %v6077_v25  ;;  %v2423_v42 = vstv %s6260_s29  ;;  %s6509_s29 = sld [smem:[#allocation10 + $0x303]] }
 0x4c1   : > { %v2425_v20 = vmul.f32 %v2423_v42, %v5947_v24  ;;  %v2424_v28 = vmul.f32 %v2423_v42, %v5975_v3 }
 0x4c6   : > { %v2531_v63 = vpop.permute.xlu0 %2530 }
 0x4c7   : > { %v2715_v54 = vpop.permute.xlu1 %2714  ;;  %v2534_v44 = vsel %vm686_vm5, %v2531_v63, %v6045_v43 }
 0x4c8   : > { %2366 = vrot.lane.b32.xlu1 %v2353_v17, %s7170_s21  ;;  %2548 = vrot.lane.b32.xlu2 %v2535_v61, %s7170_s21  ;;  %v2717_v53 = vsel %vm686_vm5, %v2715_v54, %v6092_v4  ;;  %v2429_v54 = vstv %s6277_s25  ;;  %s6528_s25 = sld [smem:[#allocation13]] }
 0x4ce   : > { %v2713_v10 = vpop.permute.xlu0 %2712 }
 0x4cf   : > { %v2807_v22 = vpop.permute.xlu1 %2806  ;;  %v2716_v59 = vsel %vm686_vm5, %v2713_v10, %v6070_v40 }
 0x4d0   : > { %2458 = vrot.lane.b32.xlu1 %v2446_v51, %s7170_s21  ;;  %2632 = vrot.lane.b32.xlu2 %v2628_v27, %s7171_s16  ;;  %v2810_v15 = vsel %vm686_vm5, %v2807_v22, %v6107_v37 }
 0x4d7   : > { %v2271_v5 = vpop.permute.xlu1 %2270  ;;  %v2237_v38 = vpop.permute.xlu2 %2236 }
 0x4d8   : > { %2540 = vrot.lane.b32.xlu1 %v2535_v61, %s7171_s16  ;;  %2722 = vrot.lane.b32.xlu2 %v2717_v53, %s7171_s16  ;;  %v2273_v50 = vsel %vm686_vm5, %v2271_v5, %v6039_v8  ;;  %v2242_v61 = vsel %vm669_vm8, %v2237_v38, 0.0  ;;  %v2611_v38 = vstv %s3266_s6  ;;  %s6552_s6 = sld [smem:[#allocation13 + $0x3]] }
 0x4d9   : > { %2278 = vrot.lane.b32.xlu0 %v2273_v50, %s7171_s16  ;;  %v2256_v5 = vmul.f32 %v2255_v49, %v2242_v61 }
 0x4df   : > { %v2445_v9 = vpop.permute.xlu1 %2444 }
 0x4e0   : > { %2182 = vrot.lane.b32.xlu1 %v2178_v57, %s7171_s16  ;;  %2640 = vrot.lane.b32.xlu2 %v2628_v27, %s7170_s21  ;;  %v2447_v21 = vsel %vm686_vm5, %v2445_v9, %v6064_v56  ;;  %v2411_v9 = vpop.permute.xlu2 %2410 }
 0x4e1   : > { %2364 = vrot.lane.b32.xlu0 %v2352_v14, %s7170_s21  ;;  %v2416_v45 = vsel %vm669_vm8, %v2411_v9, 0.0 }
 0x4e2   : > { %v2239_v34 = vpop.permute.xlu0 %2238 }
 0x4e3   : > { %v2243_v60 = vsel %vm669_vm8, %v2239_v34, 0.0  ;;  %v2629_v34 = vsel %vm686_vm5, %v2627_v6, %v6085_v36 }
 0x4e4   : > { %v2257_v26 = vmul.f32 %v2255_v49, %v2243_v60 }
 0x4e7   : > { %v2231_v2 = vpop.permute.xlu1 %2230 }
 0x4e8   : > { %2356 = vrot.lane.b32.xlu1 %v2352_v14, %s7171_s16  ;;  %2730 = vrot.lane.b32.xlu2 %v2717_v53, %s7170_s21  ;;  %v2235_v47 = vsel %vm668_vm7, %v2231_v2, 0.0 }
 0x4e9   : > { %v2247_v29 = vmul.f32 %v2245_v52, %v2235_v47  ;;  %2452 = vrot.lane.b32.xlu0 %v2447_v21, %s7171_s16  ;;  %v2430_v47 = vmul.f32 %v2429_v54, %v2416_v45 }
 0x4ea   : > { %v2413_v33 = vpop.permute.xlu0 %2412 }
 0x4eb   : > { %v2253_v46 = vadd.f32 %v2251_v48, %v2247_v29  ;;  %v2417_v17 = vsel %vm669_vm8, %v2413_v33, 0.0  ;;  %v2601_v33 = vstv %s3264_s23  ;;  %s6539_s23 = sld [smem:[#allocation13 + $0x1]] }
 0x4ec   : > { %v2431_v63 = vmul.f32 %v2429_v54, %v2417_v17 }
 0x4ed   : > { %v6279_v1 = vadd.f32 %v2257_v26, %v2253_v46  ;;  %v2811_v26 = vsel %vm686_vm5, %v6258_v16, %v6101_v41  ;;  %v2605_v46 = vstv %s3265_s10  ;;  %s6546_s10 = sld [smem:[#allocation13 + $0x2]] }
 0x4ef   : > { %v2405_v57 = vpop.permute.xlu1 %2404 }
 0x4f0   : > { %2720 = vrot.lane.b32.xlu1 %v2716_v59, %s7171_s16  ;;  %2814 = vrot.lane.b32.xlu2 %v2810_v15, %s7171_s16  ;;  %v2409_v35 = vsel %vm668_vm7, %v2405_v57, 0.0 }
 0x4f1   : > { %v2421_v51 = vmul.f32 %v2419_v7, %v2409_v35  ;;  %2538 = vrot.lane.b32.xlu0 %v2534_v44, %s7171_s16 }
 0x4f2   : > { %v2229_v12 = vpop.permute.xlu0 %2228 }
 0x4f3   : > { %v2234_v27 = vsel %vm668_vm7, %v2229_v12, 0.0  ;;  %v2427_v22 = vadd.f32 %v2425_v20, %v2421_v51  ;;  %v2607_v20 = vmul.f32 %v2605_v46, %v5960_v39 }
 0x4f4   : > { %v2246_v53 = vmul.f32 %v2245_v52, %v2234_v27 }
 0x4f5   : > { %v6303_v10 = vadd.f32 %v2431_v63, %v2427_v22 }
 0x4f6   : > { %v2252_v24 = vadd.f32 %v2250_v11, %v2246_v53  ;;  %v2783_v11 = vstv %s6346_s28  ;;  %v2787_v53 = vstv %s6342_s5  ;;  %s6565_s5 = sld [smem:[#allocation11 + $0x1]] }
 0x4f7   : > { %v2789_v9 = vmul.f32 %v2787_v53, %v5978_v55  ;;  %s6571_s28 = sld [smem:[#allocation13 + $0x80]] }
 0x4f8   : > { %v6305_v14 = vadd.f32 %v2256_v5, %v2252_v24  ;;  %2728 = vrot.lane.b32.xlu1 %v2716_v59, %s7170_s21  ;;  %2286 = vrot.lane.b32.xlu2 %v2273_v50, %s7170_s21 }
 0x4f9   : > { %2634 = vrot.lane.b32.xlu0 %v2629_v34, %s7171_s16 }
 0x4fa   : > { %v2403_v2 = vpop.permute.xlu0 %2402 }
 0x4fb   : > { %v2408_v52 = vsel %vm668_vm7, %v2403_v2, 0.0  ;;  %v2793_v2 = vstv %s6350_s14  ;;  %s6588_s14 = sld [smem:[#allocation13 + $0x82]] }
 0x4fc   : > { %v2420_v60 = vmul.f32 %v2419_v7, %v2408_v52 }
 0x4fe   : > { %v2426_v48 = vadd.f32 %v2424_v28, %v2420_v60  ;;  %v2199_v60 = vstv %s6352_s19  ;;  %s6578_s19 = sld [smem:[#allocation13 + $0x81]] }
 0x500   : > { %v6317_v29 = vadd.f32 %v2430_v47, %v2426_v48  ;;  %2822 = vrot.lane.b32.xlu1 %v2810_v15, %s7170_s21  ;;  %2460 = vrot.lane.b32.xlu2 %v2447_v21, %s7170_s21  ;;  %v2606_v21 = vmul.f32 %v2605_v46, %v5993_v19 }
 0x501   : > { %2642 = vrot.lane.b32.xlu0 %v2629_v34, %s7170_s21 }
 0x502   : > { %v2185_v50 = vpop.permute.xlu2 %2184  ;;  %v2585_v6 = vpop.permute.xlu0 %2584 }
 0x503   : > { %v2590_v3 = vsel %vm668_vm7, %v2585_v6, 0.0  ;;  %v2189_v47 = vsel %vm668_vm7, %v2185_v50, 0.0  ;;  %v2203_v6 = vstv %s6356_s12  ;;  %s6592_s12 = sld [smem:[#allocation13 + $0x83]] }
 0x504   : > { %v2602_v49 = vmul.f32 %v2601_v33, %v2590_v3  ;;  %v2201_v55 = vmul.f32 %v2199_v60, %v2189_v47  ;;  %v2205_v3 = vmul.f32 %v2203_v6, %v5971_v58  ;;  %v2565_v47 = vstv %s6438_s11  ;;  %s6670_s11 = sld [smem:[#allocation13 + $0x181]] }
 0x506   : > { %v2608_v57 = vadd.f32 %v2606_v21, %v2602_v49 }
 0x508   : > { %2546 = vrot.lane.b32.xlu2 %v2534_v44, %s7170_s21 }
 0x509   : > { %2816 = vrot.lane.b32.xlu0 %v2811_v26, %s7171_s16  ;;  %s6474_s16 = sld [smem:[#allocation10 + $0x3]] }
 0x50a   : > { %v6330_v59 = vpop.permute.xlu2 %2276  ;;  %v2593_v15 = vpop.permute.xlu0 %2592 }
 0x50b   : > { %v2598_v7 = vsel %vm669_vm8, %v2593_v15, 0.0  ;;  %v2587_v42 = vpop.permute.xlu1 %2586 }
 0x50c   : > { %v2612_v17 = vmul.f32 %v2611_v38, %v2598_v7  ;;  %v2591_v16 = vsel %vm668_vm7, %v2587_v42, 0.0 }
 0x50d   : > { %v2603_v35 = vmul.f32 %v2601_v33, %v2591_v16  ;;  %v2377_v16 = vstv %s6392_s15  ;;  %s6634_s15 = sld [smem:[#allocation13 + $0x101]] }
 0x50e   : > { %v6334_v44 = vadd.f32 %v2612_v17, %v2608_v57  ;;  %v2373_v57 = vstv %s6390_s3  ;;  %s6632_s3 = sld [smem:[#allocation13 + $0x100]] }
 0x50f   : > { %v2609_v61 = vadd.f32 %v2607_v20, %v2603_v35 }
 0x510   : > { %2824 = vrot.lane.b32.xlu2 %v2811_v26, %s7170_s21  ;;  %v2209_v26 = vstv %s6366_s1  ;;  %s6468_s21 = sld [smem:[#allocation10 + $0x302]] }
 0x511   : > { %s6626_s1 = sld [smem:[#allocation11 + $0x2]] }
 0x512   : > { %v2359_v19 = vpop.permute.xlu2 %2358  ;;  %v6394_v15 = vpop.permute.xlu0 %2766 }
 0x513   : > { %v2595_v51 = vpop.permute.xlu1 %2594  ;;  %v2363_v17 = vsel %vm668_vm7, %v2359_v19, 0.0 }
 0x514   : > { %v2599_v12 = vsel %vm669_vm8, %v2595_v51, 0.0  ;;  %v2375_v35 = vmul.f32 %v2373_v57, %v2363_v17  ;;  %v2653_v17 = vstv %s6440_s24  ;;  %s6705_s24 = sld [smem:[#allocation14 + $0x2]] }
 0x515   : > { %v2613_v54 = vmul.f32 %v2611_v38, %v2599_v12  ;;  %v2207_v38 = vadd.f32 %v2205_v3, %v2201_v55  ;;  %v2379_v12 = vmul.f32 %v2377_v16, %v6007_v62 }
 0x517   : > { %v6344_v27 = vadd.f32 %v2613_v54, %v2609_v61 }
 0x51a   : > { %v6348_v63 = vpop.permute.xlu2 %2450 }
 0x51b   : > { %v2769_v22 = vpop.permute.xlu1 %2768  ;;  %v6411_v20 = vpop.permute.xlu0 %2774 }
 0x51c   : > { %v2773_v39 = vsel %vm668_vm7, %v2769_v22, 0.0  ;;  %v2381_v22 = vadd.f32 %v2379_v12, %v2375_v35 }
 0x51d   : > { %v2785_v5 = vmul.f32 %v2783_v11, %v2773_v39 }
 0x51f   : > { %v2791_v52 = vadd.f32 %v2789_v9, %v2785_v5 }
 0x522   : > { %v2549_v24 = vpop.permute.xlu2 %2548 }
 0x523   : > { %v2777_v34 = vpop.permute.xlu1 %2776  ;;  %v2553_v55 = vsel %vm669_vm8, %v2549_v24, 0.0  ;;  %v2741_v24 = vstv %s6442_s0  ;;  %s6677_s0 = sld [smem:[#allocation13 + $0x182]] }
 0x524   : > { %v2781_v45 = vsel %vm669_vm8, %v2777_v34, 0.0  ;;  %v2191_v34 = vpop.permute.xlu0 %2190  ;;  %v2567_v35 = vmul.f32 %v2565_v47, %v2553_v55  ;;  %v2303_v55 = vstv %s6452_s9  ;;  %s6695_s9 = sld [smem:[#allocation14]] }
 0x525   : > { %v2795_v28 = vmul.f32 %v2793_v2, %v2781_v45  ;;  %v2555_v45 = vstv %s6432_s22  ;;  %s6657_s22 = sld [smem:[#allocation11 + $0x3]] }
 0x527   : > { %v6375_v48 = vadd.f32 %v2795_v28, %v2791_v52  ;;  %v2559_v52 = vstv %s6428_s26  ;;  %s6651_s26 = sld [smem:[#allocation10 + $0x403]] }
 0x52a   : > { %v6380_v33 = vpop.permute.xlu2 %2632 }
 0x52b   : > { %v2193_v49 = vpop.permute.xlu1 %2192 }
 0x52c   : > { %v2197_v46 = vsel %vm669_vm8, %v2193_v49, 0.0 }
 0x52d   : > { %v2211_v21 = vmul.f32 %v2209_v26, %v2197_v46  ;;  %v2297_v46 = vstv %s6423_s13  ;;  %s6641_s13 = sld [smem:[#allocation13 + $0x103]] }
 0x52f   : > { %v2213_v50 = vadd.f32 %v2211_v21, %v2207_v38  ;;  %v2561_v38 = vmul.f32 %v2559_v52, %v6052_v30  ;;  %v2835_v30 = vstv %s6444_s2 }
 0x531   : > { %v6397_v58 = vadd.f32 %v6279_v1, %v2213_v50  ;;  %v2383_v1 = vstv %s6401_s30  ;;  %v2471_v50 = vstv %s6434_s27  ;;  %s6636_s30 = sld [smem:[#allocation13 + $0x102]] }
 0x532   : > { %v6399_v7 = vpop.permute.xlu2 %2722  ;;  %s6662_s27 = sld [smem:[#allocation13 + $0x180]] }
 0x533   : > { %v6403_v42 = vpop.permute.xlu1 %2284 }
 0x53a   : > { %v6413_v51 = vpop.permute.xlu2 %2640 }
 0x53b   : > { %v2367_v61 = vpop.permute.xlu1 %2366 }
 0x53c   : > { %v2371_v54 = vsel %vm669_vm8, %v2367_v61, 0.0  ;;  %v2298_v61 = vmul.f32 %v2297_v46, %v5987_v13 }
 0x53d   : > { %v2385_v39 = vmul.f32 %v2383_v1, %v2371_v54  ;;  %v2788_v54 = vmul.f32 %v2787_v53, %v6013_v18  ;;  %v2282_v18 = vsel %vm668_vm7, %v6330_v59, 0.0  ;;  %v2204_v59 = vmul.f32 %v2203_v6, %v6000_v0 }
 0x53f   : > { %v2387_v5 = vadd.f32 %v2385_v39, %v2381_v22  ;;  %v6484_v22 = vmul.f32 %v2471_v50, %v6028_v23  ;;  %v6489_v39 = vmul.f32 %v2653_v17, %v6077_v25  ;;  %v2299_v23 = vmul.f32 %v2297_v46, %v6039_v8 }
 0x541   : > { %v6426_v19 = vadd.f32 %v6303_v10, %v2387_v5  ;;  %v6492_v5 = vmul.f32 %v2741_v24, %v6092_v4  ;;  %v2772_v4 = vsel %vm668_vm7, %v6394_v15, 0.0  ;;  %v2290_v15 = vsel %vm669_vm8, %v6403_v42, 0.0 }
 0x542   : > { %v6430_v9 = vpop.permute.xlu2 %2730  ;;  %v2784_v42 = vmul.f32 %v2783_v11, %v2772_v4  ;;  %v2780_v11 = vsel %vm669_vm8, %v6411_v20, 0.0 }
 0x543   : > { %v6436_v62 = vpop.permute.xlu1 %2458 }
 0x54a   : > { %v6448_v10 = vpop.permute.xlu2 %2814 }
 0x54b   : > { %v2541_v28 = vpop.permute.xlu1 %2540  ;;  %v2279_v3 = vpop.permute.xlu0 %2278 }
 0x54c   : > { %v2545_v49 = vsel %vm668_vm7, %v2541_v28, 0.0  ;;  %v2293_v28 = vstv %s6446_s18  ;;  %v2283_v53 = vsel %vm668_vm7, %v2279_v3, 0.0  ;;  %v2196_v3 = vsel %vm669_vm8, %v2191_v34, 0.0  ;;  %s6685_s18 = sld [smem:[#allocation13 + $0x183]] }
 0x54d   : > { %v2557_v21 = vmul.f32 %v2555_v45, %v2545_v49  ;;  %v2295_v6 = vmul.f32 %v2293_v28, %v2283_v53 }
 0x54f   : > { %v2563_v12 = vadd.f32 %v2561_v38, %v2557_v21  ;;  %v2473_v21 = vmul.f32 %v2471_v50, %v6064_v56  ;;  %v2638_v50 = vsel %vm668_vm7, %v6380_v33, 0.0  ;;  %v2301_v53 = vadd.f32 %v2299_v23, %v2295_v6 }
 0x551   : > { %v2569_v13 = vadd.f32 %v2567_v35, %v2563_v12  ;;  %v2467_v35 = vstv %s6460_s7  ;;  %v2456_v12 = vsel %vm668_vm7, %v6348_v63, 0.0  ;;  %v2649_v63 = vstv %s6468_s21  ;;  %s6703_s7 = sld [smem:[#allocation14 + $0x1]] }
 0x552   : > { %v2287_v25 = vpop.permute.xlu2 %2286  ;;  %v2468_v4 = vmul.f32 %v2467_v35, %v2456_v12  ;;  %v2311_v12 = vstv %s6522_s8  ;;  %s6709_s21 = sld [smem:[#allocation14 + $0x3]] }
 0x553   : > { %v2183_v49 = vpop.permute.xlu1 %2182  ;;  %v6515_v8 = vadd.f32 %v6344_v27, %v2569_v13  ;;  %v2291_v46 = vsel %vm669_vm8, %v2287_v25, 0.0  ;;  %v2365_v38 = vpop.permute.xlu0 %2364  ;;  %v2294_v27 = vmul.f32 %v2293_v28, %v2282_v18  ;;  %v2378_v13 = vmul.f32 %v2377_v16, %v6020_v31 }
 0x554   : > { %v2188_v0 = vsel %vm668_vm7, %v2183_v49, 0.0  ;;  %v2210_v28 = vmul.f32 %v2209_v26, %v2196_v3  ;;  %v2304_v18 = vmul.f32 %v2303_v55, %v2290_v15  ;;  %v2305_v56 = vmul.f32 %v2303_v55, %v2291_v46 }
 0x555   : > { %v2200_v34 = vmul.f32 %v2199_v60, %v2188_v0  ;;  %v6557_v31 = vmul.f32 %v2559_v52, %v6045_v43  ;;  %v6560_v26 = vmul.f32 %v2741_v24, %v6070_v40  ;;  %v2300_v16 = vadd.f32 %v2298_v61, %v2294_v27 }
 0x556   : > { %v6567_v25 = vadd.f32 %v2788_v54, %v2784_v42  ;;  %v2737_v55 = vstv %s6474_s16  ;;  %v2659_v43 = vstv %s6480_s20  ;;  %v6575_v40 = vmul.f32 %v2793_v2, %v2780_v11  ;;  %s7172_s16 = sld [smem:[#allocation24_spill]] }
 0x557   : > { %v2206_v60 = vadd.f32 %v2204_v59, %v2200_v34  ;;  %v2306_v24 = vadd.f32 %v2304_v18, %v2300_v16  ;;  %v2307_v61 = vadd.f32 %v2305_v56, %v2301_v53  ;;  %v2650_v54 = vmul.f32 %v2649_v63, %v2638_v50 }
 0x558   : > { %v2477_v59 = vstv %s6500_s17  ;;  %v2464_v49 = vsel %vm669_vm8, %v6436_v62, 0.0  ;;  %v2370_v2 = vsel %vm669_vm8, %v2365_v38, 0.0  ;;  %v2474_v38 = vadd.f32 %v6484_v22, %v2468_v4  ;;  %s7173_s17 = sld [smem:[#allocation27_spill]] }
 0x559   : > { %v2212_v20 = vadd.f32 %v2210_v28, %v2206_v60  ;;  %v2747_v0 = vstv %s6494_s4  ;;  %v2646_v34 = vsel %vm669_vm8, %v6413_v51, 0.0  ;;  %v2478_v42 = vmul.f32 %v2477_v59, %v2464_v49 }
 0x55a   : > { %v2461_v52 = vpop.permute.xlu2 %2460  ;;  %v2309_v28 = vadd.f32 %v2307_v61, %v6397_v58  ;;  %v2384_v18 = vmul.f32 %v2383_v1, %v2370_v2  ;;  %v2315_v11 = vstv %s6528_s25  ;;  %v2319_v16 = vstv %s6539_s23  ;;  %s7174_s23 = sld [smem:[#allocation107_spill]] }
 0x55b   : > { %v2260_v33 = vadd.f32 %v6305_v14, %v2212_v20  ;;  %v2357_v23 = vpop.permute.xlu1 %2356  ;;  %v2453_v3 = vpop.permute.xlu0 %2452  ;;  %v2465_v15 = vsel %vm669_vm8, %v2461_v52, 0.0  ;;  %v2323_v50 = vstv %s6546_s10  ;;  %v2327_v51 = vstv %s6552_s6 }
 0x55c   : > { %v2457_v46 = vsel %vm668_vm7, %v2453_v3, 0.0  ;;  %v2362_v62 = vsel %vm668_vm7, %v2357_v23, 0.0  ;;  %v2479_v22 = vmul.f32 %v2477_v59, %v2465_v15  ;;  %v2660_v58 = vmul.f32 %v2659_v43, %v2646_v34  ;;  %s525_s20 = sand.u32 1, %s7172_s16  }
 0x55d   : > { %v2308_v14 = vadd.f32 %v2306_v24, %v2260_v33  ;;  %v2469_v27 = vmul.f32 %v2467_v35, %v2457_v46  ;;  %v2374_v6 = vmul.f32 %v2373_v57, %v2362_v62  ;;  %v2656_v35 = vadd.f32 %v6489_v39, %v2650_v54  ;;  %s3101_s4 = sshll.u32 %s525_s20, 6 }
 0x55e   : > { %v2831_v57 = vstv %s6509_s29  ;;  %v2313_v4 = vadd.f32 %v2311_v12, %v2309_v28  ;;  %v2485_v52 = vstv %s6565_s5  ;;  %v2489_v1 = vstv %s6571_s28  ;;  %s6752_s2 = scalar_lea.vmem [#allocation16], %s3101_s4  ;;  %s3305_s29 = sshll.u32 %s7173_s17, 6 }
 0x55f   : > { %v2475_v56 = vadd.f32 %v2473_v21, %v2469_v27  ;;  %v2380_v60 = vadd.f32 %v2378_v13, %v2374_v6  ;;  %v2480_v24 = vadd.f32 %v2478_v42, %v2474_v38  ;;  %v2495_v61 = vstv %s6578_s19  ;;  %s2925_s5 = sshll.u32 %s6752_s2, 4  ;;  %s2926_s5 = int_to_ptr.vmem [resolvable:$true] %s2925_s5 }
 0x560   : > { %v2312_v54 = vadd.f32 %v2311_v12, %v2308_v14  ;;  %v2501_v59 = vstv %s6588_s14  ;;  %v2507_v49 = vstv %s6592_s12  ;;  %v2325_v14 = vmul.f32 %v2323_v50, %v2313_v4  ;;  %s7175_s10 = smov %s7174_s23  ;;  %s2924_s6 = scalar_lea.hbm %s7174_s23, %s3305_s29 }
 0x561   : > { %v2481_v53 = vadd.f32 %v2479_v22, %v2475_v56  ;;  %v2386_v20 = vadd.f32 %v2384_v18, %v2380_v60  ;;  %v2329_v38 = vmul.f32 %v2327_v51, %v2313_v4  ;;  %s2927_s28 = sshll.u32 %s2924_s6, 4  ;;  %s2913_s14 = scalar_lea.sflag [#allocation3], %s525_s20  ;;  %s2928_s28 = int_to_ptr.hbm [resolvable:$true] %s2927_s28 }
 0x562   : > { %v2547_v21 = vpop.permute.xlu2 %2546  ;;  %v2316_v12 = vmul.f32 %v2315_v11, %v2312_v54  ;;  %s3583_s12 = sshra.s32 %s2928_s28, 4  ;;  %s3584_s12 = int_to_ptr.hbm [resolvable:$true] %s3583_s12 }
 0x563   : > { %v2721_v13 = vpop.permute.xlu1 %2720  ;;  %v2483_v39 = vadd.f32 %v2481_v53, %v6426_v19  ;;  %v2434_v33 = vadd.f32 %v6317_v29, %v2386_v20  ;;  %v2539_v23 = vpop.permute.xlu0 %2538  ;;  %v2552_v46 = vsel %vm669_vm8, %v2547_v21, 0.0  ;;  %v2317_v29 = vmul.f32 %v2315_v11, %v2313_v4  ;;  %p3590_p3 = scmp.lt.s32.totalorder %s3584_s12, %s7175_s10 }
 0x564   : > { %v2544_v2 = vsel %vm668_vm7, %v2539_v23, 0.0  ;;  %v2321_v19 = vmul.f32 %v2319_v16, %v2313_v4  ;;  %v2566_v18 = vmul.f32 %v2565_v47, %v2552_v46  ;;  %v2320_v47 = vmul.f32 %v2319_v16, %v2312_v54 }
 0x565   : > { %v2487_v3 = vadd.f32 %v2485_v52, %v2483_v39  ;;  %v2482_v15 = vadd.f32 %v2480_v24, %v2434_v33  ;;  %v2556_v62 = vmul.f32 %v2555_v45, %v2544_v2  ;;  %v2726_v39 = vsel %vm668_vm7, %v2721_v13, 0.0 }
 0x566   : > { %v2662_v23 = vadd.f32 %v2660_v58, %v2656_v35  ;;  %v2328_v2 = vmul.f32 %v2327_v51, %v2312_v54  ;;  %v2727_v51 = vsel %vm668_vm7, %v6399_v7, 0.0  ;;  %v2738_v58 = vmul.f32 %v2737_v55, %v2726_v39 }
 0x567   : > { %v2491_v27 = vmul.f32 %v2489_v1, %v2487_v3  ;;  %v2497_v6 = vmul.f32 %v2495_v61, %v2487_v3  ;;  %v2503_v34 = vmul.f32 %v2501_v59, %v2487_v3  ;;  %v2509_v42 = vmul.f32 %v2507_v49, %v2487_v3 }
 0x568   : > { %v2486_v28 = vadd.f32 %v2485_v52, %v2482_v15  ;;  %v2562_v45 = vadd.f32 %v6557_v31, %v2556_v62  ;;  %v2324_v31 = vmul.f32 %v2323_v50, %v2312_v54  ;;  %v2667_v54 = vstv %s6626_s1  ;;  %s3585_s1 = scalar_lea.hbm %s3584_s12, 64 }
 0x569   : > { %v6643_v22 = vadd.f32 %v2491_v27, %v2317_v29  ;;  %v6645_v56 = vadd.f32 %v2497_v6, %v2321_v19  ;;  %v6647_v60 = vadd.f32 %v2503_v34, %v2325_v14  ;;  %v6649_v53 = vadd.f32 %v2509_v42, %v2329_v38  ;;  %p3586_p0 = scmp.ne.s32.totalorder %s3584_s12, %s3585_s1 }
 0x56a   : > { %v2490_v20 = vmul.f32 %v2489_v1, %v2486_v28  ;;  %v2496_v4 = vmul.f32 %v2495_v61, %v2486_v28  ;;  %v2502_v21 = vmul.f32 %v2501_v59, %v2486_v28  ;;  %v2508_v24 = vmul.f32 %v2507_v49, %v2486_v28 }
 0x56b   : > { %v2729_v11 = vpop.permute.xlu1 %2728  ;;  %v2568_v52 = vadd.f32 %v2566_v18, %v2562_v45  ;;  %v2635_v33 = vpop.permute.xlu0 %2634  ;;  %v2820_v59 = vsel %vm668_vm7, %v6448_v10, 0.0  ;;  %v2671_v3 = vstv %s6632_s3  ;;  %v2677_v15 = vstv %s6634_s15  ;;  %p3587_p1 = pnand %p3586_p0, %p3771_p5 }
 0x56c   : > { %v2734_v1 = vsel %vm669_vm8, %v2729_v11, 0.0  ;;  %v2492_v61 = vadd.f32 %v2490_v20, %v2316_v12  ;;  %v2639_v50 = vsel %vm668_vm7, %v2635_v33, 0.0  ;;  %v2498_v13 = vadd.f32 %v2496_v4, %v2320_v47 }
 0x56d   : > { %v2616_v16 = vadd.f32 %v6334_v44, %v2568_v52  ;;  %v2504_v35 = vadd.f32 %v2502_v21, %v2324_v31  ;;  %v2510_v44 = vadd.f32 %v2508_v24, %v2328_v2  ;;  %v2651_v7 = vmul.f32 %v2649_v63, %v2639_v50  ;;  %p3588_p2 = pneg %p3587_p1 }
 0x56e   : > { %v2748_v46 = vmul.f32 %v2747_v0, %v2734_v1  ;;  %v2683_v62 = vstv %s6636_s30  ;;  %v2689_v29 = vstv %s6641_s13  ;;  %v2796_v19 = vadd.f32 %v6575_v40, %v6567_v25  ;;  %s3589_s30 = scalar_lea.hbm %s7175_s10, 128 }
 0x56f   : > { %v2664_v49 = vadd.f32 %v2662_v23, %v2616_v16  ;;  %v2836_v10 = vmul.f32 %v2835_v30, %v6107_v37  ;;  %v2655_v14 = vmul.f32 %v2653_v17, %v6085_v36  ;;  %v2739_v63 = vmul.f32 %v2737_v55, %v2727_v51  ;;  %v2825_v23 = vpop.permute.xlu2 %2824  ;;  %p3591_p4 = scmp.lt.s32.totalorder %s3589_s30, %s3585_s1 }
 0x570   : > { %v2832_v27 = vmul.f32 %v2831_v57, %v2820_v59  ;;  %v2744_v6 = vadd.f32 %v6560_v26, %v2738_v58  ;;  %v2841_v34 = vstv %s6651_s26  ;;  %v2735_v21 = vsel %vm669_vm8, %v6430_v9, 0.0 }
 0x571   : > { %v2668_v38 = vadd.f32 %v2667_v54, %v2664_v49  ;;  %v2657_v17 = vadd.f32 %v2655_v14, %v2651_v7  ;;  %v2749_v33 = vmul.f32 %v2747_v0, %v2735_v21  ;;  %v2849_v1 = vstv %s6657_s22  ;;  %p3592_p7 = por %p3591_p4, %p3590_p3 }
 0x572   : > { %v2750_v28 = vadd.f32 %v2748_v46, %v2744_v6  ;;  %v2838_v24 = vadd.f32 %v2836_v10, %v2832_v27  ;;  %v2853_v9 = vstv %s6662_s27  ;;  %v2865_v16 = vstv %s6677_s0 }
 0x573   : > { %v2823_v25 = vpop.permute.xlu1 %2822  ;;  %v2672_v40 = vmul.f32 %v2671_v3, %v2668_v38  ;;  %v2678_v42 = vmul.f32 %v2677_v15, %v2668_v38  ;;  %v2684_v37 = vmul.f32 %v2683_v62, %v2668_v38  ;;  %v2690_v12 = vmul.f32 %v2689_v29, %v2668_v38  ;;  %v2643_v36 = vpop.permute.xlu0 %2642  ;;  %p3593_p8 = pnand %p3592_p7, %p3588_p2 }
 0x574   : > { %v2647_v55 = vsel %vm669_vm8, %v2643_v36, 0.0  ;;  %v2828_v26 = vsel %vm669_vm8, %v2823_v25, 0.0  ;;  %v2798_v52 = vadd.f32 %v2796_v19, %v2750_v28  ;;  %v2871_v50 = vstv %s6685_s18 }
 0x575   : > { %v2661_v18 = vmul.f32 %v2659_v43, %v2647_v55  ;;  %v2674_v45 = vadd.f32 %v2672_v40, %v2492_v61  ;;  %v2680_v20 = vadd.f32 %v2678_v42, %v2498_v13  ;;  %v2686_v4 = vadd.f32 %v2684_v37, %v2504_v35 }
 0x576   : > { %v2692_v11 = vadd.f32 %v2690_v12, %v2510_v44  ;;  %v2842_v47 = vmul.f32 %v2841_v34, %v2828_v26  ;;  %v2745_v43 = vadd.f32 %v6492_v5, %v2739_v63  ;;  %v2859_v61 = vstv %s6670_s11 }
 0x577   : > { %v2663_v31 = vadd.f32 %v2661_v18, %v2657_v17  ;;  %v2877_v51 = vstv %s6695_s9  ;;  %v2883_v58 = vstv %s6703_s7  ;;  %v2889_v44 = vstv %s6705_s24 }
 0x578   : > { %v2844_v39 = vadd.f32 %v2842_v47, %v2838_v24  ;;  %v2829_v59 = vsel %vm669_vm8, %v2825_v23, 0.0  ;;  %v2895_v49 = vstv %s6709_s21  ;;  %v2751_v40 = vadd.f32 %v2749_v33, %v2745_v43 }
 0x579   : > { %v2665_v2 = vadd.f32 %v2663_v31, %v6515_v8  ;;  %v2837_v42 = vmul.f32 %v2835_v30, %v6101_v41 }
 0x57a   : > { %v2846_v13 = vadd.f32 %v2844_v39, %v2798_v52  ;;  %v2799_v26 = vadd.f32 %v6375_v48, %v2751_v40 }
 0x57b   : > { %v2669_v35 = vadd.f32 %v2667_v54, %v2665_v2  ;;  %v2817_v5 = vpop.permute.xlu0 %2816 }
 0x57c   : > { %v2850_v0 = vadd.f32 %v2849_v1, %v2846_v13  ;;  %v2821_v8 = vsel %vm668_vm7, %v2817_v5, 0.0 }
 0x57d   : > { %v2673_v7 = vmul.f32 %v2671_v3, %v2669_v35  ;;  %v2679_v46 = vmul.f32 %v2677_v15, %v2669_v35  ;;  %v2685_v19 = vmul.f32 %v2683_v62, %v2669_v35  ;;  %v2691_v10 = vmul.f32 %v2689_v29, %v2669_v35 }
 0x57e   : > { %v2854_v54 = vmul.f32 %v2853_v9, %v2850_v0  ;;  %v2860_v14 = vmul.f32 %v2859_v61, %v2850_v0  ;;  %v2866_v38 = vmul.f32 %v2865_v16, %v2850_v0  ;;  %v2872_v63 = vmul.f32 %v2871_v50, %v2850_v0 }
 0x57f   : > { %v2675_v27 = vadd.f32 %v2673_v7, %v6643_v22  ;;  %v2681_v6 = vadd.f32 %v2679_v46, %v6645_v56  ;;  %v2687_v25 = vadd.f32 %v2685_v19, %v6647_v60  ;;  %v2693_v32 = vadd.f32 %v2691_v10, %v6649_v53 }
 0x580   : > { %v2856_v3 = vadd.f32 %v2854_v54, %v2674_v45  ;;  %v2862_v15 = vadd.f32 %v2860_v14, %v2680_v20  ;;  %v2868_v62 = vadd.f32 %v2866_v38, %v2686_v4  ;;  %v2874_v29 = vadd.f32 %v2872_v63, %v2692_v11 }
 0x581   : > { %v2833_v37 = vmul.f32 %v2831_v57, %v2821_v8  ;;  %v2843_v60 = vmul.f32 %v2841_v34, %v2829_v59 }
 0x582   : > { %v2878_v22 = vadd.f32 %v2877_v51, %v2856_v3  ;;  %v2884_v12 = vadd.f32 %v2883_v58, %v2862_v15  ;;  %v2890_v36 = vadd.f32 %v2889_v44, %v2868_v62  ;;  %v2896_v56 = vadd.f32 %v2895_v49, %v2874_v29 }
 0x583   : > { %v2839_v53 = vadd.f32 %v2837_v42, %v2833_v37 }
 0x584   : > { %v2880_v17 = vmax.f32 %v2878_v22, 0.0  ;;  %v2886_v28 = vmax.f32 %v2884_v12, 0.0  ;;  %v2892_v55 = vmax.f32 %v2890_v36, 0.0  ;;  %v2898_v18 = vmax.f32 %v2896_v56, 0.0 }
 0x585   : > { %v2845_v45 = vadd.f32 %v2843_v60, %v2839_v53 }
 0x586   : > { %2901 = vst.msk [vmem:[%s6752_s2] sm:$0xff] %vm2900_vm9, %v2880_v17 }
 0x587   : > { %3292 = vst.msk [vmem:[%s6752_s2 + $0x10] sm:$0xff] %vm2900_vm9, %v2886_v28  ;;  %v2847_v41 = vadd.f32 %v2845_v45, %v2799_v26 }
 0x588   : > { %3294 = vst.msk [vmem:[%s6752_s2 + $0x20] sm:$0xff] %vm2900_vm9, %v2892_v55 }
 0x589   : > { %3296 = vst.msk [vmem:[%s6752_s2 + $0x30] sm:$0xff] %vm2900_vm9, %v2898_v18  ;;  %v2851_v30 = vadd.f32 %v2849_v1, %v2847_v41 }
 0x58b   : > { %v2855_v48 = vmul.f32 %v2853_v9, %v2851_v30  ;;  %v2861_v57 = vmul.f32 %v2859_v61, %v2851_v30  ;;  %v2867_v34 = vmul.f32 %v2865_v16, %v2851_v30  ;;  %v2873_v20 = vmul.f32 %v2871_v50, %v2851_v30 }
 0x58d   : > { %v2857_v4 = vadd.f32 %v2855_v48, %v2675_v27  ;;  %v2863_v21 = vadd.f32 %v2861_v57, %v2681_v6  ;;  %v2869_v24 = vadd.f32 %v2867_v34, %v2687_v25  ;;  %v2875_v11 = vadd.f32 %v2873_v20, %v2693_v32 }
 0x58f   : > { %v2879_v47 = vadd.f32 %v2877_v51, %v2857_v4  ;;  %v2885_v31 = vadd.f32 %v2883_v58, %v2863_v21  ;;  %v2891_v43 = vadd.f32 %v2889_v44, %v2869_v24  ;;  %v2897_v52 = vadd.f32 %v2895_v49, %v2875_v11 }
 0x591   : > { %v2881_v39 = vmax.f32 %v2879_v47, 0.0  ;;  %v2887_v33 = vmax.f32 %v2885_v31, 0.0  ;;  %v2893_v23 = vmax.f32 %v2891_v43, 0.0  ;;  %v2899_v2 = vmax.f32 %v2897_v52, 0.0 }
 0x593   : > { %2902 = vst.msk [vmem:[%s6752_s2 + $0x8] sm:$0xff] %vm2900_vm9, %v2881_v39 }
 0x594   : > { %3293 = vst.msk [vmem:[%s6752_s2 + $0x18] sm:$0xff] %vm2900_vm9, %v2887_v33 }
 0x595   : > { %3295 = vst.msk [vmem:[%s6752_s2 + $0x28] sm:$0xff] %vm2900_vm9, %v2893_v23 }
 0x596   : > { %3297 = vst.msk [vmem:[%s6752_s2 + $0x38] sm:$0xff] %vm2900_vm9, %v2899_v2 }
 0x597   : > { %3596 = shalt.err (!%p3593_p8)
}
 0x598   : > { %s3666_s22 = smov 128   ;;  %s3667_s27 = smov 8  }
 0x599   : > { %3346 = dma.vmem_to_hbm [thread:$0]  (%p3771_p5), %s2926_s5, 1024, %s2928_s28, %s2913_s14, %s3666_s22, %s3666_s22, %s3667_s27  }
 0x59a PF: > { %s7177_s11 = sld [smem:[#allocation26_spill]] }
 0x59b   : > { %s7178_s0 = sld [smem:[#allocation23_spill]] }
 0x5a0   : > { %p3393_p9 = scmp.ge.s32.totalorder %s7177_s11, 2 }
 0x5a1   : > { %s2942_s9 = sand.u32 1, %s7178_s0  }
 0x5a2   : > { %p3374_p10 = pnand %p3393_p9, %p3775_p6  ;;  %s2943_s7 = scalar_lea.sflag [#allocation3], %s2942_s9 }
 0x5a4   : > { %p3375_p11 = pneg %p3374_p10 }
 0x5a6   : > { %3634 = dma.done.wait (%p3375_p11), %s2943_s7, 1024  }
 0x5a7   : > { %3636 = vsyncadd (%p3375_p11), %s2943_s7, 4294966272  ;;  %s7180_s24 = sld [smem:[#allocation28_spill]] }
 0x5a8   : > { %s7181_s21 = sld [smem:[#allocation24_spill]] }
 0x5a9   : > { %s7182_s22 = sld [smem:[#allocation25_spill]] }
 0x5aa   : > { %s7183_s23 = sld [smem:[#allocation29_spill]] }
 0x5ad   : > { %p27_p12 = scmp.ge.s32.totalorder %s7180_s24, 4  }
 0x5af   :  { %29 = sbr.rel (!%p27_p12) target bundleno = 22 (0x16), region = 145 }
 0x5b4   :  { %2949 = vsyncpa [#allocation3], 1 }
 0x5b5   :  { %2951 = vsyncpa [#allocation3 + $0x1], 1 }
 0x5b6   :  { %2952 = vsyncpa [#allocation4], 1 }
 0x5b7   :  { %2954 = vsyncpa [#allocation4 + $0x1], 1 }
 0x5b8   :  { %2955 = vsyncpa [#allocation6], 1 }
 0x5b9   :  { %2956 = vsyncpa [#allocation9], 1 }
 0x5ba   :  { %2957 = vsyncpa [#allocation12], 1 }
 0x5bb   :  { %2958 = vsyncpa [#allocation15], 1 }

</bundles_post_ra>
